<compile_context>
chip_gen: v5e
topology: v5e:2x2
jax: 0.10.0
libtpu: 0.0.40
codegen_flags: <defaults>
</compile_context>

<pallas_src>
import jax
import jax.numpy as jnp
from jax.experimental import pallas as pl
from jax.experimental.pallas import tpu as pltpu


# ---------------------------------------------------------------------------
# Fused LeNet kernel (one grid step == one image)
# ---------------------------------------------------------------------------
def _lenet_fused_kernel(planes_ref, w1_ref, b1_ref, w2_ref, b2_ref,
                        wf1_ref, bf1_ref, wf2_ref, bf2_ref, wf3_ref, bf3_ref,
                        out_ref, act1s_ref):
    """Whole LeNet forward for one image, entirely in VMEM.

    planes_ref: (1, 16, 112) pre-strided image planes produced in the wrapper:
        plane[rp*8 + c0][u*7 + t] = img[2*u + rp, 4*t + c0]
      (rp = image-row parity, c0 = image-column offset). This lets every conv1
      im2col row be ONE contiguous 98-lane read (no strided / gather access).
    w1:  (6, 25)    conv1 weight, rows flattened (kh*5 + kw)
    w2:  (16, 150)  conv2 weight, columns ordered ((kh*5 + kw)*6 + cin)
    wf1/wf2/wf3:    FC weights pre-transposed to (K, N); biases as (1, N) / (C, 1)
    act1s_ref: (12, 6, 35) VMEM scratch: pooled conv1 activation repacked into
      conv2-friendly parity planes so conv2 patches are also contiguous reads.
    """
    f32 = jnp.float32

    # ---------------- conv1 + relu + 2x2 maxpool -------------------------
    # conv1 column j is parameterised as j = 4*t + m (t in [0,7), m in [0,4)) and
    # row r as r = 2*i + di, so the 2x2 pool is a plain max over (di, m-pairs) and
    # the pooled result comes out column-parity-split (what conv2 needs).
    w1 = w1_ref[...]                                   # (6, 25)
    b1 = b1_ref[...]                                   # (6, 1)
    y1 = {}
    for di in range(2):
        for m in range(4):
            rows = []
            for kh in range(5):
                for kw in range(5):
                    dh = di + kh                       # 0..5
                    q = m + kw                         # 0..7
                    plane = (dh % 2) * 8 + q
                    off = (dh // 2) * 7
                    rows.append(planes_ref[0, pl.ds(plane, 1), pl.ds(off, 98)])
            patches = jnp.concatenate(rows, axis=0)    # (25, 98)
            acc = jnp.dot(w1, patches, preferred_element_type=f32) + b1
            y1[(di, m)] = jnp.maximum(acc, 0.0)        # (6, 98)

    # Pooled conv1 activation A[c, i, jp] (6, 14, 14) held as two (6, 98) values:
    # jp = 2*t + par, lane index = i*7 + t.
    a1 = [
        jnp.maximum(jnp.maximum(y1[(0, 2 * par)], y1[(0, 2 * par + 1)]),
                    jnp.maximum(y1[(1, 2 * par)], y1[(1, 2 * par + 1)]))
        for par in range(2)
    ]

    # -------- repack A into conv2-friendly planes (VMEM scratch) ----------
    # act1s[rp*6 + cp*3 + e, c, u*5 + v] = A[c, 2*u + rp, 2*(v + e) + cp]
    for rp in range(2):
        for cp in range(2):
            for e in range(3):
                pidx = rp * 6 + cp * 3 + e
                for u in range(7):
                    s = (2 * u + rp) * 7 + e
                    act1s_ref[pidx, :, u * 5:(u + 1) * 5] = a1[cp][:, s:s + 5]

    # ---------------- conv2 + relu + 2x2 maxpool -------------------------
    w2 = w2_ref[...]                                   # (16, 150)
    b2 = b2_ref[...]                                   # (16, 1)
    y2 = []
    for di in range(2):
        for dj in range(2):
            pieces = []
            for kh in range(5):
                for kw in range(5):
                    dh = di + kh                       # 0..5
                    q = dj + kw                        # 0..5
                    pidx = (dh % 2) * 6 + (q % 2) * 3 + (q // 2)
                    pieces.append(act1s_ref[pidx, :, pl.ds((dh // 2) * 5, 25)])
            patches = jnp.concatenate(pieces, axis=0)  # (150, 25)
            acc = jnp.dot(w2, patches, preferred_element_type=f32) + b2
            y2.append(jnp.maximum(acc, 0.0))           # (16, 25)

    # Pooled conv2 activation (16, 25); row-major flatten == torch .view order
    # (index = c*25 + i*5 + j).
    act2 = jnp.maximum(jnp.maximum(y2[0], y2[1]), jnp.maximum(y2[2], y2[3]))

    # ---------------- flatten + fc1 + fc2 + fc3 ---------------------------
    flat = jnp.concatenate([act2[d:d + 1, :] for d in range(16)], axis=1)  # (1, 400)
    h = jnp.dot(flat, wf1_ref[...], preferred_element_type=f32) + bf1_ref[...]
    h = jnp.maximum(h, 0.0)                                                # (1, 120)
    h = jnp.dot(h, wf2_ref[...], preferred_element_type=f32) + bf2_ref[...]
    h = jnp.maximum(h, 0.0)                                                # (1, 84)
    out = jnp.dot(h, wf3_ref[...], preferred_element_type=f32) + bf3_ref[...]
    out_ref[0] = out.astype(out_ref.dtype)                                 # (1, 10)


# ---------------------------------------------------------------------------
# Wrapper
# ---------------------------------------------------------------------------
def _conv1_planes(x):
    """(B, 1, 32, 32) -> (B, 16, 112) strided image planes consumed by the kernel."""
    B = x.shape[0]
    img = x[:, 0]                                       # (B, 32, 32)
    planes = []
    for rp in range(2):                                 # image-row parity
        for c0 in range(8):                             # image-column offset
            p = img[:, rp::2, c0::4][:, :, :7]          # (B, 16, 7)
            planes.append(p.reshape(B, 16 * 7))
    return jnp.stack(planes, axis=1)                    # (B, 16, 112)


@jax.jit
def net_forward(params, x):
    """LeNet forward. x: (B, 1, 32, 32) float32 NCHW -> (B, 10)."""
    B = x.shape[0]
    planes = _conv1_planes(x)

    # Fixed weight layouts (no in-kernel transposes).
    w1 = params["conv1_w"].reshape(6, 25)
    b1 = params["conv1_b"].reshape(6, 1)
    w2 = params["conv2_w"].transpose(0, 2, 3, 1).reshape(16, 150)
    b2 = params["conv2_b"].reshape(16, 1)
    wf1 = params["fc1_w"].T                             # (400, 120)
    bf1 = params["fc1_b"].reshape(1, 120)
    wf2 = params["fc2_w"].T                             # (120, 84)
    bf2 = params["fc2_b"].reshape(1, 84)
    wf3 = params["fc3_w"].T                             # (84, 10)
    bf3 = params["fc3_b"].reshape(1, 10)

    def full(shape):
        return pl.BlockSpec(shape, lambda b: (0,) * len(shape))

    out = pl.pallas_call(
        _lenet_fused_kernel,
        out_shape=jax.ShapeDtypeStruct((B, 1, 10), jnp.float32),
        grid=(B,),
        in_specs=[
            pl.BlockSpec((1, 16, 112), lambda b: (b, 0, 0)),   # per-image planes
            full((6, 25)), full((6, 1)),                       # conv1
            full((16, 150)), full((16, 1)),                    # conv2
            full((400, 120)), full((1, 120)),                  # fc1
            full((120, 84)), full((1, 84)),                    # fc2
            full((84, 10)), full((1, 10)),                     # fc3
        ],
        out_specs=pl.BlockSpec((1, 1, 10), lambda b: (b, 0, 0)),
        scratch_shapes=[pltpu.VMEM((12, 6, 35), jnp.float32)],
        compiler_params=pltpu.CompilerParams(
            dimension_semantics=("parallel",)),                # megacore split over batch
    )(planes, w1, b1, w2, b2, wf1, bf1, wf2, bf2, wf3, bf3)
    return out[:, 0, :]


# ---------------------------------------------------------------------------
# Parameters (deterministic, PyTorch-default-style uniform init)
# ---------------------------------------------------------------------------
def init_params(key):
    def uniform(k, shape, fan_in):
        bound = 1.0 / float(fan_in) ** 0.5
        return jax.random.uniform(k, shape, jnp.float32, -bound, bound)

    ks = jax.random.split(key, 10)
    return {
        "conv1_w": uniform(ks[0], (6, 1, 5, 5), 1 * 5 * 5),
        "conv1_b": uniform(ks[1], (6,), 1 * 5 * 5),
        "conv2_w": uniform(ks[2], (16, 6, 5, 5), 6 * 5 * 5),
        "conv2_b": uniform(ks[3], (16,), 6 * 5 * 5),
        "fc1_w": uniform(ks[4], (120, 16 * 5 * 5), 16 * 5 * 5),
        "fc1_b": uniform(ks[5], (120,), 16 * 5 * 5),
        "fc2_w": uniform(ks[6], (84, 120), 120),
        "fc2_b": uniform(ks[7], (84,), 120),
        "fc3_w": uniform(ks[8], (10, 84), 84),
        "fc3_b": uniform(ks[9], (10,), 84),
    }


# ---------------------------------------------------------------------------
# Pure-XLA reference (mirrors the PyTorch module) for a correctness smoke test
# ---------------------------------------------------------------------------
def net_forward_reference(params, x):
    def conv(x, w, b):
        y = jax.lax.conv_general_dilated(
            x, w, window_strides=(1, 1), padding="VALID",
            dimension_numbers=("NCHW", "OIHW", "NCHW"))
        return y + b.reshape(1, -1, 1, 1)

    def pool(x):
        B, C, H, W = x.shape
        return x.reshape(B, C, H // 2, 2, W // 2, 2).max(axis=(3, 5))

    x = pool(jax.nn.relu(conv(x, params["conv1_w"], params["conv1_b"])))
    x = pool(jax.nn.relu(conv(x, params["conv2_w"], params["conv2_b"])))
    x = x.reshape(x.shape[0], -1)
    x = jax.nn.relu(x @ params["fc1_w"].T + params["fc1_b"])
    x = jax.nn.relu(x @ params["fc2_w"].T + params["fc2_b"])
    return x @ params["fc3_w"].T + params["fc3_b"]


if __name__ == "__main__":
    key = jax.random.PRNGKey(0)
    pkey, xkey = jax.random.split(key)
    params = init_params(pkey)
    # LeNet geometry requires 32x32 single-channel input to yield 16*5*5 features.
    x = jax.random.normal(xkey, (2, 1, 32, 32), dtype=jnp.float32)

    out = net_forward(params, x)
    jax.block_until_ready(out)
    assert out.shape == (2, 10)

    ref = net_forward_reference(params, x)
    err = float(jnp.max(jnp.abs(out - ref)))
    assert err < 5e-2, f"mismatch vs reference: max abs err = {err}"
    print("KERNEL_OK")
</pallas_src>

<mosaic_0001>
module attributes {stable_mosaic.version = 11 : i64} {
  func.func @_lenet_fused_kernel(%arg0: i32, %arg1: memref<1x16x112xf32, #tpu.memory_space<vmem>>, %arg2: memref<6x25xf32, #tpu.memory_space<vmem>>, %arg3: memref<6x1xf32, #tpu.memory_space<vmem>>, %arg4: memref<16x150xf32, #tpu.memory_space<vmem>>, %arg5: memref<16x1xf32, #tpu.memory_space<vmem>>, %arg6: memref<400x120xf32, #tpu.memory_space<vmem>>, %arg7: memref<1x120xf32, #tpu.memory_space<vmem>>, %arg8: memref<120x84xf32, #tpu.memory_space<vmem>>, %arg9: memref<1x84xf32, #tpu.memory_space<vmem>>, %arg10: memref<84x10xf32, #tpu.memory_space<vmem>>, %arg11: memref<1x10xf32, #tpu.memory_space<vmem>>, %arg12: memref<1x1x10xf32, #tpu.memory_space<vmem>>, %arg13: memref<12x6x35xf32, #tpu.memory_space<vmem>>) attributes {dimension_semantics = [#tpu.dimension_semantics<parallel>], iteration_bounds = array<i64: 2>, scalar_prefetch = 0 : i64, scratch_operands = 1 : i64, tpu.core_type = #tpu.core_type<tc>, window_params = [{transform_indices = @transform_0, window_bounds = array<i64: 1, 16, 112>}, {pipeline_mode = #tpu.pipeline_mode<synchronous>, transform_indices = @transform_1, window_bounds = array<i64: 6, 25>}, {pipeline_mode = #tpu.pipeline_mode<synchronous>, transform_indices = @transform_2, window_bounds = array<i64: 6, 1>}, {pipeline_mode = #tpu.pipeline_mode<synchronous>, transform_indices = @transform_3, window_bounds = array<i64: 16, 150>}, {pipeline_mode = #tpu.pipeline_mode<synchronous>, transform_indices = @transform_4, window_bounds = array<i64: 16, 1>}, {pipeline_mode = #tpu.pipeline_mode<synchronous>, transform_indices = @transform_5, window_bounds = array<i64: 400, 120>}, {pipeline_mode = #tpu.pipeline_mode<synchronous>, transform_indices = @transform_6, window_bounds = array<i64: 1, 120>}, {pipeline_mode = #tpu.pipeline_mode<synchronous>, transform_indices = @transform_7, window_bounds = array<i64: 120, 84>}, {pipeline_mode = #tpu.pipeline_mode<synchronous>, transform_indices = @transform_8, window_bounds = array<i64: 1, 84>}, {pipeline_mode = #tpu.pipeline_mode<synchronous>, transform_indices = @transform_9, window_bounds = array<i64: 84, 10>}, {pipeline_mode = #tpu.pipeline_mode<synchronous>, transform_indices = @transform_10, window_bounds = array<i64: 1, 10>}, {transform_indices = @transform_11, window_bounds = array<i64: 1, 1, 10>}]} {
    %c0 = arith.constant 0 : index
    %c0_0 = arith.constant 0 : index
    %0 = vector.load %arg2[%c0, %c0_0] : memref<6x25xf32, #tpu.memory_space<vmem>>, vector<6x25xf32>
    %c0_1 = arith.constant 0 : index
    %c0_2 = arith.constant 0 : index
    %1 = vector.load %arg3[%c0_1, %c0_2] : memref<6x1xf32, #tpu.memory_space<vmem>>, vector<6x1xf32>
    %c0_3 = arith.constant 0 : index
    %c0_4 = arith.constant 0 : index
    %c0_5 = arith.constant 0 : index
    %2 = vector.load %arg1[%c0_3, %c0_4, %c0_5] : memref<1x16x112xf32, #tpu.memory_space<vmem>>, vector<1x1x98xf32>
    %3 = vector.shape_cast %2 : vector<1x1x98xf32> to vector<1x98xf32>
    %c0_6 = arith.constant 0 : index
    %c1 = arith.constant 1 : index
    %c0_7 = arith.constant 0 : index
    %4 = vector.load %arg1[%c0_6, %c1, %c0_7] : memref<1x16x112xf32, #tpu.memory_space<vmem>>, vector<1x1x98xf32>
    %5 = vector.shape_cast %4 : vector<1x1x98xf32> to vector<1x98xf32>
    %c0_8 = arith.constant 0 : index
    %c2 = arith.constant 2 : index
    %c0_9 = arith.constant 0 : index
    %6 = vector.load %arg1[%c0_8, %c2, %c0_9] : memref<1x16x112xf32, #tpu.memory_space<vmem>>, vector<1x1x98xf32>
    %7 = vector.shape_cast %6 : vector<1x1x98xf32> to vector<1x98xf32>
    %c0_10 = arith.constant 0 : index
    %c3 = arith.constant 3 : index
    %c0_11 = arith.constant 0 : index
    %8 = vector.load %arg1[%c0_10, %c3, %c0_11] : memref<1x16x112xf32, #tpu.memory_space<vmem>>, vector<1x1x98xf32>
    %9 = vector.shape_cast %8 : vector<1x1x98xf32> to vector<1x98xf32>
    %c0_12 = arith.constant 0 : index
    %c4 = arith.constant 4 : index
    %c0_13 = arith.constant 0 : index
    %10 = vector.load %arg1[%c0_12, %c4, %c0_13] : memref<1x16x112xf32, #tpu.memory_space<vmem>>, vector<1x1x98xf32>
    %11 = vector.shape_cast %10 : vector<1x1x98xf32> to vector<1x98xf32>
    %c0_14 = arith.constant 0 : index
    %c8 = arith.constant 8 : index
    %c0_15 = arith.constant 0 : index
    %12 = vector.load %arg1[%c0_14, %c8, %c0_15] : memref<1x16x112xf32, #tpu.memory_space<vmem>>, vector<1x1x98xf32>
    %13 = vector.shape_cast %12 : vector<1x1x98xf32> to vector<1x98xf32>
    %c0_16 = arith.constant 0 : index
    %c9 = arith.constant 9 : index
    %c0_17 = arith.constant 0 : index
    %14 = vector.load %arg1[%c0_16, %c9, %c0_17] : memref<1x16x112xf32, #tpu.memory_space<vmem>>, vector<1x1x98xf32>
    %15 = vector.shape_cast %14 : vector<1x1x98xf32> to vector<1x98xf32>
    %c0_18 = arith.constant 0 : index
    %c10 = arith.constant 10 : index
    %c0_19 = arith.constant 0 : index
    %16 = vector.load %arg1[%c0_18, %c10, %c0_19] : memref<1x16x112xf32, #tpu.memory_space<vmem>>, vector<1x1x98xf32>
    %17 = vector.shape_cast %16 : vector<1x1x98xf32> to vector<1x98xf32>
    %c0_20 = arith.constant 0 : index
    %c11 = arith.constant 11 : index
    %c0_21 = arith.constant 0 : index
    %18 = vector.load %arg1[%c0_20, %c11, %c0_21] : memref<1x16x112xf32, #tpu.memory_space<vmem>>, vector<1x1x98xf32>
    %19 = vector.shape_cast %18 : vector<1x1x98xf32> to vector<1x98xf32>
    %c0_22 = arith.constant 0 : index
    %c12 = arith.constant 12 : index
    %c0_23 = arith.constant 0 : index
    %20 = vector.load %arg1[%c0_22, %c12, %c0_23] : memref<1x16x112xf32, #tpu.memory_space<vmem>>, vector<1x1x98xf32>
    %21 = vector.shape_cast %20 : vector<1x1x98xf32> to vector<1x98xf32>
    %c0_24 = arith.constant 0 : index
    %c0_25 = arith.constant 0 : index
    %c7 = arith.constant 7 : index
    %22 = vector.load %arg1[%c0_24, %c0_25, %c7] : memref<1x16x112xf32, #tpu.memory_space<vmem>>, vector<1x1x98xf32>
    %23 = vector.shape_cast %22 : vector<1x1x98xf32> to vector<1x98xf32>
    %c0_26 = arith.constant 0 : index
    %c1_27 = arith.constant 1 : index
    %c7_28 = arith.constant 7 : index
    %24 = vector.load %arg1[%c0_26, %c1_27, %c7_28] : memref<1x16x112xf32, #tpu.memory_space<vmem>>, vector<1x1x98xf32>
    %25 = vector.shape_cast %24 : vector<1x1x98xf32> to vector<1x98xf32>
    %c0_29 = arith.constant 0 : index
    %c2_30 = arith.constant 2 : index
    %c7_31 = arith.constant 7 : index
    %26 = vector.load %arg1[%c0_29, %c2_30, %c7_31] : memref<1x16x112xf32, #tpu.memory_space<vmem>>, vector<1x1x98xf32>
    %27 = vector.shape_cast %26 : vector<1x1x98xf32> to vector<1x98xf32>
    %c0_32 = arith.constant 0 : index
    %c3_33 = arith.constant 3 : index
    %c7_34 = arith.constant 7 : index
    %28 = vector.load %arg1[%c0_32, %c3_33, %c7_34] : memref<1x16x112xf32, #tpu.memory_space<vmem>>, vector<1x1x98xf32>
    %29 = vector.shape_cast %28 : vector<1x1x98xf32> to vector<1x98xf32>
    %c0_35 = arith.constant 0 : index
    %c4_36 = arith.constant 4 : index
    %c7_37 = arith.constant 7 : index
    %30 = vector.load %arg1[%c0_35, %c4_36, %c7_37] : memref<1x16x112xf32, #tpu.memory_space<vmem>>, vector<1x1x98xf32>
    %31 = vector.shape_cast %30 : vector<1x1x98xf32> to vector<1x98xf32>
    %c0_38 = arith.constant 0 : index
    %c8_39 = arith.constant 8 : index
    %c7_40 = arith.constant 7 : index
    %32 = vector.load %arg1[%c0_38, %c8_39, %c7_40] : memref<1x16x112xf32, #tpu.memory_space<vmem>>, vector<1x1x98xf32>
    %33 = vector.shape_cast %32 : vector<1x1x98xf32> to vector<1x98xf32>
    %c0_41 = arith.constant 0 : index
    %c9_42 = arith.constant 9 : index
    %c7_43 = arith.constant 7 : index
    %34 = vector.load %arg1[%c0_41, %c9_42, %c7_43] : memref<1x16x112xf32, #tpu.memory_space<vmem>>, vector<1x1x98xf32>
    %35 = vector.shape_cast %34 : vector<1x1x98xf32> to vector<1x98xf32>
    %c0_44 = arith.constant 0 : index
    %c10_45 = arith.constant 10 : index
    %c7_46 = arith.constant 7 : index
    %36 = vector.load %arg1[%c0_44, %c10_45, %c7_46] : memref<1x16x112xf32, #tpu.memory_space<vmem>>, vector<1x1x98xf32>
    %37 = vector.shape_cast %36 : vector<1x1x98xf32> to vector<1x98xf32>
    %c0_47 = arith.constant 0 : index
    %c11_48 = arith.constant 11 : index
    %c7_49 = arith.constant 7 : index
    %38 = vector.load %arg1[%c0_47, %c11_48, %c7_49] : memref<1x16x112xf32, #tpu.memory_space<vmem>>, vector<1x1x98xf32>
    %39 = vector.shape_cast %38 : vector<1x1x98xf32> to vector<1x98xf32>
    %c0_50 = arith.constant 0 : index
    %c12_51 = arith.constant 12 : index
    %c7_52 = arith.constant 7 : index
    %40 = vector.load %arg1[%c0_50, %c12_51, %c7_52] : memref<1x16x112xf32, #tpu.memory_space<vmem>>, vector<1x1x98xf32>
    %41 = vector.shape_cast %40 : vector<1x1x98xf32> to vector<1x98xf32>
    %c0_53 = arith.constant 0 : index
    %c0_54 = arith.constant 0 : index
    %c14 = arith.constant 14 : index
    %42 = vector.load %arg1[%c0_53, %c0_54, %c14] : memref<1x16x112xf32, #tpu.memory_space<vmem>>, vector<1x1x98xf32>
    %43 = vector.shape_cast %42 : vector<1x1x98xf32> to vector<1x98xf32>
    %c0_55 = arith.constant 0 : index
    %c1_56 = arith.constant 1 : index
    %c14_57 = arith.constant 14 : index
    %44 = vector.load %arg1[%c0_55, %c1_56, %c14_57] : memref<1x16x112xf32, #tpu.memory_space<vmem>>, vector<1x1x98xf32>
    %45 = vector.shape_cast %44 : vector<1x1x98xf32> to vector<1x98xf32>
    %c0_58 = arith.constant 0 : index
    %c2_59 = arith.constant 2 : index
    %c14_60 = arith.constant 14 : index
    %46 = vector.load %arg1[%c0_58, %c2_59, %c14_60] : memref<1x16x112xf32, #tpu.memory_space<vmem>>, vector<1x1x98xf32>
    %47 = vector.shape_cast %46 : vector<1x1x98xf32> to vector<1x98xf32>
    %c0_61 = arith.constant 0 : index
    %c3_62 = arith.constant 3 : index
    %c14_63 = arith.constant 14 : index
    %48 = vector.load %arg1[%c0_61, %c3_62, %c14_63] : memref<1x16x112xf32, #tpu.memory_space<vmem>>, vector<1x1x98xf32>
    %49 = vector.shape_cast %48 : vector<1x1x98xf32> to vector<1x98xf32>
    %c0_64 = arith.constant 0 : index
    %c4_65 = arith.constant 4 : index
    %c14_66 = arith.constant 14 : index
    %50 = vector.load %arg1[%c0_64, %c4_65, %c14_66] : memref<1x16x112xf32, #tpu.memory_space<vmem>>, vector<1x1x98xf32>
    %51 = vector.shape_cast %50 : vector<1x1x98xf32> to vector<1x98xf32>
    %52 = tpu.concatenate %3, %5, %7, %9, %11, %13, %15, %17, %19, %21, %23, %25, %27, %29, %31, %33 in 0 : vector<1x98xf32>, vector<1x98xf32>, vector<1x98xf32>, vector<1x98xf32>, vector<1x98xf32>, vector<1x98xf32>, vector<1x98xf32>, vector<1x98xf32>, vector<1x98xf32>, vector<1x98xf32>, vector<1x98xf32>, vector<1x98xf32>, vector<1x98xf32>, vector<1x98xf32>, vector<1x98xf32>, vector<1x98xf32> -> vector<16x98xf32>
    %53 = tpu.concatenate %35, %37, %39, %41, %43, %45, %47, %49, %51 in 0 : vector<1x98xf32>, vector<1x98xf32>, vector<1x98xf32>, vector<1x98xf32>, vector<1x98xf32>, vector<1x98xf32>, vector<1x98xf32>, vector<1x98xf32>, vector<1x98xf32> -> vector<9x98xf32>
    %54 = tpu.concatenate %52, %53 in 0 : vector<16x98xf32>, vector<9x98xf32> -> vector<25x98xf32>
    %cst = arith.constant dense<0.000000e+00> : vector<6x98xf32>
    %55 = tpu.matmul %0, %54, %cst {dimension_numbers = #tpu.dot_dimension_numbers<[1], [0], [0], [1], [0, 0, 1, 1], [], []>} : vector<6x25xf32>, vector<25x98xf32>, vector<6x98xf32> -> vector<6x98xf32>
    %56 = vector.broadcast %1 : vector<6x1xf32> to vector<6x98xf32>
    %57 = arith.addf %55, %56 : vector<6x98xf32>
    %cst_67 = arith.constant 0.000000e+00 : f32
    %58 = vector.broadcast %cst_67 : f32 to vector<6x98xf32>
    %59 = arith.maximumf %57, %58 : vector<6x98xf32>
    %c0_68 = arith.constant 0 : index
    %c1_69 = arith.constant 1 : index
    %c0_70 = arith.constant 0 : index
    %60 = vector.load %arg1[%c0_68, %c1_69, %c0_70] : memref<1x16x112xf32, #tpu.memory_space<vmem>>, vector<1x1x98xf32>
    %61 = vector.shape_cast %60 : vector<1x1x98xf32> to vector<1x98xf32>
    %c0_71 = arith.constant 0 : index
    %c2_72 = arith.constant 2 : index
    %c0_73 = arith.constant 0 : index
    %62 = vector.load %arg1[%c0_71, %c2_72, %c0_73] : memref<1x16x112xf32, #tpu.memory_space<vmem>>, vector<1x1x98xf32>
    %63 = vector.shape_cast %62 : vector<1x1x98xf32> to vector<1x98xf32>
    %c0_74 = arith.constant 0 : index
    %c3_75 = arith.constant 3 : index
    %c0_76 = arith.constant 0 : index
    %64 = vector.load %arg1[%c0_74, %c3_75, %c0_76] : memref<1x16x112xf32, #tpu.memory_space<vmem>>, vector<1x1x98xf32>
    %65 = vector.shape_cast %64 : vector<1x1x98xf32> to vector<1x98xf32>
    %c0_77 = arith.constant 0 : index
    %c4_78 = arith.constant 4 : index
    %c0_79 = arith.constant 0 : index
    %66 = vector.load %arg1[%c0_77, %c4_78, %c0_79] : memref<1x16x112xf32, #tpu.memory_space<vmem>>, vector<1x1x98xf32>
    %67 = vector.shape_cast %66 : vector<1x1x98xf32> to vector<1x98xf32>
    %c0_80 = arith.constant 0 : index
    %c5 = arith.constant 5 : index
    %c0_81 = arith.constant 0 : index
    %68 = vector.load %arg1[%c0_80, %c5, %c0_81] : memref<1x16x112xf32, #tpu.memory_space<vmem>>, vector<1x1x98xf32>
    %69 = vector.shape_cast %68 : vector<1x1x98xf32> to vector<1x98xf32>
    %c0_82 = arith.constant 0 : index
    %c9_83 = arith.constant 9 : index
    %c0_84 = arith.constant 0 : index
    %70 = vector.load %arg1[%c0_82, %c9_83, %c0_84] : memref<1x16x112xf32, #tpu.memory_space<vmem>>, vector<1x1x98xf32>
    %71 = vector.shape_cast %70 : vector<1x1x98xf32> to vector<1x98xf32>
    %c0_85 = arith.constant 0 : index
    %c10_86 = arith.constant 10 : index
    %c0_87 = arith.constant 0 : index
    %72 = vector.load %arg1[%c0_85, %c10_86, %c0_87] : memref<1x16x112xf32, #tpu.memory_space<vmem>>, vector<1x1x98xf32>
    %73 = vector.shape_cast %72 : vector<1x1x98xf32> to vector<1x98xf32>
    %c0_88 = arith.constant 0 : index
    %c11_89 = arith.constant 11 : index
    %c0_90 = arith.constant 0 : index
    %74 = vector.load %arg1[%c0_88, %c11_89, %c0_90] : memref<1x16x112xf32, #tpu.memory_space<vmem>>, vector<1x1x98xf32>
    %75 = vector.shape_cast %74 : vector<1x1x98xf32> to vector<1x98xf32>
    %c0_91 = arith.constant 0 : index
    %c12_92 = arith.constant 12 : index
    %c0_93 = arith.constant 0 : index
    %76 = vector.load %arg1[%c0_91, %c12_92, %c0_93] : memref<1x16x112xf32, #tpu.memory_space<vmem>>, vector<1x1x98xf32>
    %77 = vector.shape_cast %76 : vector<1x1x98xf32> to vector<1x98xf32>
    %c0_94 = arith.constant 0 : index
    %c13 = arith.constant 13 : index
    %c0_95 = arith.constant 0 : index
    %78 = vector.load %arg1[%c0_94, %c13, %c0_95] : memref<1x16x112xf32, #tpu.memory_space<vmem>>, vector<1x1x98xf32>
    %79 = vector.shape_cast %78 : vector<1x1x98xf32> to vector<1x98xf32>
    %c0_96 = arith.constant 0 : index
    %c1_97 = arith.constant 1 : index
    %c7_98 = arith.constant 7 : index
    %80 = vector.load %arg1[%c0_96, %c1_97, %c7_98] : memref<1x16x112xf32, #tpu.memory_space<vmem>>, vector<1x1x98xf32>
    %81 = vector.shape_cast %80 : vector<1x1x98xf32> to vector<1x98xf32>
    %c0_99 = arith.constant 0 : index
    %c2_100 = arith.constant 2 : index
    %c7_101 = arith.constant 7 : index
    %82 = vector.load %arg1[%c0_99, %c2_100, %c7_101] : memref<1x16x112xf32, #tpu.memory_space<vmem>>, vector<1x1x98xf32>
    %83 = vector.shape_cast %82 : vector<1x1x98xf32> to vector<1x98xf32>
    %c0_102 = arith.constant 0 : index
    %c3_103 = arith.constant 3 : index
    %c7_104 = arith.constant 7 : index
    %84 = vector.load %arg1[%c0_102, %c3_103, %c7_104] : memref<1x16x112xf32, #tpu.memory_space<vmem>>, vector<1x1x98xf32>
    %85 = vector.shape_cast %84 : vector<1x1x98xf32> to vector<1x98xf32>
    %c0_105 = arith.constant 0 : index
    %c4_106 = arith.constant 4 : index
    %c7_107 = arith.constant 7 : index
    %86 = vector.load %arg1[%c0_105, %c4_106, %c7_107] : memref<1x16x112xf32, #tpu.memory_space<vmem>>, vector<1x1x98xf32>
    %87 = vector.shape_cast %86 : vector<1x1x98xf32> to vector<1x98xf32>
    %c0_108 = arith.constant 0 : index
    %c5_109 = arith.constant 5 : index
    %c7_110 = arith.constant 7 : index
    %88 = vector.load %arg1[%c0_108, %c5_109, %c7_110] : memref<1x16x112xf32, #tpu.memory_space<vmem>>, vector<1x1x98xf32>
    %89 = vector.shape_cast %88 : vector<1x1x98xf32> to vector<1x98xf32>
    %c0_111 = arith.constant 0 : index
    %c9_112 = arith.constant 9 : index
    %c7_113 = arith.constant 7 : index
    %90 = vector.load %arg1[%c0_111, %c9_112, %c7_113] : memref<1x16x112xf32, #tpu.memory_space<vmem>>, vector<1x1x98xf32>
    %91 = vector.shape_cast %90 : vector<1x1x98xf32> to vector<1x98xf32>
    %c0_114 = arith.constant 0 : index
    %c10_115 = arith.constant 10 : index
    %c7_116 = arith.constant 7 : index
    %92 = vector.load %arg1[%c0_114, %c10_115, %c7_116] : memref<1x16x112xf32, #tpu.memory_space<vmem>>, vector<1x1x98xf32>
    %93 = vector.shape_cast %92 : vector<1x1x98xf32> to vector<1x98xf32>
    %c0_117 = arith.constant 0 : index
    %c11_118 = arith.constant 11 : index
    %c7_119 = arith.constant 7 : index
    %94 = vector.load %arg1[%c0_117, %c11_118, %c7_119] : memref<1x16x112xf32, #tpu.memory_space<vmem>>, vector<1x1x98xf32>
    %95 = vector.shape_cast %94 : vector<1x1x98xf32> to vector<1x98xf32>
    %c0_120 = arith.constant 0 : index
    %c12_121 = arith.constant 12 : index
    %c7_122 = arith.constant 7 : index
    %96 = vector.load %arg1[%c0_120, %c12_121, %c7_122] : memref<1x16x112xf32, #tpu.memory_space<vmem>>, vector<1x1x98xf32>
    %97 = vector.shape_cast %96 : vector<1x1x98xf32> to vector<1x98xf32>
    %c0_123 = arith.constant 0 : index
    %c13_124 = arith.constant 13 : index
    %c7_125 = arith.constant 7 : index
    %98 = vector.load %arg1[%c0_123, %c13_124, %c7_125] : memref<1x16x112xf32, #tpu.memory_space<vmem>>, vector<1x1x98xf32>
    %99 = vector.shape_cast %98 : vector<1x1x98xf32> to vector<1x98xf32>
    %c0_126 = arith.constant 0 : index
    %c1_127 = arith.constant 1 : index
    %c14_128 = arith.constant 14 : index
    %100 = vector.load %arg1[%c0_126, %c1_127, %c14_128] : memref<1x16x112xf32, #tpu.memory_space<vmem>>, vector<1x1x98xf32>
    %101 = vector.shape_cast %100 : vector<1x1x98xf32> to vector<1x98xf32>
    %c0_129 = arith.constant 0 : index
    %c2_130 = arith.constant 2 : index
    %c14_131 = arith.constant 14 : index
    %102 = vector.load %arg1[%c0_129, %c2_130, %c14_131] : memref<1x16x112xf32, #tpu.memory_space<vmem>>, vector<1x1x98xf32>
    %103 = vector.shape_cast %102 : vector<1x1x98xf32> to vector<1x98xf32>
    %c0_132 = arith.constant 0 : index
    %c3_133 = arith.constant 3 : index
    %c14_134 = arith.constant 14 : index
    %104 = vector.load %arg1[%c0_132, %c3_133, %c14_134] : memref<1x16x112xf32, #tpu.memory_space<vmem>>, vector<1x1x98xf32>
    %105 = vector.shape_cast %104 : vector<1x1x98xf32> to vector<1x98xf32>
    %c0_135 = arith.constant 0 : index
    %c4_136 = arith.constant 4 : index
    %c14_137 = arith.constant 14 : index
    %106 = vector.load %arg1[%c0_135, %c4_136, %c14_137] : memref<1x16x112xf32, #tpu.memory_space<vmem>>, vector<1x1x98xf32>
    %107 = vector.shape_cast %106 : vector<1x1x98xf32> to vector<1x98xf32>
    %c0_138 = arith.constant 0 : index
    %c5_139 = arith.constant 5 : index
    %c14_140 = arith.constant 14 : index
    %108 = vector.load %arg1[%c0_138, %c5_139, %c14_140] : memref<1x16x112xf32, #tpu.memory_space<vmem>>, vector<1x1x98xf32>
    %109 = vector.shape_cast %108 : vector<1x1x98xf32> to vector<1x98xf32>
    %110 = tpu.concatenate %61, %63, %65, %67, %69, %71, %73, %75, %77, %79, %81, %83, %85, %87, %89, %91 in 0 : vector<1x98xf32>, vector<1x98xf32>, vector<1x98xf32>, vector<1x98xf32>, vector<1x98xf32>, vector<1x98xf32>, vector<1x98xf32>, vector<1x98xf32>, vector<1x98xf32>, vector<1x98xf32>, vector<1x98xf32>, vector<1x98xf32>, vector<1x98xf32>, vector<1x98xf32>, vector<1x98xf32>, vector<1x98xf32> -> vector<16x98xf32>
    %111 = tpu.concatenate %93, %95, %97, %99, %101, %103, %105, %107, %109 in 0 : vector<1x98xf32>, vector<1x98xf32>, vector<1x98xf32>, vector<1x98xf32>, vector<1x98xf32>, vector<1x98xf32>, vector<1x98xf32>, vector<1x98xf32>, vector<1x98xf32> -> vector<9x98xf32>
    %112 = tpu.concatenate %110, %111 in 0 : vector<16x98xf32>, vector<9x98xf32> -> vector<25x98xf32>
    %cst_141 = arith.constant dense<0.000000e+00> : vector<6x98xf32>
    %113 = tpu.matmul %0, %112, %cst_141 {dimension_numbers = #tpu.dot_dimension_numbers<[1], [0], [0], [1], [0, 0, 1, 1], [], []>} : vector<6x25xf32>, vector<25x98xf32>, vector<6x98xf32> -> vector<6x98xf32>
    %114 = vector.broadcast %1 : vector<6x1xf32> to vector<6x98xf32>
    %115 = arith.addf %113, %114 : vector<6x98xf32>
    %cst_142 = arith.constant 0.000000e+00 : f32
    %116 = vector.broadcast %cst_142 : f32 to vector<6x98xf32>
    %117 = arith.maximumf %115, %116 : vector<6x98xf32>
    %c0_143 = arith.constant 0 : index
    %c2_144 = arith.constant 2 : index
    %c0_145 = arith.constant 0 : index
    %118 = vector.load %arg1[%c0_143, %c2_144, %c0_145] : memref<1x16x112xf32, #tpu.memory_space<vmem>>, vector<1x1x98xf32>
    %119 = vector.shape_cast %118 : vector<1x1x98xf32> to vector<1x98xf32>
    %c0_146 = arith.constant 0 : index
    %c3_147 = arith.constant 3 : index
    %c0_148 = arith.constant 0 : index
    %120 = vector.load %arg1[%c0_146, %c3_147, %c0_148] : memref<1x16x112xf32, #tpu.memory_space<vmem>>, vector<1x1x98xf32>
    %121 = vector.shape_cast %120 : vector<1x1x98xf32> to vector<1x98xf32>
    %c0_149 = arith.constant 0 : index
    %c4_150 = arith.constant 4 : index
    %c0_151 = arith.constant 0 : index
    %122 = vector.load %arg1[%c0_149, %c4_150, %c0_151] : memref<1x16x112xf32, #tpu.memory_space<vmem>>, vector<1x1x98xf32>
    %123 = vector.shape_cast %122 : vector<1x1x98xf32> to vector<1x98xf32>
    %c0_152 = arith.constant 0 : index
    %c5_153 = arith.constant 5 : index
    %c0_154 = arith.constant 0 : index
    %124 = vector.load %arg1[%c0_152, %c5_153, %c0_154] : memref<1x16x112xf32, #tpu.memory_space<vmem>>, vector<1x1x98xf32>
    %125 = vector.shape_cast %124 : vector<1x1x98xf32> to vector<1x98xf32>
    %c0_155 = arith.constant 0 : index
    %c6 = arith.constant 6 : index
    %c0_156 = arith.constant 0 : index
    %126 = vector.load %arg1[%c0_155, %c6, %c0_156] : memref<1x16x112xf32, #tpu.memory_space<vmem>>, vector<1x1x98xf32>
    %127 = vector.shape_cast %126 : vector<1x1x98xf32> to vector<1x98xf32>
    %c0_157 = arith.constant 0 : index
    %c10_158 = arith.constant 10 : index
    %c0_159 = arith.constant 0 : index
    %128 = vector.load %arg1[%c0_157, %c10_158, %c0_159] : memref<1x16x112xf32, #tpu.memory_space<vmem>>, vector<1x1x98xf32>
    %129 = vector.shape_cast %128 : vector<1x1x98xf32> to vector<1x98xf32>
    %c0_160 = arith.constant 0 : index
    %c11_161 = arith.constant 11 : index
    %c0_162 = arith.constant 0 : index
    %130 = vector.load %arg1[%c0_160, %c11_161, %c0_162] : memref<1x16x112xf32, #tpu.memory_space<vmem>>, vector<1x1x98xf32>
    %131 = vector.shape_cast %130 : vector<1x1x98xf32> to vector<1x98xf32>
    %c0_163 = arith.constant 0 : index
    %c12_164 = arith.constant 12 : index
    %c0_165 = arith.constant 0 : index
    %132 = vector.load %arg1[%c0_163, %c12_164, %c0_165] : memref<1x16x112xf32, #tpu.memory_space<vmem>>, vector<1x1x98xf32>
    %133 = vector.shape_cast %132 : vector<1x1x98xf32> to vector<1x98xf32>
    %c0_166 = arith.constant 0 : index
    %c13_167 = arith.constant 13 : index
    %c0_168 = arith.constant 0 : index
    %134 = vector.load %arg1[%c0_166, %c13_167, %c0_168] : memref<1x16x112xf32, #tpu.memory_space<vmem>>, vector<1x1x98xf32>
    %135 = vector.shape_cast %134 : vector<1x1x98xf32> to vector<1x98xf32>
    %c0_169 = arith.constant 0 : index
    %c14_170 = arith.constant 14 : index
    %c0_171 = arith.constant 0 : index
    %136 = vector.load %arg1[%c0_169, %c14_170, %c0_171] : memref<1x16x112xf32, #tpu.memory_space<vmem>>, vector<1x1x98xf32>
    %137 = vector.shape_cast %136 : vector<1x1x98xf32> to vector<1x98xf32>
    %c0_172 = arith.constant 0 : index
    %c2_173 = arith.constant 2 : index
    %c7_174 = arith.constant 7 : index
    %138 = vector.load %arg1[%c0_172, %c2_173, %c7_174] : memref<1x16x112xf32, #tpu.memory_space<vmem>>, vector<1x1x98xf32>
    %139 = vector.shape_cast %138 : vector<1x1x98xf32> to vector<1x98xf32>
    %c0_175 = arith.constant 0 : index
    %c3_176 = arith.constant 3 : index
    %c7_177 = arith.constant 7 : index
    %140 = vector.load %arg1[%c0_175, %c3_176, %c7_177] : memref<1x16x112xf32, #tpu.memory_space<vmem>>, vector<1x1x98xf32>
    %141 = vector.shape_cast %140 : vector<1x1x98xf32> to vector<1x98xf32>
    %c0_178 = arith.constant 0 : index
    %c4_179 = arith.constant 4 : index
    %c7_180 = arith.constant 7 : index
    %142 = vector.load %arg1[%c0_178, %c4_179, %c7_180] : memref<1x16x112xf32, #tpu.memory_space<vmem>>, vector<1x1x98xf32>
    %143 = vector.shape_cast %142 : vector<1x1x98xf32> to vector<1x98xf32>
    %c0_181 = arith.constant 0 : index
    %c5_182 = arith.constant 5 : index
    %c7_183 = arith.constant 7 : index
    %144 = vector.load %arg1[%c0_181, %c5_182, %c7_183] : memref<1x16x112xf32, #tpu.memory_space<vmem>>, vector<1x1x98xf32>
    %145 = vector.shape_cast %144 : vector<1x1x98xf32> to vector<1x98xf32>
    %c0_184 = arith.constant 0 : index
    %c6_185 = arith.constant 6 : index
    %c7_186 = arith.constant 7 : index
    %146 = vector.load %arg1[%c0_184, %c6_185, %c7_186] : memref<1x16x112xf32, #tpu.memory_space<vmem>>, vector<1x1x98xf32>
    %147 = vector.shape_cast %146 : vector<1x1x98xf32> to vector<1x98xf32>
    %c0_187 = arith.constant 0 : index
    %c10_188 = arith.constant 10 : index
    %c7_189 = arith.constant 7 : index
    %148 = vector.load %arg1[%c0_187, %c10_188, %c7_189] : memref<1x16x112xf32, #tpu.memory_space<vmem>>, vector<1x1x98xf32>
    %149 = vector.shape_cast %148 : vector<1x1x98xf32> to vector<1x98xf32>
    %c0_190 = arith.constant 0 : index
    %c11_191 = arith.constant 11 : index
    %c7_192 = arith.constant 7 : index
    %150 = vector.load %arg1[%c0_190, %c11_191, %c7_192] : memref<1x16x112xf32, #tpu.memory_space<vmem>>, vector<1x1x98xf32>
    %151 = vector.shape_cast %150 : vector<1x1x98xf32> to vector<1x98xf32>
    %c0_193 = arith.constant 0 : index
    %c12_194 = arith.constant 12 : index
    %c7_195 = arith.constant 7 : index
    %152 = vector.load %arg1[%c0_193, %c12_194, %c7_195] : memref<1x16x112xf32, #tpu.memory_space<vmem>>, vector<1x1x98xf32>
    %153 = vector.shape_cast %152 : vector<1x1x98xf32> to vector<1x98xf32>
    %c0_196 = arith.constant 0 : index
    %c13_197 = arith.constant 13 : index
    %c7_198 = arith.constant 7 : index
    %154 = vector.load %arg1[%c0_196, %c13_197, %c7_198] : memref<1x16x112xf32, #tpu.memory_space<vmem>>, vector<1x1x98xf32>
    %155 = vector.shape_cast %154 : vector<1x1x98xf32> to vector<1x98xf32>
    %c0_199 = arith.constant 0 : index
    %c14_200 = arith.constant 14 : index
    %c7_201 = arith.constant 7 : index
    %156 = vector.load %arg1[%c0_199, %c14_200, %c7_201] : memref<1x16x112xf32, #tpu.memory_space<vmem>>, vector<1x1x98xf32>
    %157 = vector.shape_cast %156 : vector<1x1x98xf32> to vector<1x98xf32>
    %c0_202 = arith.constant 0 : index
    %c2_203 = arith.constant 2 : index
    %c14_204 = arith.constant 14 : index
    %158 = vector.load %arg1[%c0_202, %c2_203, %c14_204] : memref<1x16x112xf32, #tpu.memory_space<vmem>>, vector<1x1x98xf32>
    %159 = vector.shape_cast %158 : vector<1x1x98xf32> to vector<1x98xf32>
    %c0_205 = arith.constant 0 : index
    %c3_206 = arith.constant 3 : index
    %c14_207 = arith.constant 14 : index
    %160 = vector.load %arg1[%c0_205, %c3_206, %c14_207] : memref<1x16x112xf32, #tpu.memory_space<vmem>>, vector<1x1x98xf32>
    %161 = vector.shape_cast %160 : vector<1x1x98xf32> to vector<1x98xf32>
    %c0_208 = arith.constant 0 : index
    %c4_209 = arith.constant 4 : index
    %c14_210 = arith.constant 14 : index
    %162 = vector.load %arg1[%c0_208, %c4_209, %c14_210] : memref<1x16x112xf32, #tpu.memory_space<vmem>>, vector<1x1x98xf32>
    %163 = vector.shape_cast %162 : vector<1x1x98xf32> to vector<1x98xf32>
    %c0_211 = arith.constant 0 : index
    %c5_212 = arith.constant 5 : index
    %c14_213 = arith.constant 14 : index
    %164 = vector.load %arg1[%c0_211, %c5_212, %c14_213] : memref<1x16x112xf32, #tpu.memory_space<vmem>>, vector<1x1x98xf32>
    %165 = vector.shape_cast %164 : vector<1x1x98xf32> to vector<1x98xf32>
    %c0_214 = arith.constant 0 : index
    %c6_215 = arith.constant 6 : index
    %c14_216 = arith.constant 14 : index
    %166 = vector.load %arg1[%c0_214, %c6_215, %c14_216] : memref<1x16x112xf32, #tpu.memory_space<vmem>>, vector<1x1x98xf32>
    %167 = vector.shape_cast %166 : vector<1x1x98xf32> to vector<1x98xf32>
    %168 = tpu.concatenate %119, %121, %123, %125, %127, %129, %131, %133, %135, %137, %139, %141, %143, %145, %147, %149 in 0 : vector<1x98xf32>, vector<1x98xf32>, vector<1x98xf32>, vector<1x98xf32>, vector<1x98xf32>, vector<1x98xf32>, vector<1x98xf32>, vector<1x98xf32>, vector<1x98xf32>, vector<1x98xf32>, vector<1x98xf32>, vector<1x98xf32>, vector<1x98xf32>, vector<1x98xf32>, vector<1x98xf32>, vector<1x98xf32> -> vector<16x98xf32>
    %169 = tpu.concatenate %151, %153, %155, %157, %159, %161, %163, %165, %167 in 0 : vector<1x98xf32>, vector<1x98xf32>, vector<1x98xf32>, vector<1x98xf32>, vector<1x98xf32>, vector<1x98xf32>, vector<1x98xf32>, vector<1x98xf32>, vector<1x98xf32> -> vector<9x98xf32>
    %170 = tpu.concatenate %168, %169 in 0 : vector<16x98xf32>, vector<9x98xf32> -> vector<25x98xf32>
    %cst_217 = arith.constant dense<0.000000e+00> : vector<6x98xf32>
    %171 = tpu.matmul %0, %170, %cst_217 {dimension_numbers = #tpu.dot_dimension_numbers<[1], [0], [0], [1], [0, 0, 1, 1], [], []>} : vector<6x25xf32>, vector<25x98xf32>, vector<6x98xf32> -> vector<6x98xf32>
    %172 = vector.broadcast %1 : vector<6x1xf32> to vector<6x98xf32>
    %173 = arith.addf %171, %172 : vector<6x98xf32>
    %cst_218 = arith.constant 0.000000e+00 : f32
    %174 = vector.broadcast %cst_218 : f32 to vector<6x98xf32>
    %175 = arith.maximumf %173, %174 : vector<6x98xf32>
    %c0_219 = arith.constant 0 : index
    %c3_220 = arith.constant 3 : index
    %c0_221 = arith.constant 0 : index
    %176 = vector.load %arg1[%c0_219, %c3_220, %c0_221] : memref<1x16x112xf32, #tpu.memory_space<vmem>>, vector<1x1x98xf32>
    %177 = vector.shape_cast %176 : vector<1x1x98xf32> to vector<1x98xf32>
    %c0_222 = arith.constant 0 : index
    %c4_223 = arith.constant 4 : index
    %c0_224 = arith.constant 0 : index
    %178 = vector.load %arg1[%c0_222, %c4_223, %c0_224] : memref<1x16x112xf32, #tpu.memory_space<vmem>>, vector<1x1x98xf32>
    %179 = vector.shape_cast %178 : vector<1x1x98xf32> to vector<1x98xf32>
    %c0_225 = arith.constant 0 : index
    %c5_226 = arith.constant 5 : index
    %c0_227 = arith.constant 0 : index
    %180 = vector.load %arg1[%c0_225, %c5_226, %c0_227] : memref<1x16x112xf32, #tpu.memory_space<vmem>>, vector<1x1x98xf32>
    %181 = vector.shape_cast %180 : vector<1x1x98xf32> to vector<1x98xf32>
    %c0_228 = arith.constant 0 : index
    %c6_229 = arith.constant 6 : index
    %c0_230 = arith.constant 0 : index
    %182 = vector.load %arg1[%c0_228, %c6_229, %c0_230] : memref<1x16x112xf32, #tpu.memory_space<vmem>>, vector<1x1x98xf32>
    %183 = vector.shape_cast %182 : vector<1x1x98xf32> to vector<1x98xf32>
    %c0_231 = arith.constant 0 : index
    %c7_232 = arith.constant 7 : index
    %c0_233 = arith.constant 0 : index
    %184 = vector.load %arg1[%c0_231, %c7_232, %c0_233] : memref<1x16x112xf32, #tpu.memory_space<vmem>>, vector<1x1x98xf32>
    %185 = vector.shape_cast %184 : vector<1x1x98xf32> to vector<1x98xf32>
    %c0_234 = arith.constant 0 : index
    %c11_235 = arith.constant 11 : index
    %c0_236 = arith.constant 0 : index
    %186 = vector.load %arg1[%c0_234, %c11_235, %c0_236] : memref<1x16x112xf32, #tpu.memory_space<vmem>>, vector<1x1x98xf32>
    %187 = vector.shape_cast %186 : vector<1x1x98xf32> to vector<1x98xf32>
    %c0_237 = arith.constant 0 : index
    %c12_238 = arith.constant 12 : index
    %c0_239 = arith.constant 0 : index
    %188 = vector.load %arg1[%c0_237, %c12_238, %c0_239] : memref<1x16x112xf32, #tpu.memory_space<vmem>>, vector<1x1x98xf32>
    %189 = vector.shape_cast %188 : vector<1x1x98xf32> to vector<1x98xf32>
    %c0_240 = arith.constant 0 : index
    %c13_241 = arith.constant 13 : index
    %c0_242 = arith.constant 0 : index
    %190 = vector.load %arg1[%c0_240, %c13_241, %c0_242] : memref<1x16x112xf32, #tpu.memory_space<vmem>>, vector<1x1x98xf32>
    %191 = vector.shape_cast %190 : vector<1x1x98xf32> to vector<1x98xf32>
    %c0_243 = arith.constant 0 : index
    %c14_244 = arith.constant 14 : index
    %c0_245 = arith.constant 0 : index
    %192 = vector.load %arg1[%c0_243, %c14_244, %c0_245] : memref<1x16x112xf32, #tpu.memory_space<vmem>>, vector<1x1x98xf32>
    %193 = vector.shape_cast %192 : vector<1x1x98xf32> to vector<1x98xf32>
    %c0_246 = arith.constant 0 : index
    %c15 = arith.constant 15 : index
    %c0_247 = arith.constant 0 : index
    %194 = vector.load %arg1[%c0_246, %c15, %c0_247] : memref<1x16x112xf32, #tpu.memory_space<vmem>>, vector<1x1x98xf32>
    %195 = vector.shape_cast %194 : vector<1x1x98xf32> to vector<1x98xf32>
    %c0_248 = arith.constant 0 : index
    %c3_249 = arith.constant 3 : index
    %c7_250 = arith.constant 7 : index
    %196 = vector.load %arg1[%c0_248, %c3_249, %c7_250] : memref<1x16x112xf32, #tpu.memory_space<vmem>>, vector<1x1x98xf32>
    %197 = vector.shape_cast %196 : vector<1x1x98xf32> to vector<1x98xf32>
    %c0_251 = arith.constant 0 : index
    %c4_252 = arith.constant 4 : index
    %c7_253 = arith.constant 7 : index
    %198 = vector.load %arg1[%c0_251, %c4_252, %c7_253] : memref<1x16x112xf32, #tpu.memory_space<vmem>>, vector<1x1x98xf32>
    %199 = vector.shape_cast %198 : vector<1x1x98xf32> to vector<1x98xf32>
    %c0_254 = arith.constant 0 : index
    %c5_255 = arith.constant 5 : index
    %c7_256 = arith.constant 7 : index
    %200 = vector.load %arg1[%c0_254, %c5_255, %c7_256] : memref<1x16x112xf32, #tpu.memory_space<vmem>>, vector<1x1x98xf32>
    %201 = vector.shape_cast %200 : vector<1x1x98xf32> to vector<1x98xf32>
    %c0_257 = arith.constant 0 : index
    %c6_258 = arith.constant 6 : index
    %c7_259 = arith.constant 7 : index
    %202 = vector.load %arg1[%c0_257, %c6_258, %c7_259] : memref<1x16x112xf32, #tpu.memory_space<vmem>>, vector<1x1x98xf32>
    %203 = vector.shape_cast %202 : vector<1x1x98xf32> to vector<1x98xf32>
    %c0_260 = arith.constant 0 : index
    %c7_261 = arith.constant 7 : index
    %c7_262 = arith.constant 7 : index
    %204 = vector.load %arg1[%c0_260, %c7_261, %c7_262] : memref<1x16x112xf32, #tpu.memory_space<vmem>>, vector<1x1x98xf32>
    %205 = vector.shape_cast %204 : vector<1x1x98xf32> to vector<1x98xf32>
    %c0_263 = arith.constant 0 : index
    %c11_264 = arith.constant 11 : index
    %c7_265 = arith.constant 7 : index
    %206 = vector.load %arg1[%c0_263, %c11_264, %c7_265] : memref<1x16x112xf32, #tpu.memory_space<vmem>>, vector<1x1x98xf32>
    %207 = vector.shape_cast %206 : vector<1x1x98xf32> to vector<1x98xf32>
    %c0_266 = arith.constant 0 : index
    %c12_267 = arith.constant 12 : index
    %c7_268 = arith.constant 7 : index
    %208 = vector.load %arg1[%c0_266, %c12_267, %c7_268] : memref<1x16x112xf32, #tpu.memory_space<vmem>>, vector<1x1x98xf32>
    %209 = vector.shape_cast %208 : vector<1x1x98xf32> to vector<1x98xf32>
    %c0_269 = arith.constant 0 : index
    %c13_270 = arith.constant 13 : index
    %c7_271 = arith.constant 7 : index
    %210 = vector.load %arg1[%c0_269, %c13_270, %c7_271] : memref<1x16x112xf32, #tpu.memory_space<vmem>>, vector<1x1x98xf32>
    %211 = vector.shape_cast %210 : vector<1x1x98xf32> to vector<1x98xf32>
    %c0_272 = arith.constant 0 : index
    %c14_273 = arith.constant 14 : index
    %c7_274 = arith.constant 7 : index
    %212 = vector.load %arg1[%c0_272, %c14_273, %c7_274] : memref<1x16x112xf32, #tpu.memory_space<vmem>>, vector<1x1x98xf32>
    %213 = vector.shape_cast %212 : vector<1x1x98xf32> to vector<1x98xf32>
    %c0_275 = arith.constant 0 : index
    %c15_276 = arith.constant 15 : index
    %c7_277 = arith.constant 7 : index
    %214 = vector.load %arg1[%c0_275, %c15_276, %c7_277] : memref<1x16x112xf32, #tpu.memory_space<vmem>>, vector<1x1x98xf32>
    %215 = vector.shape_cast %214 : vector<1x1x98xf32> to vector<1x98xf32>
    %c0_278 = arith.constant 0 : index
    %c3_279 = arith.constant 3 : index
    %c14_280 = arith.constant 14 : index
    %216 = vector.load %arg1[%c0_278, %c3_279, %c14_280] : memref<1x16x112xf32, #tpu.memory_space<vmem>>, vector<1x1x98xf32>
    %217 = vector.shape_cast %216 : vector<1x1x98xf32> to vector<1x98xf32>
    %c0_281 = arith.constant 0 : index
    %c4_282 = arith.constant 4 : index
    %c14_283 = arith.constant 14 : index
    %218 = vector.load %arg1[%c0_281, %c4_282, %c14_283] : memref<1x16x112xf32, #tpu.memory_space<vmem>>, vector<1x1x98xf32>
    %219 = vector.shape_cast %218 : vector<1x1x98xf32> to vector<1x98xf32>
    %c0_284 = arith.constant 0 : index
    %c5_285 = arith.constant 5 : index
    %c14_286 = arith.constant 14 : index
    %220 = vector.load %arg1[%c0_284, %c5_285, %c14_286] : memref<1x16x112xf32, #tpu.memory_space<vmem>>, vector<1x1x98xf32>
    %221 = vector.shape_cast %220 : vector<1x1x98xf32> to vector<1x98xf32>
    %c0_287 = arith.constant 0 : index
    %c6_288 = arith.constant 6 : index
    %c14_289 = arith.constant 14 : index
    %222 = vector.load %arg1[%c0_287, %c6_288, %c14_289] : memref<1x16x112xf32, #tpu.memory_space<vmem>>, vector<1x1x98xf32>
    %223 = vector.shape_cast %222 : vector<1x1x98xf32> to vector<1x98xf32>
    %c0_290 = arith.constant 0 : index
    %c7_291 = arith.constant 7 : index
    %c14_292 = arith.constant 14 : index
    %224 = vector.load %arg1[%c0_290, %c7_291, %c14_292] : memref<1x16x112xf32, #tpu.memory_space<vmem>>, vector<1x1x98xf32>
    %225 = vector.shape_cast %224 : vector<1x1x98xf32> to vector<1x98xf32>
    %226 = tpu.concatenate %177, %179, %181, %183, %185, %187, %189, %191, %193, %195, %197, %199, %201, %203, %205, %207 in 0 : vector<1x98xf32>, vector<1x98xf32>, vector<1x98xf32>, vector<1x98xf32>, vector<1x98xf32>, vector<1x98xf32>, vector<1x98xf32>, vector<1x98xf32>, vector<1x98xf32>, vector<1x98xf32>, vector<1x98xf32>, vector<1x98xf32>, vector<1x98xf32>, vector<1x98xf32>, vector<1x98xf32>, vector<1x98xf32> -> vector<16x98xf32>
    %227 = tpu.concatenate %209, %211, %213, %215, %217, %219, %221, %223, %225 in 0 : vector<1x98xf32>, vector<1x98xf32>, vector<1x98xf32>, vector<1x98xf32>, vector<1x98xf32>, vector<1x98xf32>, vector<1x98xf32>, vector<1x98xf32>, vector<1x98xf32> -> vector<9x98xf32>
    %228 = tpu.concatenate %226, %227 in 0 : vector<16x98xf32>, vector<9x98xf32> -> vector<25x98xf32>
    %cst_293 = arith.constant dense<0.000000e+00> : vector<6x98xf32>
    %229 = tpu.matmul %0, %228, %cst_293 {dimension_numbers = #tpu.dot_dimension_numbers<[1], [0], [0], [1], [0, 0, 1, 1], [], []>} : vector<6x25xf32>, vector<25x98xf32>, vector<6x98xf32> -> vector<6x98xf32>
    %230 = vector.broadcast %1 : vector<6x1xf32> to vector<6x98xf32>
    %231 = arith.addf %229, %230 : vector<6x98xf32>
    %cst_294 = arith.constant 0.000000e+00 : f32
    %232 = vector.broadcast %cst_294 : f32 to vector<6x98xf32>
    %233 = arith.maximumf %231, %232 : vector<6x98xf32>
    %c0_295 = arith.constant 0 : index
    %c8_296 = arith.constant 8 : index
    %c0_297 = arith.constant 0 : index
    %234 = vector.load %arg1[%c0_295, %c8_296, %c0_297] : memref<1x16x112xf32, #tpu.memory_space<vmem>>, vector<1x1x98xf32>
    %235 = vector.shape_cast %234 : vector<1x1x98xf32> to vector<1x98xf32>
    %c0_298 = arith.constant 0 : index
    %c9_299 = arith.constant 9 : index
    %c0_300 = arith.constant 0 : index
    %236 = vector.load %arg1[%c0_298, %c9_299, %c0_300] : memref<1x16x112xf32, #tpu.memory_space<vmem>>, vector<1x1x98xf32>
    %237 = vector.shape_cast %236 : vector<1x1x98xf32> to vector<1x98xf32>
    %c0_301 = arith.constant 0 : index
    %c10_302 = arith.constant 10 : index
    %c0_303 = arith.constant 0 : index
    %238 = vector.load %arg1[%c0_301, %c10_302, %c0_303] : memref<1x16x112xf32, #tpu.memory_space<vmem>>, vector<1x1x98xf32>
    %239 = vector.shape_cast %238 : vector<1x1x98xf32> to vector<1x98xf32>
    %c0_304 = arith.constant 0 : index
    %c11_305 = arith.constant 11 : index
    %c0_306 = arith.constant 0 : index
    %240 = vector.load %arg1[%c0_304, %c11_305, %c0_306] : memref<1x16x112xf32, #tpu.memory_space<vmem>>, vector<1x1x98xf32>
    %241 = vector.shape_cast %240 : vector<1x1x98xf32> to vector<1x98xf32>
    %c0_307 = arith.constant 0 : index
    %c12_308 = arith.constant 12 : index
    %c0_309 = arith.constant 0 : index
    %242 = vector.load %arg1[%c0_307, %c12_308, %c0_309] : memref<1x16x112xf32, #tpu.memory_space<vmem>>, vector<1x1x98xf32>
    %243 = vector.shape_cast %242 : vector<1x1x98xf32> to vector<1x98xf32>
    %c0_310 = arith.constant 0 : index
    %c0_311 = arith.constant 0 : index
    %c7_312 = arith.constant 7 : index
    %244 = vector.load %arg1[%c0_310, %c0_311, %c7_312] : memref<1x16x112xf32, #tpu.memory_space<vmem>>, vector<1x1x98xf32>
    %245 = vector.shape_cast %244 : vector<1x1x98xf32> to vector<1x98xf32>
    %c0_313 = arith.constant 0 : index
    %c1_314 = arith.constant 1 : index
    %c7_315 = arith.constant 7 : index
    %246 = vector.load %arg1[%c0_313, %c1_314, %c7_315] : memref<1x16x112xf32, #tpu.memory_space<vmem>>, vector<1x1x98xf32>
    %247 = vector.shape_cast %246 : vector<1x1x98xf32> to vector<1x98xf32>
    %c0_316 = arith.constant 0 : index
    %c2_317 = arith.constant 2 : index
    %c7_318 = arith.constant 7 : index
    %248 = vector.load %arg1[%c0_316, %c2_317, %c7_318] : memref<1x16x112xf32, #tpu.memory_space<vmem>>, vector<1x1x98xf32>
    %249 = vector.shape_cast %248 : vector<1x1x98xf32> to vector<1x98xf32>
    %c0_319 = arith.constant 0 : index
    %c3_320 = arith.constant 3 : index
    %c7_321 = arith.constant 7 : index
    %250 = vector.load %arg1[%c0_319, %c3_320, %c7_321] : memref<1x16x112xf32, #tpu.memory_space<vmem>>, vector<1x1x98xf32>
    %251 = vector.shape_cast %250 : vector<1x1x98xf32> to vector<1x98xf32>
    %c0_322 = arith.constant 0 : index
    %c4_323 = arith.constant 4 : index
    %c7_324 = arith.constant 7 : index
    %252 = vector.load %arg1[%c0_322, %c4_323, %c7_324] : memref<1x16x112xf32, #tpu.memory_space<vmem>>, vector<1x1x98xf32>
    %253 = vector.shape_cast %252 : vector<1x1x98xf32> to vector<1x98xf32>
    %c0_325 = arith.constant 0 : index
    %c8_326 = arith.constant 8 : index
    %c7_327 = arith.constant 7 : index
    %254 = vector.load %arg1[%c0_325, %c8_326, %c7_327] : memref<1x16x112xf32, #tpu.memory_space<vmem>>, vector<1x1x98xf32>
    %255 = vector.shape_cast %254 : vector<1x1x98xf32> to vector<1x98xf32>
    %c0_328 = arith.constant 0 : index
    %c9_329 = arith.constant 9 : index
    %c7_330 = arith.constant 7 : index
    %256 = vector.load %arg1[%c0_328, %c9_329, %c7_330] : memref<1x16x112xf32, #tpu.memory_space<vmem>>, vector<1x1x98xf32>
    %257 = vector.shape_cast %256 : vector<1x1x98xf32> to vector<1x98xf32>
    %c0_331 = arith.constant 0 : index
    %c10_332 = arith.constant 10 : index
    %c7_333 = arith.constant 7 : index
    %258 = vector.load %arg1[%c0_331, %c10_332, %c7_333] : memref<1x16x112xf32, #tpu.memory_space<vmem>>, vector<1x1x98xf32>
    %259 = vector.shape_cast %258 : vector<1x1x98xf32> to vector<1x98xf32>
    %c0_334 = arith.constant 0 : index
    %c11_335 = arith.constant 11 : index
    %c7_336 = arith.constant 7 : index
    %260 = vector.load %arg1[%c0_334, %c11_335, %c7_336] : memref<1x16x112xf32, #tpu.memory_space<vmem>>, vector<1x1x98xf32>
    %261 = vector.shape_cast %260 : vector<1x1x98xf32> to vector<1x98xf32>
    %c0_337 = arith.constant 0 : index
    %c12_338 = arith.constant 12 : index
    %c7_339 = arith.constant 7 : index
    %262 = vector.load %arg1[%c0_337, %c12_338, %c7_339] : memref<1x16x112xf32, #tpu.memory_space<vmem>>, vector<1x1x98xf32>
    %263 = vector.shape_cast %262 : vector<1x1x98xf32> to vector<1x98xf32>
    %c0_340 = arith.constant 0 : index
    %c0_341 = arith.constant 0 : index
    %c14_342 = arith.constant 14 : index
    %264 = vector.load %arg1[%c0_340, %c0_341, %c14_342] : memref<1x16x112xf32, #tpu.memory_space<vmem>>, vector<1x1x98xf32>
    %265 = vector.shape_cast %264 : vector<1x1x98xf32> to vector<1x98xf32>
    %c0_343 = arith.constant 0 : index
    %c1_344 = arith.constant 1 : index
    %c14_345 = arith.constant 14 : index
    %266 = vector.load %arg1[%c0_343, %c1_344, %c14_345] : memref<1x16x112xf32, #tpu.memory_space<vmem>>, vector<1x1x98xf32>
    %267 = vector.shape_cast %266 : vector<1x1x98xf32> to vector<1x98xf32>
    %c0_346 = arith.constant 0 : index
    %c2_347 = arith.constant 2 : index
    %c14_348 = arith.constant 14 : index
    %268 = vector.load %arg1[%c0_346, %c2_347, %c14_348] : memref<1x16x112xf32, #tpu.memory_space<vmem>>, vector<1x1x98xf32>
    %269 = vector.shape_cast %268 : vector<1x1x98xf32> to vector<1x98xf32>
    %c0_349 = arith.constant 0 : index
    %c3_350 = arith.constant 3 : index
    %c14_351 = arith.constant 14 : index
    %270 = vector.load %arg1[%c0_349, %c3_350, %c14_351] : memref<1x16x112xf32, #tpu.memory_space<vmem>>, vector<1x1x98xf32>
    %271 = vector.shape_cast %270 : vector<1x1x98xf32> to vector<1x98xf32>
    %c0_352 = arith.constant 0 : index
    %c4_353 = arith.constant 4 : index
    %c14_354 = arith.constant 14 : index
    %272 = vector.load %arg1[%c0_352, %c4_353, %c14_354] : memref<1x16x112xf32, #tpu.memory_space<vmem>>, vector<1x1x98xf32>
    %273 = vector.shape_cast %272 : vector<1x1x98xf32> to vector<1x98xf32>
    %c0_355 = arith.constant 0 : index
    %c8_356 = arith.constant 8 : index
    %c14_357 = arith.constant 14 : index
    %274 = vector.load %arg1[%c0_355, %c8_356, %c14_357] : memref<1x16x112xf32, #tpu.memory_space<vmem>>, vector<1x1x98xf32>
    %275 = vector.shape_cast %274 : vector<1x1x98xf32> to vector<1x98xf32>
    %c0_358 = arith.constant 0 : index
    %c9_359 = arith.constant 9 : index
    %c14_360 = arith.constant 14 : index
    %276 = vector.load %arg1[%c0_358, %c9_359, %c14_360] : memref<1x16x112xf32, #tpu.memory_space<vmem>>, vector<1x1x98xf32>
    %277 = vector.shape_cast %276 : vector<1x1x98xf32> to vector<1x98xf32>
    %c0_361 = arith.constant 0 : index
    %c10_362 = arith.constant 10 : index
    %c14_363 = arith.constant 14 : index
    %278 = vector.load %arg1[%c0_361, %c10_362, %c14_363] : memref<1x16x112xf32, #tpu.memory_space<vmem>>, vector<1x1x98xf32>
    %279 = vector.shape_cast %278 : vector<1x1x98xf32> to vector<1x98xf32>
    %c0_364 = arith.constant 0 : index
    %c11_365 = arith.constant 11 : index
    %c14_366 = arith.constant 14 : index
    %280 = vector.load %arg1[%c0_364, %c11_365, %c14_366] : memref<1x16x112xf32, #tpu.memory_space<vmem>>, vector<1x1x98xf32>
    %281 = vector.shape_cast %280 : vector<1x1x98xf32> to vector<1x98xf32>
    %c0_367 = arith.constant 0 : index
    %c12_368 = arith.constant 12 : index
    %c14_369 = arith.constant 14 : index
    %282 = vector.load %arg1[%c0_367, %c12_368, %c14_369] : memref<1x16x112xf32, #tpu.memory_space<vmem>>, vector<1x1x98xf32>
    %283 = vector.shape_cast %282 : vector<1x1x98xf32> to vector<1x98xf32>
    %284 = tpu.concatenate %235, %237, %239, %241, %243, %245, %247, %249, %251, %253, %255, %257, %259, %261, %263, %265 in 0 : vector<1x98xf32>, vector<1x98xf32>, vector<1x98xf32>, vector<1x98xf32>, vector<1x98xf32>, vector<1x98xf32>, vector<1x98xf32>, vector<1x98xf32>, vector<1x98xf32>, vector<1x98xf32>, vector<1x98xf32>, vector<1x98xf32>, vector<1x98xf32>, vector<1x98xf32>, vector<1x98xf32>, vector<1x98xf32> -> vector<16x98xf32>
    %285 = tpu.concatenate %267, %269, %271, %273, %275, %277, %279, %281, %283 in 0 : vector<1x98xf32>, vector<1x98xf32>, vector<1x98xf32>, vector<1x98xf32>, vector<1x98xf32>, vector<1x98xf32>, vector<1x98xf32>, vector<1x98xf32>, vector<1x98xf32> -> vector<9x98xf32>
    %286 = tpu.concatenate %284, %285 in 0 : vector<16x98xf32>, vector<9x98xf32> -> vector<25x98xf32>
    %cst_370 = arith.constant dense<0.000000e+00> : vector<6x98xf32>
    %287 = tpu.matmul %0, %286, %cst_370 {dimension_numbers = #tpu.dot_dimension_numbers<[1], [0], [0], [1], [0, 0, 1, 1], [], []>} : vector<6x25xf32>, vector<25x98xf32>, vector<6x98xf32> -> vector<6x98xf32>
    %288 = vector.broadcast %1 : vector<6x1xf32> to vector<6x98xf32>
    %289 = arith.addf %287, %288 : vector<6x98xf32>
    %cst_371 = arith.constant 0.000000e+00 : f32
    %290 = vector.broadcast %cst_371 : f32 to vector<6x98xf32>
    %291 = arith.maximumf %289, %290 : vector<6x98xf32>
    %c0_372 = arith.constant 0 : index
    %c9_373 = arith.constant 9 : index
    %c0_374 = arith.constant 0 : index
    %292 = vector.load %arg1[%c0_372, %c9_373, %c0_374] : memref<1x16x112xf32, #tpu.memory_space<vmem>>, vector<1x1x98xf32>
    %293 = vector.shape_cast %292 : vector<1x1x98xf32> to vector<1x98xf32>
    %c0_375 = arith.constant 0 : index
    %c10_376 = arith.constant 10 : index
    %c0_377 = arith.constant 0 : index
    %294 = vector.load %arg1[%c0_375, %c10_376, %c0_377] : memref<1x16x112xf32, #tpu.memory_space<vmem>>, vector<1x1x98xf32>
    %295 = vector.shape_cast %294 : vector<1x1x98xf32> to vector<1x98xf32>
    %c0_378 = arith.constant 0 : index
    %c11_379 = arith.constant 11 : index
    %c0_380 = arith.constant 0 : index
    %296 = vector.load %arg1[%c0_378, %c11_379, %c0_380] : memref<1x16x112xf32, #tpu.memory_space<vmem>>, vector<1x1x98xf32>
    %297 = vector.shape_cast %296 : vector<1x1x98xf32> to vector<1x98xf32>
    %c0_381 = arith.constant 0 : index
    %c12_382 = arith.constant 12 : index
    %c0_383 = arith.constant 0 : index
    %298 = vector.load %arg1[%c0_381, %c12_382, %c0_383] : memref<1x16x112xf32, #tpu.memory_space<vmem>>, vector<1x1x98xf32>
    %299 = vector.shape_cast %298 : vector<1x1x98xf32> to vector<1x98xf32>
    %c0_384 = arith.constant 0 : index
    %c13_385 = arith.constant 13 : index
    %c0_386 = arith.constant 0 : index
    %300 = vector.load %arg1[%c0_384, %c13_385, %c0_386] : memref<1x16x112xf32, #tpu.memory_space<vmem>>, vector<1x1x98xf32>
    %301 = vector.shape_cast %300 : vector<1x1x98xf32> to vector<1x98xf32>
    %c0_387 = arith.constant 0 : index
    %c1_388 = arith.constant 1 : index
    %c7_389 = arith.constant 7 : index
    %302 = vector.load %arg1[%c0_387, %c1_388, %c7_389] : memref<1x16x112xf32, #tpu.memory_space<vmem>>, vector<1x1x98xf32>
    %303 = vector.shape_cast %302 : vector<1x1x98xf32> to vector<1x98xf32>
    %c0_390 = arith.constant 0 : index
    %c2_391 = arith.constant 2 : index
    %c7_392 = arith.constant 7 : index
    %304 = vector.load %arg1[%c0_390, %c2_391, %c7_392] : memref<1x16x112xf32, #tpu.memory_space<vmem>>, vector<1x1x98xf32>
    %305 = vector.shape_cast %304 : vector<1x1x98xf32> to vector<1x98xf32>
    %c0_393 = arith.constant 0 : index
    %c3_394 = arith.constant 3 : index
    %c7_395 = arith.constant 7 : index
    %306 = vector.load %arg1[%c0_393, %c3_394, %c7_395] : memref<1x16x112xf32, #tpu.memory_space<vmem>>, vector<1x1x98xf32>
    %307 = vector.shape_cast %306 : vector<1x1x98xf32> to vector<1x98xf32>
    %c0_396 = arith.constant 0 : index
    %c4_397 = arith.constant 4 : index
    %c7_398 = arith.constant 7 : index
    %308 = vector.load %arg1[%c0_396, %c4_397, %c7_398] : memref<1x16x112xf32, #tpu.memory_space<vmem>>, vector<1x1x98xf32>
    %309 = vector.shape_cast %308 : vector<1x1x98xf32> to vector<1x98xf32>
    %c0_399 = arith.constant 0 : index
    %c5_400 = arith.constant 5 : index
    %c7_401 = arith.constant 7 : index
    %310 = vector.load %arg1[%c0_399, %c5_400, %c7_401] : memref<1x16x112xf32, #tpu.memory_space<vmem>>, vector<1x1x98xf32>
    %311 = vector.shape_cast %310 : vector<1x1x98xf32> to vector<1x98xf32>
    %c0_402 = arith.constant 0 : index
    %c9_403 = arith.constant 9 : index
    %c7_404 = arith.constant 7 : index
    %312 = vector.load %arg1[%c0_402, %c9_403, %c7_404] : memref<1x16x112xf32, #tpu.memory_space<vmem>>, vector<1x1x98xf32>
    %313 = vector.shape_cast %312 : vector<1x1x98xf32> to vector<1x98xf32>
    %c0_405 = arith.constant 0 : index
    %c10_406 = arith.constant 10 : index
    %c7_407 = arith.constant 7 : index
    %314 = vector.load %arg1[%c0_405, %c10_406, %c7_407] : memref<1x16x112xf32, #tpu.memory_space<vmem>>, vector<1x1x98xf32>
    %315 = vector.shape_cast %314 : vector<1x1x98xf32> to vector<1x98xf32>
    %c0_408 = arith.constant 0 : index
    %c11_409 = arith.constant 11 : index
    %c7_410 = arith.constant 7 : index
    %316 = vector.load %arg1[%c0_408, %c11_409, %c7_410] : memref<1x16x112xf32, #tpu.memory_space<vmem>>, vector<1x1x98xf32>
    %317 = vector.shape_cast %316 : vector<1x1x98xf32> to vector<1x98xf32>
    %c0_411 = arith.constant 0 : index
    %c12_412 = arith.constant 12 : index
    %c7_413 = arith.constant 7 : index
    %318 = vector.load %arg1[%c0_411, %c12_412, %c7_413] : memref<1x16x112xf32, #tpu.memory_space<vmem>>, vector<1x1x98xf32>
    %319 = vector.shape_cast %318 : vector<1x1x98xf32> to vector<1x98xf32>
    %c0_414 = arith.constant 0 : index
    %c13_415 = arith.constant 13 : index
    %c7_416 = arith.constant 7 : index
    %320 = vector.load %arg1[%c0_414, %c13_415, %c7_416] : memref<1x16x112xf32, #tpu.memory_space<vmem>>, vector<1x1x98xf32>
    %321 = vector.shape_cast %320 : vector<1x1x98xf32> to vector<1x98xf32>
    %c0_417 = arith.constant 0 : index
    %c1_418 = arith.constant 1 : index
    %c14_419 = arith.constant 14 : index
    %322 = vector.load %arg1[%c0_417, %c1_418, %c14_419] : memref<1x16x112xf32, #tpu.memory_space<vmem>>, vector<1x1x98xf32>
    %323 = vector.shape_cast %322 : vector<1x1x98xf32> to vector<1x98xf32>
    %c0_420 = arith.constant 0 : index
    %c2_421 = arith.constant 2 : index
    %c14_422 = arith.constant 14 : index
    %324 = vector.load %arg1[%c0_420, %c2_421, %c14_422] : memref<1x16x112xf32, #tpu.memory_space<vmem>>, vector<1x1x98xf32>
    %325 = vector.shape_cast %324 : vector<1x1x98xf32> to vector<1x98xf32>
    %c0_423 = arith.constant 0 : index
    %c3_424 = arith.constant 3 : index
    %c14_425 = arith.constant 14 : index
    %326 = vector.load %arg1[%c0_423, %c3_424, %c14_425] : memref<1x16x112xf32, #tpu.memory_space<vmem>>, vector<1x1x98xf32>
    %327 = vector.shape_cast %326 : vector<1x1x98xf32> to vector<1x98xf32>
    %c0_426 = arith.constant 0 : index
    %c4_427 = arith.constant 4 : index
    %c14_428 = arith.constant 14 : index
    %328 = vector.load %arg1[%c0_426, %c4_427, %c14_428] : memref<1x16x112xf32, #tpu.memory_space<vmem>>, vector<1x1x98xf32>
    %329 = vector.shape_cast %328 : vector<1x1x98xf32> to vector<1x98xf32>
    %c0_429 = arith.constant 0 : index
    %c5_430 = arith.constant 5 : index
    %c14_431 = arith.constant 14 : index
    %330 = vector.load %arg1[%c0_429, %c5_430, %c14_431] : memref<1x16x112xf32, #tpu.memory_space<vmem>>, vector<1x1x98xf32>
    %331 = vector.shape_cast %330 : vector<1x1x98xf32> to vector<1x98xf32>
    %c0_432 = arith.constant 0 : index
    %c9_433 = arith.constant 9 : index
    %c14_434 = arith.constant 14 : index
    %332 = vector.load %arg1[%c0_432, %c9_433, %c14_434] : memref<1x16x112xf32, #tpu.memory_space<vmem>>, vector<1x1x98xf32>
    %333 = vector.shape_cast %332 : vector<1x1x98xf32> to vector<1x98xf32>
    %c0_435 = arith.constant 0 : index
    %c10_436 = arith.constant 10 : index
    %c14_437 = arith.constant 14 : index
    %334 = vector.load %arg1[%c0_435, %c10_436, %c14_437] : memref<1x16x112xf32, #tpu.memory_space<vmem>>, vector<1x1x98xf32>
    %335 = vector.shape_cast %334 : vector<1x1x98xf32> to vector<1x98xf32>
    %c0_438 = arith.constant 0 : index
    %c11_439 = arith.constant 11 : index
    %c14_440 = arith.constant 14 : index
    %336 = vector.load %arg1[%c0_438, %c11_439, %c14_440] : memref<1x16x112xf32, #tpu.memory_space<vmem>>, vector<1x1x98xf32>
    %337 = vector.shape_cast %336 : vector<1x1x98xf32> to vector<1x98xf32>
    %c0_441 = arith.constant 0 : index
    %c12_442 = arith.constant 12 : index
    %c14_443 = arith.constant 14 : index
    %338 = vector.load %arg1[%c0_441, %c12_442, %c14_443] : memref<1x16x112xf32, #tpu.memory_space<vmem>>, vector<1x1x98xf32>
    %339 = vector.shape_cast %338 : vector<1x1x98xf32> to vector<1x98xf32>
    %c0_444 = arith.constant 0 : index
    %c13_445 = arith.constant 13 : index
    %c14_446 = arith.constant 14 : index
    %340 = vector.load %arg1[%c0_444, %c13_445, %c14_446] : memref<1x16x112xf32, #tpu.memory_space<vmem>>, vector<1x1x98xf32>
    %341 = vector.shape_cast %340 : vector<1x1x98xf32> to vector<1x98xf32>
    %342 = tpu.concatenate %293, %295, %297, %299, %301, %303, %305, %307, %309, %311, %313, %315, %317, %319, %321, %323 in 0 : vector<1x98xf32>, vector<1x98xf32>, vector<1x98xf32>, vector<1x98xf32>, vector<1x98xf32>, vector<1x98xf32>, vector<1x98xf32>, vector<1x98xf32>, vector<1x98xf32>, vector<1x98xf32>, vector<1x98xf32>, vector<1x98xf32>, vector<1x98xf32>, vector<1x98xf32>, vector<1x98xf32>, vector<1x98xf32> -> vector<16x98xf32>
    %343 = tpu.concatenate %325, %327, %329, %331, %333, %335, %337, %339, %341 in 0 : vector<1x98xf32>, vector<1x98xf32>, vector<1x98xf32>, vector<1x98xf32>, vector<1x98xf32>, vector<1x98xf32>, vector<1x98xf32>, vector<1x98xf32>, vector<1x98xf32> -> vector<9x98xf32>
    %344 = tpu.concatenate %342, %343 in 0 : vector<16x98xf32>, vector<9x98xf32> -> vector<25x98xf32>
    %cst_447 = arith.constant dense<0.000000e+00> : vector<6x98xf32>
    %345 = tpu.matmul %0, %344, %cst_447 {dimension_numbers = #tpu.dot_dimension_numbers<[1], [0], [0], [1], [0, 0, 1, 1], [], []>} : vector<6x25xf32>, vector<25x98xf32>, vector<6x98xf32> -> vector<6x98xf32>
    %346 = vector.broadcast %1 : vector<6x1xf32> to vector<6x98xf32>
    %347 = arith.addf %345, %346 : vector<6x98xf32>
    %cst_448 = arith.constant 0.000000e+00 : f32
    %348 = vector.broadcast %cst_448 : f32 to vector<6x98xf32>
    %349 = arith.maximumf %347, %348 : vector<6x98xf32>
    %c0_449 = arith.constant 0 : index
    %c10_450 = arith.constant 10 : index
    %c0_451 = arith.constant 0 : index
    %350 = vector.load %arg1[%c0_449, %c10_450, %c0_451] : memref<1x16x112xf32, #tpu.memory_space<vmem>>, vector<1x1x98xf32>
    %351 = vector.shape_cast %350 : vector<1x1x98xf32> to vector<1x98xf32>
    %c0_452 = arith.constant 0 : index
    %c11_453 = arith.constant 11 : index
    %c0_454 = arith.constant 0 : index
    %352 = vector.load %arg1[%c0_452, %c11_453, %c0_454] : memref<1x16x112xf32, #tpu.memory_space<vmem>>, vector<1x1x98xf32>
    %353 = vector.shape_cast %352 : vector<1x1x98xf32> to vector<1x98xf32>
    %c0_455 = arith.constant 0 : index
    %c12_456 = arith.constant 12 : index
    %c0_457 = arith.constant 0 : index
    %354 = vector.load %arg1[%c0_455, %c12_456, %c0_457] : memref<1x16x112xf32, #tpu.memory_space<vmem>>, vector<1x1x98xf32>
    %355 = vector.shape_cast %354 : vector<1x1x98xf32> to vector<1x98xf32>
    %c0_458 = arith.constant 0 : index
    %c13_459 = arith.constant 13 : index
    %c0_460 = arith.constant 0 : index
    %356 = vector.load %arg1[%c0_458, %c13_459, %c0_460] : memref<1x16x112xf32, #tpu.memory_space<vmem>>, vector<1x1x98xf32>
    %357 = vector.shape_cast %356 : vector<1x1x98xf32> to vector<1x98xf32>
    %c0_461 = arith.constant 0 : index
    %c14_462 = arith.constant 14 : index
    %c0_463 = arith.constant 0 : index
    %358 = vector.load %arg1[%c0_461, %c14_462, %c0_463] : memref<1x16x112xf32, #tpu.memory_space<vmem>>, vector<1x1x98xf32>
    %359 = vector.shape_cast %358 : vector<1x1x98xf32> to vector<1x98xf32>
    %c0_464 = arith.constant 0 : index
    %c2_465 = arith.constant 2 : index
    %c7_466 = arith.constant 7 : index
    %360 = vector.load %arg1[%c0_464, %c2_465, %c7_466] : memref<1x16x112xf32, #tpu.memory_space<vmem>>, vector<1x1x98xf32>
    %361 = vector.shape_cast %360 : vector<1x1x98xf32> to vector<1x98xf32>
    %c0_467 = arith.constant 0 : index
    %c3_468 = arith.constant 3 : index
    %c7_469 = arith.constant 7 : index
    %362 = vector.load %arg1[%c0_467, %c3_468, %c7_469] : memref<1x16x112xf32, #tpu.memory_space<vmem>>, vector<1x1x98xf32>
    %363 = vector.shape_cast %362 : vector<1x1x98xf32> to vector<1x98xf32>
    %c0_470 = arith.constant 0 : index
    %c4_471 = arith.constant 4 : index
    %c7_472 = arith.constant 7 : index
    %364 = vector.load %arg1[%c0_470, %c4_471, %c7_472] : memref<1x16x112xf32, #tpu.memory_space<vmem>>, vector<1x1x98xf32>
    %365 = vector.shape_cast %364 : vector<1x1x98xf32> to vector<1x98xf32>
    %c0_473 = arith.constant 0 : index
    %c5_474 = arith.constant 5 : index
    %c7_475 = arith.constant 7 : index
    %366 = vector.load %arg1[%c0_473, %c5_474, %c7_475] : memref<1x16x112xf32, #tpu.memory_space<vmem>>, vector<1x1x98xf32>
    %367 = vector.shape_cast %366 : vector<1x1x98xf32> to vector<1x98xf32>
    %c0_476 = arith.constant 0 : index
    %c6_477 = arith.constant 6 : index
    %c7_478 = arith.constant 7 : index
    %368 = vector.load %arg1[%c0_476, %c6_477, %c7_478] : memref<1x16x112xf32, #tpu.memory_space<vmem>>, vector<1x1x98xf32>
    %369 = vector.shape_cast %368 : vector<1x1x98xf32> to vector<1x98xf32>
    %c0_479 = arith.constant 0 : index
    %c10_480 = arith.constant 10 : index
    %c7_481 = arith.constant 7 : index
    %370 = vector.load %arg1[%c0_479, %c10_480, %c7_481] : memref<1x16x112xf32, #tpu.memory_space<vmem>>, vector<1x1x98xf32>
    %371 = vector.shape_cast %370 : vector<1x1x98xf32> to vector<1x98xf32>
    %c0_482 = arith.constant 0 : index
    %c11_483 = arith.constant 11 : index
    %c7_484 = arith.constant 7 : index
    %372 = vector.load %arg1[%c0_482, %c11_483, %c7_484] : memref<1x16x112xf32, #tpu.memory_space<vmem>>, vector<1x1x98xf32>
    %373 = vector.shape_cast %372 : vector<1x1x98xf32> to vector<1x98xf32>
    %c0_485 = arith.constant 0 : index
    %c12_486 = arith.constant 12 : index
    %c7_487 = arith.constant 7 : index
    %374 = vector.load %arg1[%c0_485, %c12_486, %c7_487] : memref<1x16x112xf32, #tpu.memory_space<vmem>>, vector<1x1x98xf32>
    %375 = vector.shape_cast %374 : vector<1x1x98xf32> to vector<1x98xf32>
    %c0_488 = arith.constant 0 : index
    %c13_489 = arith.constant 13 : index
    %c7_490 = arith.constant 7 : index
    %376 = vector.load %arg1[%c0_488, %c13_489, %c7_490] : memref<1x16x112xf32, #tpu.memory_space<vmem>>, vector<1x1x98xf32>
    %377 = vector.shape_cast %376 : vector<1x1x98xf32> to vector<1x98xf32>
    %c0_491 = arith.constant 0 : index
    %c14_492 = arith.constant 14 : index
    %c7_493 = arith.constant 7 : index
    %378 = vector.load %arg1[%c0_491, %c14_492, %c7_493] : memref<1x16x112xf32, #tpu.memory_space<vmem>>, vector<1x1x98xf32>
    %379 = vector.shape_cast %378 : vector<1x1x98xf32> to vector<1x98xf32>
    %c0_494 = arith.constant 0 : index
    %c2_495 = arith.constant 2 : index
    %c14_496 = arith.constant 14 : index
    %380 = vector.load %arg1[%c0_494, %c2_495, %c14_496] : memref<1x16x112xf32, #tpu.memory_space<vmem>>, vector<1x1x98xf32>
    %381 = vector.shape_cast %380 : vector<1x1x98xf32> to vector<1x98xf32>
    %c0_497 = arith.constant 0 : index
    %c3_498 = arith.constant 3 : index
    %c14_499 = arith.constant 14 : index
    %382 = vector.load %arg1[%c0_497, %c3_498, %c14_499] : memref<1x16x112xf32, #tpu.memory_space<vmem>>, vector<1x1x98xf32>
    %383 = vector.shape_cast %382 : vector<1x1x98xf32> to vector<1x98xf32>
    %c0_500 = arith.constant 0 : index
    %c4_501 = arith.constant 4 : index
    %c14_502 = arith.constant 14 : index
    %384 = vector.load %arg1[%c0_500, %c4_501, %c14_502] : memref<1x16x112xf32, #tpu.memory_space<vmem>>, vector<1x1x98xf32>
    %385 = vector.shape_cast %384 : vector<1x1x98xf32> to vector<1x98xf32>
    %c0_503 = arith.constant 0 : index
    %c5_504 = arith.constant 5 : index
    %c14_505 = arith.constant 14 : index
    %386 = vector.load %arg1[%c0_503, %c5_504, %c14_505] : memref<1x16x112xf32, #tpu.memory_space<vmem>>, vector<1x1x98xf32>
    %387 = vector.shape_cast %386 : vector<1x1x98xf32> to vector<1x98xf32>
    %c0_506 = arith.constant 0 : index
    %c6_507 = arith.constant 6 : index
    %c14_508 = arith.constant 14 : index
    %388 = vector.load %arg1[%c0_506, %c6_507, %c14_508] : memref<1x16x112xf32, #tpu.memory_space<vmem>>, vector<1x1x98xf32>
    %389 = vector.shape_cast %388 : vector<1x1x98xf32> to vector<1x98xf32>
    %c0_509 = arith.constant 0 : index
    %c10_510 = arith.constant 10 : index
    %c14_511 = arith.constant 14 : index
    %390 = vector.load %arg1[%c0_509, %c10_510, %c14_511] : memref<1x16x112xf32, #tpu.memory_space<vmem>>, vector<1x1x98xf32>
    %391 = vector.shape_cast %390 : vector<1x1x98xf32> to vector<1x98xf32>
    %c0_512 = arith.constant 0 : index
    %c11_513 = arith.constant 11 : index
    %c14_514 = arith.constant 14 : index
    %392 = vector.load %arg1[%c0_512, %c11_513, %c14_514] : memref<1x16x112xf32, #tpu.memory_space<vmem>>, vector<1x1x98xf32>
    %393 = vector.shape_cast %392 : vector<1x1x98xf32> to vector<1x98xf32>
    %c0_515 = arith.constant 0 : index
    %c12_516 = arith.constant 12 : index
    %c14_517 = arith.constant 14 : index
    %394 = vector.load %arg1[%c0_515, %c12_516, %c14_517] : memref<1x16x112xf32, #tpu.memory_space<vmem>>, vector<1x1x98xf32>
    %395 = vector.shape_cast %394 : vector<1x1x98xf32> to vector<1x98xf32>
    %c0_518 = arith.constant 0 : index
    %c13_519 = arith.constant 13 : index
    %c14_520 = arith.constant 14 : index
    %396 = vector.load %arg1[%c0_518, %c13_519, %c14_520] : memref<1x16x112xf32, #tpu.memory_space<vmem>>, vector<1x1x98xf32>
    %397 = vector.shape_cast %396 : vector<1x1x98xf32> to vector<1x98xf32>
    %c0_521 = arith.constant 0 : index
    %c14_522 = arith.constant 14 : index
    %c14_523 = arith.constant 14 : index
    %398 = vector.load %arg1[%c0_521, %c14_522, %c14_523] : memref<1x16x112xf32, #tpu.memory_space<vmem>>, vector<1x1x98xf32>
    %399 = vector.shape_cast %398 : vector<1x1x98xf32> to vector<1x98xf32>
    %400 = tpu.concatenate %351, %353, %355, %357, %359, %361, %363, %365, %367, %369, %371, %373, %375, %377, %379, %381 in 0 : vector<1x98xf32>, vector<1x98xf32>, vector<1x98xf32>, vector<1x98xf32>, vector<1x98xf32>, vector<1x98xf32>, vector<1x98xf32>, vector<1x98xf32>, vector<1x98xf32>, vector<1x98xf32>, vector<1x98xf32>, vector<1x98xf32>, vector<1x98xf32>, vector<1x98xf32>, vector<1x98xf32>, vector<1x98xf32> -> vector<16x98xf32>
    %401 = tpu.concatenate %383, %385, %387, %389, %391, %393, %395, %397, %399 in 0 : vector<1x98xf32>, vector<1x98xf32>, vector<1x98xf32>, vector<1x98xf32>, vector<1x98xf32>, vector<1x98xf32>, vector<1x98xf32>, vector<1x98xf32>, vector<1x98xf32> -> vector<9x98xf32>
    %402 = tpu.concatenate %400, %401 in 0 : vector<16x98xf32>, vector<9x98xf32> -> vector<25x98xf32>
    %cst_524 = arith.constant dense<0.000000e+00> : vector<6x98xf32>
    %403 = tpu.matmul %0, %402, %cst_524 {dimension_numbers = #tpu.dot_dimension_numbers<[1], [0], [0], [1], [0, 0, 1, 1], [], []>} : vector<6x25xf32>, vector<25x98xf32>, vector<6x98xf32> -> vector<6x98xf32>
    %404 = vector.broadcast %1 : vector<6x1xf32> to vector<6x98xf32>
    %405 = arith.addf %403, %404 : vector<6x98xf32>
    %cst_525 = arith.constant 0.000000e+00 : f32
    %406 = vector.broadcast %cst_525 : f32 to vector<6x98xf32>
    %407 = arith.maximumf %405, %406 : vector<6x98xf32>
    %c0_526 = arith.constant 0 : index
    %c11_527 = arith.constant 11 : index
    %c0_528 = arith.constant 0 : index
    %408 = vector.load %arg1[%c0_526, %c11_527, %c0_528] : memref<1x16x112xf32, #tpu.memory_space<vmem>>, vector<1x1x98xf32>
    %409 = vector.shape_cast %408 : vector<1x1x98xf32> to vector<1x98xf32>
    %c0_529 = arith.constant 0 : index
    %c12_530 = arith.constant 12 : index
    %c0_531 = arith.constant 0 : index
    %410 = vector.load %arg1[%c0_529, %c12_530, %c0_531] : memref<1x16x112xf32, #tpu.memory_space<vmem>>, vector<1x1x98xf32>
    %411 = vector.shape_cast %410 : vector<1x1x98xf32> to vector<1x98xf32>
    %c0_532 = arith.constant 0 : index
    %c13_533 = arith.constant 13 : index
    %c0_534 = arith.constant 0 : index
    %412 = vector.load %arg1[%c0_532, %c13_533, %c0_534] : memref<1x16x112xf32, #tpu.memory_space<vmem>>, vector<1x1x98xf32>
    %413 = vector.shape_cast %412 : vector<1x1x98xf32> to vector<1x98xf32>
    %c0_535 = arith.constant 0 : index
    %c14_536 = arith.constant 14 : index
    %c0_537 = arith.constant 0 : index
    %414 = vector.load %arg1[%c0_535, %c14_536, %c0_537] : memref<1x16x112xf32, #tpu.memory_space<vmem>>, vector<1x1x98xf32>
    %415 = vector.shape_cast %414 : vector<1x1x98xf32> to vector<1x98xf32>
    %c0_538 = arith.constant 0 : index
    %c15_539 = arith.constant 15 : index
    %c0_540 = arith.constant 0 : index
    %416 = vector.load %arg1[%c0_538, %c15_539, %c0_540] : memref<1x16x112xf32, #tpu.memory_space<vmem>>, vector<1x1x98xf32>
    %417 = vector.shape_cast %416 : vector<1x1x98xf32> to vector<1x98xf32>
    %c0_541 = arith.constant 0 : index
    %c3_542 = arith.constant 3 : index
    %c7_543 = arith.constant 7 : index
    %418 = vector.load %arg1[%c0_541, %c3_542, %c7_543] : memref<1x16x112xf32, #tpu.memory_space<vmem>>, vector<1x1x98xf32>
    %419 = vector.shape_cast %418 : vector<1x1x98xf32> to vector<1x98xf32>
    %c0_544 = arith.constant 0 : index
    %c4_545 = arith.constant 4 : index
    %c7_546 = arith.constant 7 : index
    %420 = vector.load %arg1[%c0_544, %c4_545, %c7_546] : memref<1x16x112xf32, #tpu.memory_space<vmem>>, vector<1x1x98xf32>
    %421 = vector.shape_cast %420 : vector<1x1x98xf32> to vector<1x98xf32>
    %c0_547 = arith.constant 0 : index
    %c5_548 = arith.constant 5 : index
    %c7_549 = arith.constant 7 : index
    %422 = vector.load %arg1[%c0_547, %c5_548, %c7_549] : memref<1x16x112xf32, #tpu.memory_space<vmem>>, vector<1x1x98xf32>
    %423 = vector.shape_cast %422 : vector<1x1x98xf32> to vector<1x98xf32>
    %c0_550 = arith.constant 0 : index
    %c6_551 = arith.constant 6 : index
    %c7_552 = arith.constant 7 : index
    %424 = vector.load %arg1[%c0_550, %c6_551, %c7_552] : memref<1x16x112xf32, #tpu.memory_space<vmem>>, vector<1x1x98xf32>
    %425 = vector.shape_cast %424 : vector<1x1x98xf32> to vector<1x98xf32>
    %c0_553 = arith.constant 0 : index
    %c7_554 = arith.constant 7 : index
    %c7_555 = arith.constant 7 : index
    %426 = vector.load %arg1[%c0_553, %c7_554, %c7_555] : memref<1x16x112xf32, #tpu.memory_space<vmem>>, vector<1x1x98xf32>
    %427 = vector.shape_cast %426 : vector<1x1x98xf32> to vector<1x98xf32>
    %c0_556 = arith.constant 0 : index
    %c11_557 = arith.constant 11 : index
    %c7_558 = arith.constant 7 : index
    %428 = vector.load %arg1[%c0_556, %c11_557, %c7_558] : memref<1x16x112xf32, #tpu.memory_space<vmem>>, vector<1x1x98xf32>
    %429 = vector.shape_cast %428 : vector<1x1x98xf32> to vector<1x98xf32>
    %c0_559 = arith.constant 0 : index
    %c12_560 = arith.constant 12 : index
    %c7_561 = arith.constant 7 : index
    %430 = vector.load %arg1[%c0_559, %c12_560, %c7_561] : memref<1x16x112xf32, #tpu.memory_space<vmem>>, vector<1x1x98xf32>
    %431 = vector.shape_cast %430 : vector<1x1x98xf32> to vector<1x98xf32>
    %c0_562 = arith.constant 0 : index
    %c13_563 = arith.constant 13 : index
    %c7_564 = arith.constant 7 : index
    %432 = vector.load %arg1[%c0_562, %c13_563, %c7_564] : memref<1x16x112xf32, #tpu.memory_space<vmem>>, vector<1x1x98xf32>
    %433 = vector.shape_cast %432 : vector<1x1x98xf32> to vector<1x98xf32>
    %c0_565 = arith.constant 0 : index
    %c14_566 = arith.constant 14 : index
    %c7_567 = arith.constant 7 : index
    %434 = vector.load %arg1[%c0_565, %c14_566, %c7_567] : memref<1x16x112xf32, #tpu.memory_space<vmem>>, vector<1x1x98xf32>
    %435 = vector.shape_cast %434 : vector<1x1x98xf32> to vector<1x98xf32>
    %c0_568 = arith.constant 0 : index
    %c15_569 = arith.constant 15 : index
    %c7_570 = arith.constant 7 : index
    %436 = vector.load %arg1[%c0_568, %c15_569, %c7_570] : memref<1x16x112xf32, #tpu.memory_space<vmem>>, vector<1x1x98xf32>
    %437 = vector.shape_cast %436 : vector<1x1x98xf32> to vector<1x98xf32>
    %c0_571 = arith.constant 0 : index
    %c3_572 = arith.constant 3 : index
    %c14_573 = arith.constant 14 : index
    %438 = vector.load %arg1[%c0_571, %c3_572, %c14_573] : memref<1x16x112xf32, #tpu.memory_space<vmem>>, vector<1x1x98xf32>
    %439 = vector.shape_cast %438 : vector<1x1x98xf32> to vector<1x98xf32>
    %c0_574 = arith.constant 0 : index
    %c4_575 = arith.constant 4 : index
    %c14_576 = arith.constant 14 : index
    %440 = vector.load %arg1[%c0_574, %c4_575, %c14_576] : memref<1x16x112xf32, #tpu.memory_space<vmem>>, vector<1x1x98xf32>
    %441 = vector.shape_cast %440 : vector<1x1x98xf32> to vector<1x98xf32>
    %c0_577 = arith.constant 0 : index
    %c5_578 = arith.constant 5 : index
    %c14_579 = arith.constant 14 : index
    %442 = vector.load %arg1[%c0_577, %c5_578, %c14_579] : memref<1x16x112xf32, #tpu.memory_space<vmem>>, vector<1x1x98xf32>
    %443 = vector.shape_cast %442 : vector<1x1x98xf32> to vector<1x98xf32>
    %c0_580 = arith.constant 0 : index
    %c6_581 = arith.constant 6 : index
    %c14_582 = arith.constant 14 : index
    %444 = vector.load %arg1[%c0_580, %c6_581, %c14_582] : memref<1x16x112xf32, #tpu.memory_space<vmem>>, vector<1x1x98xf32>
    %445 = vector.shape_cast %444 : vector<1x1x98xf32> to vector<1x98xf32>
    %c0_583 = arith.constant 0 : index
    %c7_584 = arith.constant 7 : index
    %c14_585 = arith.constant 14 : index
    %446 = vector.load %arg1[%c0_583, %c7_584, %c14_585] : memref<1x16x112xf32, #tpu.memory_space<vmem>>, vector<1x1x98xf32>
    %447 = vector.shape_cast %446 : vector<1x1x98xf32> to vector<1x98xf32>
    %c0_586 = arith.constant 0 : index
    %c11_587 = arith.constant 11 : index
    %c14_588 = arith.constant 14 : index
    %448 = vector.load %arg1[%c0_586, %c11_587, %c14_588] : memref<1x16x112xf32, #tpu.memory_space<vmem>>, vector<1x1x98xf32>
    %449 = vector.shape_cast %448 : vector<1x1x98xf32> to vector<1x98xf32>
    %c0_589 = arith.constant 0 : index
    %c12_590 = arith.constant 12 : index
    %c14_591 = arith.constant 14 : index
    %450 = vector.load %arg1[%c0_589, %c12_590, %c14_591] : memref<1x16x112xf32, #tpu.memory_space<vmem>>, vector<1x1x98xf32>
    %451 = vector.shape_cast %450 : vector<1x1x98xf32> to vector<1x98xf32>
    %c0_592 = arith.constant 0 : index
    %c13_593 = arith.constant 13 : index
    %c14_594 = arith.constant 14 : index
    %452 = vector.load %arg1[%c0_592, %c13_593, %c14_594] : memref<1x16x112xf32, #tpu.memory_space<vmem>>, vector<1x1x98xf32>
    %453 = vector.shape_cast %452 : vector<1x1x98xf32> to vector<1x98xf32>
    %c0_595 = arith.constant 0 : index
    %c14_596 = arith.constant 14 : index
    %c14_597 = arith.constant 14 : index
    %454 = vector.load %arg1[%c0_595, %c14_596, %c14_597] : memref<1x16x112xf32, #tpu.memory_space<vmem>>, vector<1x1x98xf32>
    %455 = vector.shape_cast %454 : vector<1x1x98xf32> to vector<1x98xf32>
    %c0_598 = arith.constant 0 : index
    %c15_599 = arith.constant 15 : index
    %c14_600 = arith.constant 14 : index
    %456 = vector.load %arg1[%c0_598, %c15_599, %c14_600] : memref<1x16x112xf32, #tpu.memory_space<vmem>>, vector<1x1x98xf32>
    %457 = vector.shape_cast %456 : vector<1x1x98xf32> to vector<1x98xf32>
    %458 = tpu.concatenate %409, %411, %413, %415, %417, %419, %421, %423, %425, %427, %429, %431, %433, %435, %437, %439 in 0 : vector<1x98xf32>, vector<1x98xf32>, vector<1x98xf32>, vector<1x98xf32>, vector<1x98xf32>, vector<1x98xf32>, vector<1x98xf32>, vector<1x98xf32>, vector<1x98xf32>, vector<1x98xf32>, vector<1x98xf32>, vector<1x98xf32>, vector<1x98xf32>, vector<1x98xf32>, vector<1x98xf32>, vector<1x98xf32> -> vector<16x98xf32>
    %459 = tpu.concatenate %441, %443, %445, %447, %449, %451, %453, %455, %457 in 0 : vector<1x98xf32>, vector<1x98xf32>, vector<1x98xf32>, vector<1x98xf32>, vector<1x98xf32>, vector<1x98xf32>, vector<1x98xf32>, vector<1x98xf32>, vector<1x98xf32> -> vector<9x98xf32>
    %460 = tpu.concatenate %458, %459 in 0 : vector<16x98xf32>, vector<9x98xf32> -> vector<25x98xf32>
    %cst_601 = arith.constant dense<0.000000e+00> : vector<6x98xf32>
    %461 = tpu.matmul %0, %460, %cst_601 {dimension_numbers = #tpu.dot_dimension_numbers<[1], [0], [0], [1], [0, 0, 1, 1], [], []>} : vector<6x25xf32>, vector<25x98xf32>, vector<6x98xf32> -> vector<6x98xf32>
    %462 = vector.broadcast %1 : vector<6x1xf32> to vector<6x98xf32>
    %463 = arith.addf %461, %462 : vector<6x98xf32>
    %cst_602 = arith.constant 0.000000e+00 : f32
    %464 = vector.broadcast %cst_602 : f32 to vector<6x98xf32>
    %465 = arith.maximumf %463, %464 : vector<6x98xf32>
    %466 = arith.maximumf %59, %117 : vector<6x98xf32>
    %467 = arith.maximumf %291, %349 : vector<6x98xf32>
    %468 = arith.maximumf %466, %467 : vector<6x98xf32>
    %469 = arith.maximumf %175, %233 : vector<6x98xf32>
    %470 = arith.maximumf %407, %465 : vector<6x98xf32>
    %471 = arith.maximumf %469, %470 : vector<6x98xf32>
    %472 = vector.extract_strided_slice %468 {offsets = [0, 0], sizes = [6, 5], strides = [1, 1]} : vector<6x98xf32> to vector<6x5xf32>
    %c0_603 = arith.constant 0 : index
    %c0_604 = arith.constant 0 : index
    %c0_605 = arith.constant 0 : index
    %473 = vector.load %arg13[%c0_603, %c0_604, %c0_605] : memref<12x6x35xf32, #tpu.memory_space<vmem>>, vector<1x6x5xf32>
    %474 = vector.shape_cast %473 : vector<1x6x5xf32> to vector<6x5xf32>
    %475 = vector.shape_cast %472 : vector<6x5xf32> to vector<1x6x5xf32>
    tpu.vector_store %arg13[%c0_603, %c0_604, %c0_605], %475 {strides = array<i32>} : memref<12x6x35xf32, #tpu.memory_space<vmem>>, vector<1x6x5xf32>,
    %476 = vector.extract_strided_slice %468 {offsets = [0, 14], sizes = [6, 5], strides = [1, 1]} : vector<6x98xf32> to vector<6x5xf32>
    %c0_606 = arith.constant 0 : index
    %c0_607 = arith.constant 0 : index
    %c5_608 = arith.constant 5 : index
    %477 = vector.load %arg13[%c0_606, %c0_607, %c5_608] : memref<12x6x35xf32, #tpu.memory_space<vmem>>, vector<1x6x5xf32>
    %478 = vector.shape_cast %477 : vector<1x6x5xf32> to vector<6x5xf32>
    %479 = vector.shape_cast %476 : vector<6x5xf32> to vector<1x6x5xf32>
    tpu.vector_store %arg13[%c0_606, %c0_607, %c5_608], %479 {strides = array<i32>} : memref<12x6x35xf32, #tpu.memory_space<vmem>>, vector<1x6x5xf32>,
    %480 = vector.extract_strided_slice %468 {offsets = [0, 28], sizes = [6, 5], strides = [1, 1]} : vector<6x98xf32> to vector<6x5xf32>
    %c0_609 = arith.constant 0 : index
    %c0_610 = arith.constant 0 : index
    %c10_611 = arith.constant 10 : index
    %481 = vector.load %arg13[%c0_609, %c0_610, %c10_611] : memref<12x6x35xf32, #tpu.memory_space<vmem>>, vector<1x6x5xf32>
    %482 = vector.shape_cast %481 : vector<1x6x5xf32> to vector<6x5xf32>
    %483 = vector.shape_cast %480 : vector<6x5xf32> to vector<1x6x5xf32>
    tpu.vector_store %arg13[%c0_609, %c0_610, %c10_611], %483 {strides = array<i32>} : memref<12x6x35xf32, #tpu.memory_space<vmem>>, vector<1x6x5xf32>,
    %484 = vector.extract_strided_slice %468 {offsets = [0, 42], sizes = [6, 5], strides = [1, 1]} : vector<6x98xf32> to vector<6x5xf32>
    %c0_612 = arith.constant 0 : index
    %c0_613 = arith.constant 0 : index
    %c15_614 = arith.constant 15 : index
    %485 = vector.load %arg13[%c0_612, %c0_613, %c15_614] : memref<12x6x35xf32, #tpu.memory_space<vmem>>, vector<1x6x5xf32>
    %486 = vector.shape_cast %485 : vector<1x6x5xf32> to vector<6x5xf32>
    %487 = vector.shape_cast %484 : vector<6x5xf32> to vector<1x6x5xf32>
    tpu.vector_store %arg13[%c0_612, %c0_613, %c15_614], %487 {strides = array<i32>} : memref<12x6x35xf32, #tpu.memory_space<vmem>>, vector<1x6x5xf32>,
    %488 = vector.extract_strided_slice %468 {offsets = [0, 56], sizes = [6, 5], strides = [1, 1]} : vector<6x98xf32> to vector<6x5xf32>
    %c0_615 = arith.constant 0 : index
    %c0_616 = arith.constant 0 : index
    %c20 = arith.constant 20 : index
    %489 = vector.load %arg13[%c0_615, %c0_616, %c20] : memref<12x6x35xf32, #tpu.memory_space<vmem>>, vector<1x6x5xf32>
    %490 = vector.shape_cast %489 : vector<1x6x5xf32> to vector<6x5xf32>
    %491 = vector.shape_cast %488 : vector<6x5xf32> to vector<1x6x5xf32>
    tpu.vector_store %arg13[%c0_615, %c0_616, %c20], %491 {strides = array<i32>} : memref<12x6x35xf32, #tpu.memory_space<vmem>>, vector<1x6x5xf32>,
    %492 = vector.extract_strided_slice %468 {offsets = [0, 70], sizes = [6, 5], strides = [1, 1]} : vector<6x98xf32> to vector<6x5xf32>
    %c0_617 = arith.constant 0 : index
    %c0_618 = arith.constant 0 : index
    %c25 = arith.constant 25 : index
    %493 = vector.load %arg13[%c0_617, %c0_618, %c25] : memref<12x6x35xf32, #tpu.memory_space<vmem>>, vector<1x6x5xf32>
    %494 = vector.shape_cast %493 : vector<1x6x5xf32> to vector<6x5xf32>
    %495 = vector.shape_cast %492 : vector<6x5xf32> to vector<1x6x5xf32>
    tpu.vector_store %arg13[%c0_617, %c0_618, %c25], %495 {strides = array<i32>} : memref<12x6x35xf32, #tpu.memory_space<vmem>>, vector<1x6x5xf32>,
    %496 = vector.extract_strided_slice %468 {offsets = [0, 84], sizes = [6, 5], strides = [1, 1]} : vector<6x98xf32> to vector<6x5xf32>
    %c0_619 = arith.constant 0 : index
    %c0_620 = arith.constant 0 : index
    %c30 = arith.constant 30 : index
    %497 = vector.load %arg13[%c0_619, %c0_620, %c30] : memref<12x6x35xf32, #tpu.memory_space<vmem>>, vector<1x6x5xf32>
    %498 = vector.shape_cast %497 : vector<1x6x5xf32> to vector<6x5xf32>
    %499 = vector.shape_cast %496 : vector<6x5xf32> to vector<1x6x5xf32>
    tpu.vector_store %arg13[%c0_619, %c0_620, %c30], %499 {strides = array<i32>} : memref<12x6x35xf32, #tpu.memory_space<vmem>>, vector<1x6x5xf32>,
    %500 = vector.extract_strided_slice %468 {offsets = [0, 1], sizes = [6, 5], strides = [1, 1]} : vector<6x98xf32> to vector<6x5xf32>
    %c1_621 = arith.constant 1 : index
    %c0_622 = arith.constant 0 : index
    %c0_623 = arith.constant 0 : index
    %501 = vector.load %arg13[%c1_621, %c0_622, %c0_623] : memref<12x6x35xf32, #tpu.memory_space<vmem>>, vector<1x6x5xf32>
    %502 = vector.shape_cast %501 : vector<1x6x5xf32> to vector<6x5xf32>
    %503 = vector.shape_cast %500 : vector<6x5xf32> to vector<1x6x5xf32>
    tpu.vector_store %arg13[%c1_621, %c0_622, %c0_623], %503 {strides = array<i32>} : memref<12x6x35xf32, #tpu.memory_space<vmem>>, vector<1x6x5xf32>,
    %504 = vector.extract_strided_slice %468 {offsets = [0, 15], sizes = [6, 5], strides = [1, 1]} : vector<6x98xf32> to vector<6x5xf32>
    %c1_624 = arith.constant 1 : index
    %c0_625 = arith.constant 0 : index
    %c5_626 = arith.constant 5 : index
    %505 = vector.load %arg13[%c1_624, %c0_625, %c5_626] : memref<12x6x35xf32, #tpu.memory_space<vmem>>, vector<1x6x5xf32>
    %506 = vector.shape_cast %505 : vector<1x6x5xf32> to vector<6x5xf32>
    %507 = vector.shape_cast %504 : vector<6x5xf32> to vector<1x6x5xf32>
    tpu.vector_store %arg13[%c1_624, %c0_625, %c5_626], %507 {strides = array<i32>} : memref<12x6x35xf32, #tpu.memory_space<vmem>>, vector<1x6x5xf32>,
    %508 = vector.extract_strided_slice %468 {offsets = [0, 29], sizes = [6, 5], strides = [1, 1]} : vector<6x98xf32> to vector<6x5xf32>
    %c1_627 = arith.constant 1 : index
    %c0_628 = arith.constant 0 : index
    %c10_629 = arith.constant 10 : index
    %509 = vector.load %arg13[%c1_627, %c0_628, %c10_629] : memref<12x6x35xf32, #tpu.memory_space<vmem>>, vector<1x6x5xf32>
    %510 = vector.shape_cast %509 : vector<1x6x5xf32> to vector<6x5xf32>
    %511 = vector.shape_cast %508 : vector<6x5xf32> to vector<1x6x5xf32>
    tpu.vector_store %arg13[%c1_627, %c0_628, %c10_629], %511 {strides = array<i32>} : memref<12x6x35xf32, #tpu.memory_space<vmem>>, vector<1x6x5xf32>,
    %512 = vector.extract_strided_slice %468 {offsets = [0, 43], sizes = [6, 5], strides = [1, 1]} : vector<6x98xf32> to vector<6x5xf32>
    %c1_630 = arith.constant 1 : index
    %c0_631 = arith.constant 0 : index
    %c15_632 = arith.constant 15 : index
    %513 = vector.load %arg13[%c1_630, %c0_631, %c15_632] : memref<12x6x35xf32, #tpu.memory_space<vmem>>, vector<1x6x5xf32>
    %514 = vector.shape_cast %513 : vector<1x6x5xf32> to vector<6x5xf32>
    %515 = vector.shape_cast %512 : vector<6x5xf32> to vector<1x6x5xf32>
    tpu.vector_store %arg13[%c1_630, %c0_631, %c15_632], %515 {strides = array<i32>} : memref<12x6x35xf32, #tpu.memory_space<vmem>>, vector<1x6x5xf32>,
    %516 = vector.extract_strided_slice %468 {offsets = [0, 57], sizes = [6, 5], strides = [1, 1]} : vector<6x98xf32> to vector<6x5xf32>
    %c1_633 = arith.constant 1 : index
    %c0_634 = arith.constant 0 : index
    %c20_635 = arith.constant 20 : index
    %517 = vector.load %arg13[%c1_633, %c0_634, %c20_635] : memref<12x6x35xf32, #tpu.memory_space<vmem>>, vector<1x6x5xf32>
    %518 = vector.shape_cast %517 : vector<1x6x5xf32> to vector<6x5xf32>
    %519 = vector.shape_cast %516 : vector<6x5xf32> to vector<1x6x5xf32>
    tpu.vector_store %arg13[%c1_633, %c0_634, %c20_635], %519 {strides = array<i32>} : memref<12x6x35xf32, #tpu.memory_space<vmem>>, vector<1x6x5xf32>,
    %520 = vector.extract_strided_slice %468 {offsets = [0, 71], sizes = [6, 5], strides = [1, 1]} : vector<6x98xf32> to vector<6x5xf32>
    %c1_636 = arith.constant 1 : index
    %c0_637 = arith.constant 0 : index
    %c25_638 = arith.constant 25 : index
    %521 = vector.load %arg13[%c1_636, %c0_637, %c25_638] : memref<12x6x35xf32, #tpu.memory_space<vmem>>, vector<1x6x5xf32>
    %522 = vector.shape_cast %521 : vector<1x6x5xf32> to vector<6x5xf32>
    %523 = vector.shape_cast %520 : vector<6x5xf32> to vector<1x6x5xf32>
    tpu.vector_store %arg13[%c1_636, %c0_637, %c25_638], %523 {strides = array<i32>} : memref<12x6x35xf32, #tpu.memory_space<vmem>>, vector<1x6x5xf32>,
    %524 = vector.extract_strided_slice %468 {offsets = [0, 85], sizes = [6, 5], strides = [1, 1]} : vector<6x98xf32> to vector<6x5xf32>
    %c1_639 = arith.constant 1 : index
    %c0_640 = arith.constant 0 : index
    %c30_641 = arith.constant 30 : index
    %525 = vector.load %arg13[%c1_639, %c0_640, %c30_641] : memref<12x6x35xf32, #tpu.memory_space<vmem>>, vector<1x6x5xf32>
    %526 = vector.shape_cast %525 : vector<1x6x5xf32> to vector<6x5xf32>
    %527 = vector.shape_cast %524 : vector<6x5xf32> to vector<1x6x5xf32>
    tpu.vector_store %arg13[%c1_639, %c0_640, %c30_641], %527 {strides = array<i32>} : memref<12x6x35xf32, #tpu.memory_space<vmem>>, vector<1x6x5xf32>,
    %528 = vector.extract_strided_slice %468 {offsets = [0, 2], sizes = [6, 5], strides = [1, 1]} : vector<6x98xf32> to vector<6x5xf32>
    %c2_642 = arith.constant 2 : index
    %c0_643 = arith.constant 0 : index
    %c0_644 = arith.constant 0 : index
    %529 = vector.load %arg13[%c2_642, %c0_643, %c0_644] : memref<12x6x35xf32, #tpu.memory_space<vmem>>, vector<1x6x5xf32>
    %530 = vector.shape_cast %529 : vector<1x6x5xf32> to vector<6x5xf32>
    %531 = vector.shape_cast %528 : vector<6x5xf32> to vector<1x6x5xf32>
    tpu.vector_store %arg13[%c2_642, %c0_643, %c0_644], %531 {strides = array<i32>} : memref<12x6x35xf32, #tpu.memory_space<vmem>>, vector<1x6x5xf32>,
    %532 = vector.extract_strided_slice %468 {offsets = [0, 16], sizes = [6, 5], strides = [1, 1]} : vector<6x98xf32> to vector<6x5xf32>
    %c2_645 = arith.constant 2 : index
    %c0_646 = arith.constant 0 : index
    %c5_647 = arith.constant 5 : index
    %533 = vector.load %arg13[%c2_645, %c0_646, %c5_647] : memref<12x6x35xf32, #tpu.memory_space<vmem>>, vector<1x6x5xf32>
    %534 = vector.shape_cast %533 : vector<1x6x5xf32> to vector<6x5xf32>
    %535 = vector.shape_cast %532 : vector<6x5xf32> to vector<1x6x5xf32>
    tpu.vector_store %arg13[%c2_645, %c0_646, %c5_647], %535 {strides = array<i32>} : memref<12x6x35xf32, #tpu.memory_space<vmem>>, vector<1x6x5xf32>,
    %536 = vector.extract_strided_slice %468 {offsets = [0, 30], sizes = [6, 5], strides = [1, 1]} : vector<6x98xf32> to vector<6x5xf32>
    %c2_648 = arith.constant 2 : index
    %c0_649 = arith.constant 0 : index
    %c10_650 = arith.constant 10 : index
    %537 = vector.load %arg13[%c2_648, %c0_649, %c10_650] : memref<12x6x35xf32, #tpu.memory_space<vmem>>, vector<1x6x5xf32>
    %538 = vector.shape_cast %537 : vector<1x6x5xf32> to vector<6x5xf32>
    %539 = vector.shape_cast %536 : vector<6x5xf32> to vector<1x6x5xf32>
    tpu.vector_store %arg13[%c2_648, %c0_649, %c10_650], %539 {strides = array<i32>} : memref<12x6x35xf32, #tpu.memory_space<vmem>>, vector<1x6x5xf32>,
    %540 = vector.extract_strided_slice %468 {offsets = [0, 44], sizes = [6, 5], strides = [1, 1]} : vector<6x98xf32> to vector<6x5xf32>
    %c2_651 = arith.constant 2 : index
    %c0_652 = arith.constant 0 : index
    %c15_653 = arith.constant 15 : index
    %541 = vector.load %arg13[%c2_651, %c0_652, %c15_653] : memref<12x6x35xf32, #tpu.memory_space<vmem>>, vector<1x6x5xf32>
    %542 = vector.shape_cast %541 : vector<1x6x5xf32> to vector<6x5xf32>
    %543 = vector.shape_cast %540 : vector<6x5xf32> to vector<1x6x5xf32>
    tpu.vector_store %arg13[%c2_651, %c0_652, %c15_653], %543 {strides = array<i32>} : memref<12x6x35xf32, #tpu.memory_space<vmem>>, vector<1x6x5xf32>,
    %544 = vector.extract_strided_slice %468 {offsets = [0, 58], sizes = [6, 5], strides = [1, 1]} : vector<6x98xf32> to vector<6x5xf32>
    %c2_654 = arith.constant 2 : index
    %c0_655 = arith.constant 0 : index
    %c20_656 = arith.constant 20 : index
    %545 = vector.load %arg13[%c2_654, %c0_655, %c20_656] : memref<12x6x35xf32, #tpu.memory_space<vmem>>, vector<1x6x5xf32>
    %546 = vector.shape_cast %545 : vector<1x6x5xf32> to vector<6x5xf32>
    %547 = vector.shape_cast %544 : vector<6x5xf32> to vector<1x6x5xf32>
    tpu.vector_store %arg13[%c2_654, %c0_655, %c20_656], %547 {strides = array<i32>} : memref<12x6x35xf32, #tpu.memory_space<vmem>>, vector<1x6x5xf32>,
    %548 = vector.extract_strided_slice %468 {offsets = [0, 72], sizes = [6, 5], strides = [1, 1]} : vector<6x98xf32> to vector<6x5xf32>
    %c2_657 = arith.constant 2 : index
    %c0_658 = arith.constant 0 : index
    %c25_659 = arith.constant 25 : index
    %549 = vector.load %arg13[%c2_657, %c0_658, %c25_659] : memref<12x6x35xf32, #tpu.memory_space<vmem>>, vector<1x6x5xf32>
    %550 = vector.shape_cast %549 : vector<1x6x5xf32> to vector<6x5xf32>
    %551 = vector.shape_cast %548 : vector<6x5xf32> to vector<1x6x5xf32>
    tpu.vector_store %arg13[%c2_657, %c0_658, %c25_659], %551 {strides = array<i32>} : memref<12x6x35xf32, #tpu.memory_space<vmem>>, vector<1x6x5xf32>,
    %552 = vector.extract_strided_slice %468 {offsets = [0, 86], sizes = [6, 5], strides = [1, 1]} : vector<6x98xf32> to vector<6x5xf32>
    %c2_660 = arith.constant 2 : index
    %c0_661 = arith.constant 0 : index
    %c30_662 = arith.constant 30 : index
    %553 = vector.load %arg13[%c2_660, %c0_661, %c30_662] : memref<12x6x35xf32, #tpu.memory_space<vmem>>, vector<1x6x5xf32>
    %554 = vector.shape_cast %553 : vector<1x6x5xf32> to vector<6x5xf32>
    %555 = vector.shape_cast %552 : vector<6x5xf32> to vector<1x6x5xf32>
    tpu.vector_store %arg13[%c2_660, %c0_661, %c30_662], %555 {strides = array<i32>} : memref<12x6x35xf32, #tpu.memory_space<vmem>>, vector<1x6x5xf32>,
    %556 = vector.extract_strided_slice %471 {offsets = [0, 0], sizes = [6, 5], strides = [1, 1]} : vector<6x98xf32> to vector<6x5xf32>
    %c3_663 = arith.constant 3 : index
    %c0_664 = arith.constant 0 : index
    %c0_665 = arith.constant 0 : index
    %557 = vector.load %arg13[%c3_663, %c0_664, %c0_665] : memref<12x6x35xf32, #tpu.memory_space<vmem>>, vector<1x6x5xf32>
    %558 = vector.shape_cast %557 : vector<1x6x5xf32> to vector<6x5xf32>
    %559 = vector.shape_cast %556 : vector<6x5xf32> to vector<1x6x5xf32>
    tpu.vector_store %arg13[%c3_663, %c0_664, %c0_665], %559 {strides = array<i32>} : memref<12x6x35xf32, #tpu.memory_space<vmem>>, vector<1x6x5xf32>,
    %560 = vector.extract_strided_slice %471 {offsets = [0, 14], sizes = [6, 5], strides = [1, 1]} : vector<6x98xf32> to vector<6x5xf32>
    %c3_666 = arith.constant 3 : index
    %c0_667 = arith.constant 0 : index
    %c5_668 = arith.constant 5 : index
    %561 = vector.load %arg13[%c3_666, %c0_667, %c5_668] : memref<12x6x35xf32, #tpu.memory_space<vmem>>, vector<1x6x5xf32>
    %562 = vector.shape_cast %561 : vector<1x6x5xf32> to vector<6x5xf32>
    %563 = vector.shape_cast %560 : vector<6x5xf32> to vector<1x6x5xf32>
    tpu.vector_store %arg13[%c3_666, %c0_667, %c5_668], %563 {strides = array<i32>} : memref<12x6x35xf32, #tpu.memory_space<vmem>>, vector<1x6x5xf32>,
    %564 = vector.extract_strided_slice %471 {offsets = [0, 28], sizes = [6, 5], strides = [1, 1]} : vector<6x98xf32> to vector<6x5xf32>
    %c3_669 = arith.constant 3 : index
    %c0_670 = arith.constant 0 : index
    %c10_671 = arith.constant 10 : index
    %565 = vector.load %arg13[%c3_669, %c0_670, %c10_671] : memref<12x6x35xf32, #tpu.memory_space<vmem>>, vector<1x6x5xf32>
    %566 = vector.shape_cast %565 : vector<1x6x5xf32> to vector<6x5xf32>
    %567 = vector.shape_cast %564 : vector<6x5xf32> to vector<1x6x5xf32>
    tpu.vector_store %arg13[%c3_669, %c0_670, %c10_671], %567 {strides = array<i32>} : memref<12x6x35xf32, #tpu.memory_space<vmem>>, vector<1x6x5xf32>,
    %568 = vector.extract_strided_slice %471 {offsets = [0, 42], sizes = [6, 5], strides = [1, 1]} : vector<6x98xf32> to vector<6x5xf32>
    %c3_672 = arith.constant 3 : index
    %c0_673 = arith.constant 0 : index
    %c15_674 = arith.constant 15 : index
    %569 = vector.load %arg13[%c3_672, %c0_673, %c15_674] : memref<12x6x35xf32, #tpu.memory_space<vmem>>, vector<1x6x5xf32>
    %570 = vector.shape_cast %569 : vector<1x6x5xf32> to vector<6x5xf32>
    %571 = vector.shape_cast %568 : vector<6x5xf32> to vector<1x6x5xf32>
    tpu.vector_store %arg13[%c3_672, %c0_673, %c15_674], %571 {strides = array<i32>} : memref<12x6x35xf32, #tpu.memory_space<vmem>>, vector<1x6x5xf32>,
    %572 = vector.extract_strided_slice %471 {offsets = [0, 56], sizes = [6, 5], strides = [1, 1]} : vector<6x98xf32> to vector<6x5xf32>
    %c3_675 = arith.constant 3 : index
    %c0_676 = arith.constant 0 : index
    %c20_677 = arith.constant 20 : index
    %573 = vector.load %arg13[%c3_675, %c0_676, %c20_677] : memref<12x6x35xf32, #tpu.memory_space<vmem>>, vector<1x6x5xf32>
    %574 = vector.shape_cast %573 : vector<1x6x5xf32> to vector<6x5xf32>
    %575 = vector.shape_cast %572 : vector<6x5xf32> to vector<1x6x5xf32>
    tpu.vector_store %arg13[%c3_675, %c0_676, %c20_677], %575 {strides = array<i32>} : memref<12x6x35xf32, #tpu.memory_space<vmem>>, vector<1x6x5xf32>,
    %576 = vector.extract_strided_slice %471 {offsets = [0, 70], sizes = [6, 5], strides = [1, 1]} : vector<6x98xf32> to vector<6x5xf32>
    %c3_678 = arith.constant 3 : index
    %c0_679 = arith.constant 0 : index
    %c25_680 = arith.constant 25 : index
    %577 = vector.load %arg13[%c3_678, %c0_679, %c25_680] : memref<12x6x35xf32, #tpu.memory_space<vmem>>, vector<1x6x5xf32>
    %578 = vector.shape_cast %577 : vector<1x6x5xf32> to vector<6x5xf32>
    %579 = vector.shape_cast %576 : vector<6x5xf32> to vector<1x6x5xf32>
    tpu.vector_store %arg13[%c3_678, %c0_679, %c25_680], %579 {strides = array<i32>} : memref<12x6x35xf32, #tpu.memory_space<vmem>>, vector<1x6x5xf32>,
    %580 = vector.extract_strided_slice %471 {offsets = [0, 84], sizes = [6, 5], strides = [1, 1]} : vector<6x98xf32> to vector<6x5xf32>
    %c3_681 = arith.constant 3 : index
    %c0_682 = arith.constant 0 : index
    %c30_683 = arith.constant 30 : index
    %581 = vector.load %arg13[%c3_681, %c0_682, %c30_683] : memref<12x6x35xf32, #tpu.memory_space<vmem>>, vector<1x6x5xf32>
    %582 = vector.shape_cast %581 : vector<1x6x5xf32> to vector<6x5xf32>
    %583 = vector.shape_cast %580 : vector<6x5xf32> to vector<1x6x5xf32>
    tpu.vector_store %arg13[%c3_681, %c0_682, %c30_683], %583 {strides = array<i32>} : memref<12x6x35xf32, #tpu.memory_space<vmem>>, vector<1x6x5xf32>,
    %584 = vector.extract_strided_slice %471 {offsets = [0, 1], sizes = [6, 5], strides = [1, 1]} : vector<6x98xf32> to vector<6x5xf32>
    %c4_684 = arith.constant 4 : index
    %c0_685 = arith.constant 0 : index
    %c0_686 = arith.constant 0 : index
    %585 = vector.load %arg13[%c4_684, %c0_685, %c0_686] : memref<12x6x35xf32, #tpu.memory_space<vmem>>, vector<1x6x5xf32>
    %586 = vector.shape_cast %585 : vector<1x6x5xf32> to vector<6x5xf32>
    %587 = vector.shape_cast %584 : vector<6x5xf32> to vector<1x6x5xf32>
    tpu.vector_store %arg13[%c4_684, %c0_685, %c0_686], %587 {strides = array<i32>} : memref<12x6x35xf32, #tpu.memory_space<vmem>>, vector<1x6x5xf32>,
    %588 = vector.extract_strided_slice %471 {offsets = [0, 15], sizes = [6, 5], strides = [1, 1]} : vector<6x98xf32> to vector<6x5xf32>
    %c4_687 = arith.constant 4 : index
    %c0_688 = arith.constant 0 : index
    %c5_689 = arith.constant 5 : index
    %589 = vector.load %arg13[%c4_687, %c0_688, %c5_689] : memref<12x6x35xf32, #tpu.memory_space<vmem>>, vector<1x6x5xf32>
    %590 = vector.shape_cast %589 : vector<1x6x5xf32> to vector<6x5xf32>
    %591 = vector.shape_cast %588 : vector<6x5xf32> to vector<1x6x5xf32>
    tpu.vector_store %arg13[%c4_687, %c0_688, %c5_689], %591 {strides = array<i32>} : memref<12x6x35xf32, #tpu.memory_space<vmem>>, vector<1x6x5xf32>,
    %592 = vector.extract_strided_slice %471 {offsets = [0, 29], sizes = [6, 5], strides = [1, 1]} : vector<6x98xf32> to vector<6x5xf32>
    %c4_690 = arith.constant 4 : index
    %c0_691 = arith.constant 0 : index
    %c10_692 = arith.constant 10 : index
    %593 = vector.load %arg13[%c4_690, %c0_691, %c10_692] : memref<12x6x35xf32, #tpu.memory_space<vmem>>, vector<1x6x5xf32>
    %594 = vector.shape_cast %593 : vector<1x6x5xf32> to vector<6x5xf32>
    %595 = vector.shape_cast %592 : vector<6x5xf32> to vector<1x6x5xf32>
    tpu.vector_store %arg13[%c4_690, %c0_691, %c10_692], %595 {strides = array<i32>} : memref<12x6x35xf32, #tpu.memory_space<vmem>>, vector<1x6x5xf32>,
    %596 = vector.extract_strided_slice %471 {offsets = [0, 43], sizes = [6, 5], strides = [1, 1]} : vector<6x98xf32> to vector<6x5xf32>
    %c4_693 = arith.constant 4 : index
    %c0_694 = arith.constant 0 : index
    %c15_695 = arith.constant 15 : index
    %597 = vector.load %arg13[%c4_693, %c0_694, %c15_695] : memref<12x6x35xf32, #tpu.memory_space<vmem>>, vector<1x6x5xf32>
    %598 = vector.shape_cast %597 : vector<1x6x5xf32> to vector<6x5xf32>
    %599 = vector.shape_cast %596 : vector<6x5xf32> to vector<1x6x5xf32>
    tpu.vector_store %arg13[%c4_693, %c0_694, %c15_695], %599 {strides = array<i32>} : memref<12x6x35xf32, #tpu.memory_space<vmem>>, vector<1x6x5xf32>,
    %600 = vector.extract_strided_slice %471 {offsets = [0, 57], sizes = [6, 5], strides = [1, 1]} : vector<6x98xf32> to vector<6x5xf32>
    %c4_696 = arith.constant 4 : index
    %c0_697 = arith.constant 0 : index
    %c20_698 = arith.constant 20 : index
    %601 = vector.load %arg13[%c4_696, %c0_697, %c20_698] : memref<12x6x35xf32, #tpu.memory_space<vmem>>, vector<1x6x5xf32>
    %602 = vector.shape_cast %601 : vector<1x6x5xf32> to vector<6x5xf32>
    %603 = vector.shape_cast %600 : vector<6x5xf32> to vector<1x6x5xf32>
    tpu.vector_store %arg13[%c4_696, %c0_697, %c20_698], %603 {strides = array<i32>} : memref<12x6x35xf32, #tpu.memory_space<vmem>>, vector<1x6x5xf32>,
    %604 = vector.extract_strided_slice %471 {offsets = [0, 71], sizes = [6, 5], strides = [1, 1]} : vector<6x98xf32> to vector<6x5xf32>
    %c4_699 = arith.constant 4 : index
    %c0_700 = arith.constant 0 : index
    %c25_701 = arith.constant 25 : index
    %605 = vector.load %arg13[%c4_699, %c0_700, %c25_701] : memref<12x6x35xf32, #tpu.memory_space<vmem>>, vector<1x6x5xf32>
    %606 = vector.shape_cast %605 : vector<1x6x5xf32> to vector<6x5xf32>
    %607 = vector.shape_cast %604 : vector<6x5xf32> to vector<1x6x5xf32>
    tpu.vector_store %arg13[%c4_699, %c0_700, %c25_701], %607 {strides = array<i32>} : memref<12x6x35xf32, #tpu.memory_space<vmem>>, vector<1x6x5xf32>,
    %608 = vector.extract_strided_slice %471 {offsets = [0, 85], sizes = [6, 5], strides = [1, 1]} : vector<6x98xf32> to vector<6x5xf32>
    %c4_702 = arith.constant 4 : index
    %c0_703 = arith.constant 0 : index
    %c30_704 = arith.constant 30 : index
    %609 = vector.load %arg13[%c4_702, %c0_703, %c30_704] : memref<12x6x35xf32, #tpu.memory_space<vmem>>, vector<1x6x5xf32>
    %610 = vector.shape_cast %609 : vector<1x6x5xf32> to vector<6x5xf32>
    %611 = vector.shape_cast %608 : vector<6x5xf32> to vector<1x6x5xf32>
    tpu.vector_store %arg13[%c4_702, %c0_703, %c30_704], %611 {strides = array<i32>} : memref<12x6x35xf32, #tpu.memory_space<vmem>>, vector<1x6x5xf32>,
    %612 = vector.extract_strided_slice %471 {offsets = [0, 2], sizes = [6, 5], strides = [1, 1]} : vector<6x98xf32> to vector<6x5xf32>
    %c5_705 = arith.constant 5 : index
    %c0_706 = arith.constant 0 : index
    %c0_707 = arith.constant 0 : index
    %613 = vector.load %arg13[%c5_705, %c0_706, %c0_707] : memref<12x6x35xf32, #tpu.memory_space<vmem>>, vector<1x6x5xf32>
    %614 = vector.shape_cast %613 : vector<1x6x5xf32> to vector<6x5xf32>
    %615 = vector.shape_cast %612 : vector<6x5xf32> to vector<1x6x5xf32>
    tpu.vector_store %arg13[%c5_705, %c0_706, %c0_707], %615 {strides = array<i32>} : memref<12x6x35xf32, #tpu.memory_space<vmem>>, vector<1x6x5xf32>,
    %616 = vector.extract_strided_slice %471 {offsets = [0, 16], sizes = [6, 5], strides = [1, 1]} : vector<6x98xf32> to vector<6x5xf32>
    %c5_708 = arith.constant 5 : index
    %c0_709 = arith.constant 0 : index
    %c5_710 = arith.constant 5 : index
    %617 = vector.load %arg13[%c5_708, %c0_709, %c5_710] : memref<12x6x35xf32, #tpu.memory_space<vmem>>, vector<1x6x5xf32>
    %618 = vector.shape_cast %617 : vector<1x6x5xf32> to vector<6x5xf32>
    %619 = vector.shape_cast %616 : vector<6x5xf32> to vector<1x6x5xf32>
    tpu.vector_store %arg13[%c5_708, %c0_709, %c5_710], %619 {strides = array<i32>} : memref<12x6x35xf32, #tpu.memory_space<vmem>>, vector<1x6x5xf32>,
    %620 = vector.extract_strided_slice %471 {offsets = [0, 30], sizes = [6, 5], strides = [1, 1]} : vector<6x98xf32> to vector<6x5xf32>
    %c5_711 = arith.constant 5 : index
    %c0_712 = arith.constant 0 : index
    %c10_713 = arith.constant 10 : index
    %621 = vector.load %arg13[%c5_711, %c0_712, %c10_713] : memref<12x6x35xf32, #tpu.memory_space<vmem>>, vector<1x6x5xf32>
    %622 = vector.shape_cast %621 : vector<1x6x5xf32> to vector<6x5xf32>
    %623 = vector.shape_cast %620 : vector<6x5xf32> to vector<1x6x5xf32>
    tpu.vector_store %arg13[%c5_711, %c0_712, %c10_713], %623 {strides = array<i32>} : memref<12x6x35xf32, #tpu.memory_space<vmem>>, vector<1x6x5xf32>,
    %624 = vector.extract_strided_slice %471 {offsets = [0, 44], sizes = [6, 5], strides = [1, 1]} : vector<6x98xf32> to vector<6x5xf32>
    %c5_714 = arith.constant 5 : index
    %c0_715 = arith.constant 0 : index
    %c15_716 = arith.constant 15 : index
    %625 = vector.load %arg13[%c5_714, %c0_715, %c15_716] : memref<12x6x35xf32, #tpu.memory_space<vmem>>, vector<1x6x5xf32>
    %626 = vector.shape_cast %625 : vector<1x6x5xf32> to vector<6x5xf32>
    %627 = vector.shape_cast %624 : vector<6x5xf32> to vector<1x6x5xf32>
    tpu.vector_store %arg13[%c5_714, %c0_715, %c15_716], %627 {strides = array<i32>} : memref<12x6x35xf32, #tpu.memory_space<vmem>>, vector<1x6x5xf32>,
    %628 = vector.extract_strided_slice %471 {offsets = [0, 58], sizes = [6, 5], strides = [1, 1]} : vector<6x98xf32> to vector<6x5xf32>
    %c5_717 = arith.constant 5 : index
    %c0_718 = arith.constant 0 : index
    %c20_719 = arith.constant 20 : index
    %629 = vector.load %arg13[%c5_717, %c0_718, %c20_719] : memref<12x6x35xf32, #tpu.memory_space<vmem>>, vector<1x6x5xf32>
    %630 = vector.shape_cast %629 : vector<1x6x5xf32> to vector<6x5xf32>
    %631 = vector.shape_cast %628 : vector<6x5xf32> to vector<1x6x5xf32>
    tpu.vector_store %arg13[%c5_717, %c0_718, %c20_719], %631 {strides = array<i32>} : memref<12x6x35xf32, #tpu.memory_space<vmem>>, vector<1x6x5xf32>,
    %632 = vector.extract_strided_slice %471 {offsets = [0, 72], sizes = [6, 5], strides = [1, 1]} : vector<6x98xf32> to vector<6x5xf32>
    %c5_720 = arith.constant 5 : index
    %c0_721 = arith.constant 0 : index
    %c25_722 = arith.constant 25 : index
    %633 = vector.load %arg13[%c5_720, %c0_721, %c25_722] : memref<12x6x35xf32, #tpu.memory_space<vmem>>, vector<1x6x5xf32>
    %634 = vector.shape_cast %633 : vector<1x6x5xf32> to vector<6x5xf32>
    %635 = vector.shape_cast %632 : vector<6x5xf32> to vector<1x6x5xf32>
    tpu.vector_store %arg13[%c5_720, %c0_721, %c25_722], %635 {strides = array<i32>} : memref<12x6x35xf32, #tpu.memory_space<vmem>>, vector<1x6x5xf32>,
    %636 = vector.extract_strided_slice %471 {offsets = [0, 86], sizes = [6, 5], strides = [1, 1]} : vector<6x98xf32> to vector<6x5xf32>
    %c5_723 = arith.constant 5 : index
    %c0_724 = arith.constant 0 : index
    %c30_725 = arith.constant 30 : index
    %637 = vector.load %arg13[%c5_723, %c0_724, %c30_725] : memref<12x6x35xf32, #tpu.memory_space<vmem>>, vector<1x6x5xf32>
    %638 = vector.shape_cast %637 : vector<1x6x5xf32> to vector<6x5xf32>
    %639 = vector.shape_cast %636 : vector<6x5xf32> to vector<1x6x5xf32>
    tpu.vector_store %arg13[%c5_723, %c0_724, %c30_725], %639 {strides = array<i32>} : memref<12x6x35xf32, #tpu.memory_space<vmem>>, vector<1x6x5xf32>,
    %640 = vector.extract_strided_slice %468 {offsets = [0, 7], sizes = [6, 5], strides = [1, 1]} : vector<6x98xf32> to vector<6x5xf32>
    %c6_726 = arith.constant 6 : index
    %c0_727 = arith.constant 0 : index
    %c0_728 = arith.constant 0 : index
    %641 = vector.load %arg13[%c6_726, %c0_727, %c0_728] : memref<12x6x35xf32, #tpu.memory_space<vmem>>, vector<1x6x5xf32>
    %642 = vector.shape_cast %641 : vector<1x6x5xf32> to vector<6x5xf32>
    %643 = vector.shape_cast %640 : vector<6x5xf32> to vector<1x6x5xf32>
    tpu.vector_store %arg13[%c6_726, %c0_727, %c0_728], %643 {strides = array<i32>} : memref<12x6x35xf32, #tpu.memory_space<vmem>>, vector<1x6x5xf32>,
    %644 = vector.extract_strided_slice %468 {offsets = [0, 21], sizes = [6, 5], strides = [1, 1]} : vector<6x98xf32> to vector<6x5xf32>
    %c6_729 = arith.constant 6 : index
    %c0_730 = arith.constant 0 : index
    %c5_731 = arith.constant 5 : index
    %645 = vector.load %arg13[%c6_729, %c0_730, %c5_731] : memref<12x6x35xf32, #tpu.memory_space<vmem>>, vector<1x6x5xf32>
    %646 = vector.shape_cast %645 : vector<1x6x5xf32> to vector<6x5xf32>
    %647 = vector.shape_cast %644 : vector<6x5xf32> to vector<1x6x5xf32>
    tpu.vector_store %arg13[%c6_729, %c0_730, %c5_731], %647 {strides = array<i32>} : memref<12x6x35xf32, #tpu.memory_space<vmem>>, vector<1x6x5xf32>,
    %648 = vector.extract_strided_slice %468 {offsets = [0, 35], sizes = [6, 5], strides = [1, 1]} : vector<6x98xf32> to vector<6x5xf32>
    %c6_732 = arith.constant 6 : index
    %c0_733 = arith.constant 0 : index
    %c10_734 = arith.constant 10 : index
    %649 = vector.load %arg13[%c6_732, %c0_733, %c10_734] : memref<12x6x35xf32, #tpu.memory_space<vmem>>, vector<1x6x5xf32>
    %650 = vector.shape_cast %649 : vector<1x6x5xf32> to vector<6x5xf32>
    %651 = vector.shape_cast %648 : vector<6x5xf32> to vector<1x6x5xf32>
    tpu.vector_store %arg13[%c6_732, %c0_733, %c10_734], %651 {strides = array<i32>} : memref<12x6x35xf32, #tpu.memory_space<vmem>>, vector<1x6x5xf32>,
    %652 = vector.extract_strided_slice %468 {offsets = [0, 49], sizes = [6, 5], strides = [1, 1]} : vector<6x98xf32> to vector<6x5xf32>
    %c6_735 = arith.constant 6 : index
    %c0_736 = arith.constant 0 : index
    %c15_737 = arith.constant 15 : index
    %653 = vector.load %arg13[%c6_735, %c0_736, %c15_737] : memref<12x6x35xf32, #tpu.memory_space<vmem>>, vector<1x6x5xf32>
    %654 = vector.shape_cast %653 : vector<1x6x5xf32> to vector<6x5xf32>
    %655 = vector.shape_cast %652 : vector<6x5xf32> to vector<1x6x5xf32>
    tpu.vector_store %arg13[%c6_735, %c0_736, %c15_737], %655 {strides = array<i32>} : memref<12x6x35xf32, #tpu.memory_space<vmem>>, vector<1x6x5xf32>,
    %656 = vector.extract_strided_slice %468 {offsets = [0, 63], sizes = [6, 5], strides = [1, 1]} : vector<6x98xf32> to vector<6x5xf32>
    %c6_738 = arith.constant 6 : index
    %c0_739 = arith.constant 0 : index
    %c20_740 = arith.constant 20 : index
    %657 = vector.load %arg13[%c6_738, %c0_739, %c20_740] : memref<12x6x35xf32, #tpu.memory_space<vmem>>, vector<1x6x5xf32>
    %658 = vector.shape_cast %657 : vector<1x6x5xf32> to vector<6x5xf32>
    %659 = vector.shape_cast %656 : vector<6x5xf32> to vector<1x6x5xf32>
    tpu.vector_store %arg13[%c6_738, %c0_739, %c20_740], %659 {strides = array<i32>} : memref<12x6x35xf32, #tpu.memory_space<vmem>>, vector<1x6x5xf32>,
    %660 = vector.extract_strided_slice %468 {offsets = [0, 77], sizes = [6, 5], strides = [1, 1]} : vector<6x98xf32> to vector<6x5xf32>
    %c6_741 = arith.constant 6 : index
    %c0_742 = arith.constant 0 : index
    %c25_743 = arith.constant 25 : index
    %661 = vector.load %arg13[%c6_741, %c0_742, %c25_743] : memref<12x6x35xf32, #tpu.memory_space<vmem>>, vector<1x6x5xf32>
    %662 = vector.shape_cast %661 : vector<1x6x5xf32> to vector<6x5xf32>
    %663 = vector.shape_cast %660 : vector<6x5xf32> to vector<1x6x5xf32>
    tpu.vector_store %arg13[%c6_741, %c0_742, %c25_743], %663 {strides = array<i32>} : memref<12x6x35xf32, #tpu.memory_space<vmem>>, vector<1x6x5xf32>,
    %664 = vector.extract_strided_slice %468 {offsets = [0, 91], sizes = [6, 5], strides = [1, 1]} : vector<6x98xf32> to vector<6x5xf32>
    %c6_744 = arith.constant 6 : index
    %c0_745 = arith.constant 0 : index
    %c30_746 = arith.constant 30 : index
    %665 = vector.load %arg13[%c6_744, %c0_745, %c30_746] : memref<12x6x35xf32, #tpu.memory_space<vmem>>, vector<1x6x5xf32>
    %666 = vector.shape_cast %665 : vector<1x6x5xf32> to vector<6x5xf32>
    %667 = vector.shape_cast %664 : vector<6x5xf32> to vector<1x6x5xf32>
    tpu.vector_store %arg13[%c6_744, %c0_745, %c30_746], %667 {strides = array<i32>} : memref<12x6x35xf32, #tpu.memory_space<vmem>>, vector<1x6x5xf32>,
    %668 = vector.extract_strided_slice %468 {offsets = [0, 8], sizes = [6, 5], strides = [1, 1]} : vector<6x98xf32> to vector<6x5xf32>
    %c7_747 = arith.constant 7 : index
    %c0_748 = arith.constant 0 : index
    %c0_749 = arith.constant 0 : index
    %669 = vector.load %arg13[%c7_747, %c0_748, %c0_749] : memref<12x6x35xf32, #tpu.memory_space<vmem>>, vector<1x6x5xf32>
    %670 = vector.shape_cast %669 : vector<1x6x5xf32> to vector<6x5xf32>
    %671 = vector.shape_cast %668 : vector<6x5xf32> to vector<1x6x5xf32>
    tpu.vector_store %arg13[%c7_747, %c0_748, %c0_749], %671 {strides = array<i32>} : memref<12x6x35xf32, #tpu.memory_space<vmem>>, vector<1x6x5xf32>,
    %672 = vector.extract_strided_slice %468 {offsets = [0, 22], sizes = [6, 5], strides = [1, 1]} : vector<6x98xf32> to vector<6x5xf32>
    %c7_750 = arith.constant 7 : index
    %c0_751 = arith.constant 0 : index
    %c5_752 = arith.constant 5 : index
    %673 = vector.load %arg13[%c7_750, %c0_751, %c5_752] : memref<12x6x35xf32, #tpu.memory_space<vmem>>, vector<1x6x5xf32>
    %674 = vector.shape_cast %673 : vector<1x6x5xf32> to vector<6x5xf32>
    %675 = vector.shape_cast %672 : vector<6x5xf32> to vector<1x6x5xf32>
    tpu.vector_store %arg13[%c7_750, %c0_751, %c5_752], %675 {strides = array<i32>} : memref<12x6x35xf32, #tpu.memory_space<vmem>>, vector<1x6x5xf32>,
    %676 = vector.extract_strided_slice %468 {offsets = [0, 36], sizes = [6, 5], strides = [1, 1]} : vector<6x98xf32> to vector<6x5xf32>
    %c7_753 = arith.constant 7 : index
    %c0_754 = arith.constant 0 : index
    %c10_755 = arith.constant 10 : index
    %677 = vector.load %arg13[%c7_753, %c0_754, %c10_755] : memref<12x6x35xf32, #tpu.memory_space<vmem>>, vector<1x6x5xf32>
    %678 = vector.shape_cast %677 : vector<1x6x5xf32> to vector<6x5xf32>
    %679 = vector.shape_cast %676 : vector<6x5xf32> to vector<1x6x5xf32>
    tpu.vector_store %arg13[%c7_753, %c0_754, %c10_755], %679 {strides = array<i32>} : memref<12x6x35xf32, #tpu.memory_space<vmem>>, vector<1x6x5xf32>,
    %680 = vector.extract_strided_slice %468 {offsets = [0, 50], sizes = [6, 5], strides = [1, 1]} : vector<6x98xf32> to vector<6x5xf32>
    %c7_756 = arith.constant 7 : index
    %c0_757 = arith.constant 0 : index
    %c15_758 = arith.constant 15 : index
    %681 = vector.load %arg13[%c7_756, %c0_757, %c15_758] : memref<12x6x35xf32, #tpu.memory_space<vmem>>, vector<1x6x5xf32>
    %682 = vector.shape_cast %681 : vector<1x6x5xf32> to vector<6x5xf32>
    %683 = vector.shape_cast %680 : vector<6x5xf32> to vector<1x6x5xf32>
    tpu.vector_store %arg13[%c7_756, %c0_757, %c15_758], %683 {strides = array<i32>} : memref<12x6x35xf32, #tpu.memory_space<vmem>>, vector<1x6x5xf32>,
    %684 = vector.extract_strided_slice %468 {offsets = [0, 64], sizes = [6, 5], strides = [1, 1]} : vector<6x98xf32> to vector<6x5xf32>
    %c7_759 = arith.constant 7 : index
    %c0_760 = arith.constant 0 : index
    %c20_761 = arith.constant 20 : index
    %685 = vector.load %arg13[%c7_759, %c0_760, %c20_761] : memref<12x6x35xf32, #tpu.memory_space<vmem>>, vector<1x6x5xf32>
    %686 = vector.shape_cast %685 : vector<1x6x5xf32> to vector<6x5xf32>
    %687 = vector.shape_cast %684 : vector<6x5xf32> to vector<1x6x5xf32>
    tpu.vector_store %arg13[%c7_759, %c0_760, %c20_761], %687 {strides = array<i32>} : memref<12x6x35xf32, #tpu.memory_space<vmem>>, vector<1x6x5xf32>,
    %688 = vector.extract_strided_slice %468 {offsets = [0, 78], sizes = [6, 5], strides = [1, 1]} : vector<6x98xf32> to vector<6x5xf32>
    %c7_762 = arith.constant 7 : index
    %c0_763 = arith.constant 0 : index
    %c25_764 = arith.constant 25 : index
    %689 = vector.load %arg13[%c7_762, %c0_763, %c25_764] : memref<12x6x35xf32, #tpu.memory_space<vmem>>, vector<1x6x5xf32>
    %690 = vector.shape_cast %689 : vector<1x6x5xf32> to vector<6x5xf32>
    %691 = vector.shape_cast %688 : vector<6x5xf32> to vector<1x6x5xf32>
    tpu.vector_store %arg13[%c7_762, %c0_763, %c25_764], %691 {strides = array<i32>} : memref<12x6x35xf32, #tpu.memory_space<vmem>>, vector<1x6x5xf32>,
    %692 = vector.extract_strided_slice %468 {offsets = [0, 92], sizes = [6, 5], strides = [1, 1]} : vector<6x98xf32> to vector<6x5xf32>
    %c7_765 = arith.constant 7 : index
    %c0_766 = arith.constant 0 : index
    %c30_767 = arith.constant 30 : index
    %693 = vector.load %arg13[%c7_765, %c0_766, %c30_767] : memref<12x6x35xf32, #tpu.memory_space<vmem>>, vector<1x6x5xf32>
    %694 = vector.shape_cast %693 : vector<1x6x5xf32> to vector<6x5xf32>
    %695 = vector.shape_cast %692 : vector<6x5xf32> to vector<1x6x5xf32>
    tpu.vector_store %arg13[%c7_765, %c0_766, %c30_767], %695 {strides = array<i32>} : memref<12x6x35xf32, #tpu.memory_space<vmem>>, vector<1x6x5xf32>,
    %696 = vector.extract_strided_slice %468 {offsets = [0, 9], sizes = [6, 5], strides = [1, 1]} : vector<6x98xf32> to vector<6x5xf32>
    %c8_768 = arith.constant 8 : index
    %c0_769 = arith.constant 0 : index
    %c0_770 = arith.constant 0 : index
    %697 = vector.load %arg13[%c8_768, %c0_769, %c0_770] : memref<12x6x35xf32, #tpu.memory_space<vmem>>, vector<1x6x5xf32>
    %698 = vector.shape_cast %697 : vector<1x6x5xf32> to vector<6x5xf32>
    %699 = vector.shape_cast %696 : vector<6x5xf32> to vector<1x6x5xf32>
    tpu.vector_store %arg13[%c8_768, %c0_769, %c0_770], %699 {strides = array<i32>} : memref<12x6x35xf32, #tpu.memory_space<vmem>>, vector<1x6x5xf32>,
    %700 = vector.extract_strided_slice %468 {offsets = [0, 23], sizes = [6, 5], strides = [1, 1]} : vector<6x98xf32> to vector<6x5xf32>
    %c8_771 = arith.constant 8 : index
    %c0_772 = arith.constant 0 : index
    %c5_773 = arith.constant 5 : index
    %701 = vector.load %arg13[%c8_771, %c0_772, %c5_773] : memref<12x6x35xf32, #tpu.memory_space<vmem>>, vector<1x6x5xf32>
    %702 = vector.shape_cast %701 : vector<1x6x5xf32> to vector<6x5xf32>
    %703 = vector.shape_cast %700 : vector<6x5xf32> to vector<1x6x5xf32>
    tpu.vector_store %arg13[%c8_771, %c0_772, %c5_773], %703 {strides = array<i32>} : memref<12x6x35xf32, #tpu.memory_space<vmem>>, vector<1x6x5xf32>,
    %704 = vector.extract_strided_slice %468 {offsets = [0, 37], sizes = [6, 5], strides = [1, 1]} : vector<6x98xf32> to vector<6x5xf32>
    %c8_774 = arith.constant 8 : index
    %c0_775 = arith.constant 0 : index
    %c10_776 = arith.constant 10 : index
    %705 = vector.load %arg13[%c8_774, %c0_775, %c10_776] : memref<12x6x35xf32, #tpu.memory_space<vmem>>, vector<1x6x5xf32>
    %706 = vector.shape_cast %705 : vector<1x6x5xf32> to vector<6x5xf32>
    %707 = vector.shape_cast %704 : vector<6x5xf32> to vector<1x6x5xf32>
    tpu.vector_store %arg13[%c8_774, %c0_775, %c10_776], %707 {strides = array<i32>} : memref<12x6x35xf32, #tpu.memory_space<vmem>>, vector<1x6x5xf32>,
    %708 = vector.extract_strided_slice %468 {offsets = [0, 51], sizes = [6, 5], strides = [1, 1]} : vector<6x98xf32> to vector<6x5xf32>
    %c8_777 = arith.constant 8 : index
    %c0_778 = arith.constant 0 : index
    %c15_779 = arith.constant 15 : index
    %709 = vector.load %arg13[%c8_777, %c0_778, %c15_779] : memref<12x6x35xf32, #tpu.memory_space<vmem>>, vector<1x6x5xf32>
    %710 = vector.shape_cast %709 : vector<1x6x5xf32> to vector<6x5xf32>
    %711 = vector.shape_cast %708 : vector<6x5xf32> to vector<1x6x5xf32>
    tpu.vector_store %arg13[%c8_777, %c0_778, %c15_779], %711 {strides = array<i32>} : memref<12x6x35xf32, #tpu.memory_space<vmem>>, vector<1x6x5xf32>,
    %712 = vector.extract_strided_slice %468 {offsets = [0, 65], sizes = [6, 5], strides = [1, 1]} : vector<6x98xf32> to vector<6x5xf32>
    %c8_780 = arith.constant 8 : index
    %c0_781 = arith.constant 0 : index
    %c20_782 = arith.constant 20 : index
    %713 = vector.load %arg13[%c8_780, %c0_781, %c20_782] : memref<12x6x35xf32, #tpu.memory_space<vmem>>, vector<1x6x5xf32>
    %714 = vector.shape_cast %713 : vector<1x6x5xf32> to vector<6x5xf32>
    %715 = vector.shape_cast %712 : vector<6x5xf32> to vector<1x6x5xf32>
    tpu.vector_store %arg13[%c8_780, %c0_781, %c20_782], %715 {strides = array<i32>} : memref<12x6x35xf32, #tpu.memory_space<vmem>>, vector<1x6x5xf32>,
    %716 = vector.extract_strided_slice %468 {offsets = [0, 79], sizes = [6, 5], strides = [1, 1]} : vector<6x98xf32> to vector<6x5xf32>
    %c8_783 = arith.constant 8 : index
    %c0_784 = arith.constant 0 : index
    %c25_785 = arith.constant 25 : index
    %717 = vector.load %arg13[%c8_783, %c0_784, %c25_785] : memref<12x6x35xf32, #tpu.memory_space<vmem>>, vector<1x6x5xf32>
    %718 = vector.shape_cast %717 : vector<1x6x5xf32> to vector<6x5xf32>
    %719 = vector.shape_cast %716 : vector<6x5xf32> to vector<1x6x5xf32>
    tpu.vector_store %arg13[%c8_783, %c0_784, %c25_785], %719 {strides = array<i32>} : memref<12x6x35xf32, #tpu.memory_space<vmem>>, vector<1x6x5xf32>,
    %720 = vector.extract_strided_slice %468 {offsets = [0, 93], sizes = [6, 5], strides = [1, 1]} : vector<6x98xf32> to vector<6x5xf32>
    %c8_786 = arith.constant 8 : index
    %c0_787 = arith.constant 0 : index
    %c30_788 = arith.constant 30 : index
    %721 = vector.load %arg13[%c8_786, %c0_787, %c30_788] : memref<12x6x35xf32, #tpu.memory_space<vmem>>, vector<1x6x5xf32>
    %722 = vector.shape_cast %721 : vector<1x6x5xf32> to vector<6x5xf32>
    %723 = vector.shape_cast %720 : vector<6x5xf32> to vector<1x6x5xf32>
    tpu.vector_store %arg13[%c8_786, %c0_787, %c30_788], %723 {strides = array<i32>} : memref<12x6x35xf32, #tpu.memory_space<vmem>>, vector<1x6x5xf32>,
    %724 = vector.extract_strided_slice %471 {offsets = [0, 7], sizes = [6, 5], strides = [1, 1]} : vector<6x98xf32> to vector<6x5xf32>
    %c9_789 = arith.constant 9 : index
    %c0_790 = arith.constant 0 : index
    %c0_791 = arith.constant 0 : index
    %725 = vector.load %arg13[%c9_789, %c0_790, %c0_791] : memref<12x6x35xf32, #tpu.memory_space<vmem>>, vector<1x6x5xf32>
    %726 = vector.shape_cast %725 : vector<1x6x5xf32> to vector<6x5xf32>
    %727 = vector.shape_cast %724 : vector<6x5xf32> to vector<1x6x5xf32>
    tpu.vector_store %arg13[%c9_789, %c0_790, %c0_791], %727 {strides = array<i32>} : memref<12x6x35xf32, #tpu.memory_space<vmem>>, vector<1x6x5xf32>,
    %728 = vector.extract_strided_slice %471 {offsets = [0, 21], sizes = [6, 5], strides = [1, 1]} : vector<6x98xf32> to vector<6x5xf32>
    %c9_792 = arith.constant 9 : index
    %c0_793 = arith.constant 0 : index
    %c5_794 = arith.constant 5 : index
    %729 = vector.load %arg13[%c9_792, %c0_793, %c5_794] : memref<12x6x35xf32, #tpu.memory_space<vmem>>, vector<1x6x5xf32>
    %730 = vector.shape_cast %729 : vector<1x6x5xf32> to vector<6x5xf32>
    %731 = vector.shape_cast %728 : vector<6x5xf32> to vector<1x6x5xf32>
    tpu.vector_store %arg13[%c9_792, %c0_793, %c5_794], %731 {strides = array<i32>} : memref<12x6x35xf32, #tpu.memory_space<vmem>>, vector<1x6x5xf32>,
    %732 = vector.extract_strided_slice %471 {offsets = [0, 35], sizes = [6, 5], strides = [1, 1]} : vector<6x98xf32> to vector<6x5xf32>
    %c9_795 = arith.constant 9 : index
    %c0_796 = arith.constant 0 : index
    %c10_797 = arith.constant 10 : index
    %733 = vector.load %arg13[%c9_795, %c0_796, %c10_797] : memref<12x6x35xf32, #tpu.memory_space<vmem>>, vector<1x6x5xf32>
    %734 = vector.shape_cast %733 : vector<1x6x5xf32> to vector<6x5xf32>
    %735 = vector.shape_cast %732 : vector<6x5xf32> to vector<1x6x5xf32>
    tpu.vector_store %arg13[%c9_795, %c0_796, %c10_797], %735 {strides = array<i32>} : memref<12x6x35xf32, #tpu.memory_space<vmem>>, vector<1x6x5xf32>,
    %736 = vector.extract_strided_slice %471 {offsets = [0, 49], sizes = [6, 5], strides = [1, 1]} : vector<6x98xf32> to vector<6x5xf32>
    %c9_798 = arith.constant 9 : index
    %c0_799 = arith.constant 0 : index
    %c15_800 = arith.constant 15 : index
    %737 = vector.load %arg13[%c9_798, %c0_799, %c15_800] : memref<12x6x35xf32, #tpu.memory_space<vmem>>, vector<1x6x5xf32>
    %738 = vector.shape_cast %737 : vector<1x6x5xf32> to vector<6x5xf32>
    %739 = vector.shape_cast %736 : vector<6x5xf32> to vector<1x6x5xf32>
    tpu.vector_store %arg13[%c9_798, %c0_799, %c15_800], %739 {strides = array<i32>} : memref<12x6x35xf32, #tpu.memory_space<vmem>>, vector<1x6x5xf32>,
    %740 = vector.extract_strided_slice %471 {offsets = [0, 63], sizes = [6, 5], strides = [1, 1]} : vector<6x98xf32> to vector<6x5xf32>
    %c9_801 = arith.constant 9 : index
    %c0_802 = arith.constant 0 : index
    %c20_803 = arith.constant 20 : index
    %741 = vector.load %arg13[%c9_801, %c0_802, %c20_803] : memref<12x6x35xf32, #tpu.memory_space<vmem>>, vector<1x6x5xf32>
    %742 = vector.shape_cast %741 : vector<1x6x5xf32> to vector<6x5xf32>
    %743 = vector.shape_cast %740 : vector<6x5xf32> to vector<1x6x5xf32>
    tpu.vector_store %arg13[%c9_801, %c0_802, %c20_803], %743 {strides = array<i32>} : memref<12x6x35xf32, #tpu.memory_space<vmem>>, vector<1x6x5xf32>,
    %744 = vector.extract_strided_slice %471 {offsets = [0, 77], sizes = [6, 5], strides = [1, 1]} : vector<6x98xf32> to vector<6x5xf32>
    %c9_804 = arith.constant 9 : index
    %c0_805 = arith.constant 0 : index
    %c25_806 = arith.constant 25 : index
    %745 = vector.load %arg13[%c9_804, %c0_805, %c25_806] : memref<12x6x35xf32, #tpu.memory_space<vmem>>, vector<1x6x5xf32>
    %746 = vector.shape_cast %745 : vector<1x6x5xf32> to vector<6x5xf32>
    %747 = vector.shape_cast %744 : vector<6x5xf32> to vector<1x6x5xf32>
    tpu.vector_store %arg13[%c9_804, %c0_805, %c25_806], %747 {strides = array<i32>} : memref<12x6x35xf32, #tpu.memory_space<vmem>>, vector<1x6x5xf32>,
    %748 = vector.extract_strided_slice %471 {offsets = [0, 91], sizes = [6, 5], strides = [1, 1]} : vector<6x98xf32> to vector<6x5xf32>
    %c9_807 = arith.constant 9 : index
    %c0_808 = arith.constant 0 : index
    %c30_809 = arith.constant 30 : index
    %749 = vector.load %arg13[%c9_807, %c0_808, %c30_809] : memref<12x6x35xf32, #tpu.memory_space<vmem>>, vector<1x6x5xf32>
    %750 = vector.shape_cast %749 : vector<1x6x5xf32> to vector<6x5xf32>
    %751 = vector.shape_cast %748 : vector<6x5xf32> to vector<1x6x5xf32>
    tpu.vector_store %arg13[%c9_807, %c0_808, %c30_809], %751 {strides = array<i32>} : memref<12x6x35xf32, #tpu.memory_space<vmem>>, vector<1x6x5xf32>,
    %752 = vector.extract_strided_slice %471 {offsets = [0, 8], sizes = [6, 5], strides = [1, 1]} : vector<6x98xf32> to vector<6x5xf32>
    %c10_810 = arith.constant 10 : index
    %c0_811 = arith.constant 0 : index
    %c0_812 = arith.constant 0 : index
    %753 = vector.load %arg13[%c10_810, %c0_811, %c0_812] : memref<12x6x35xf32, #tpu.memory_space<vmem>>, vector<1x6x5xf32>
    %754 = vector.shape_cast %753 : vector<1x6x5xf32> to vector<6x5xf32>
    %755 = vector.shape_cast %752 : vector<6x5xf32> to vector<1x6x5xf32>
    tpu.vector_store %arg13[%c10_810, %c0_811, %c0_812], %755 {strides = array<i32>} : memref<12x6x35xf32, #tpu.memory_space<vmem>>, vector<1x6x5xf32>,
    %756 = vector.extract_strided_slice %471 {offsets = [0, 22], sizes = [6, 5], strides = [1, 1]} : vector<6x98xf32> to vector<6x5xf32>
    %c10_813 = arith.constant 10 : index
    %c0_814 = arith.constant 0 : index
    %c5_815 = arith.constant 5 : index
    %757 = vector.load %arg13[%c10_813, %c0_814, %c5_815] : memref<12x6x35xf32, #tpu.memory_space<vmem>>, vector<1x6x5xf32>
    %758 = vector.shape_cast %757 : vector<1x6x5xf32> to vector<6x5xf32>
    %759 = vector.shape_cast %756 : vector<6x5xf32> to vector<1x6x5xf32>
    tpu.vector_store %arg13[%c10_813, %c0_814, %c5_815], %759 {strides = array<i32>} : memref<12x6x35xf32, #tpu.memory_space<vmem>>, vector<1x6x5xf32>,
    %760 = vector.extract_strided_slice %471 {offsets = [0, 36], sizes = [6, 5], strides = [1, 1]} : vector<6x98xf32> to vector<6x5xf32>
    %c10_816 = arith.constant 10 : index
    %c0_817 = arith.constant 0 : index
    %c10_818 = arith.constant 10 : index
    %761 = vector.load %arg13[%c10_816, %c0_817, %c10_818] : memref<12x6x35xf32, #tpu.memory_space<vmem>>, vector<1x6x5xf32>
    %762 = vector.shape_cast %761 : vector<1x6x5xf32> to vector<6x5xf32>
    %763 = vector.shape_cast %760 : vector<6x5xf32> to vector<1x6x5xf32>
    tpu.vector_store %arg13[%c10_816, %c0_817, %c10_818], %763 {strides = array<i32>} : memref<12x6x35xf32, #tpu.memory_space<vmem>>, vector<1x6x5xf32>,
    %764 = vector.extract_strided_slice %471 {offsets = [0, 50], sizes = [6, 5], strides = [1, 1]} : vector<6x98xf32> to vector<6x5xf32>
    %c10_819 = arith.constant 10 : index
    %c0_820 = arith.constant 0 : index
    %c15_821 = arith.constant 15 : index
    %765 = vector.load %arg13[%c10_819, %c0_820, %c15_821] : memref<12x6x35xf32, #tpu.memory_space<vmem>>, vector<1x6x5xf32>
    %766 = vector.shape_cast %765 : vector<1x6x5xf32> to vector<6x5xf32>
    %767 = vector.shape_cast %764 : vector<6x5xf32> to vector<1x6x5xf32>
    tpu.vector_store %arg13[%c10_819, %c0_820, %c15_821], %767 {strides = array<i32>} : memref<12x6x35xf32, #tpu.memory_space<vmem>>, vector<1x6x5xf32>,
    %768 = vector.extract_strided_slice %471 {offsets = [0, 64], sizes = [6, 5], strides = [1, 1]} : vector<6x98xf32> to vector<6x5xf32>
    %c10_822 = arith.constant 10 : index
    %c0_823 = arith.constant 0 : index
    %c20_824 = arith.constant 20 : index
    %769 = vector.load %arg13[%c10_822, %c0_823, %c20_824] : memref<12x6x35xf32, #tpu.memory_space<vmem>>, vector<1x6x5xf32>
    %770 = vector.shape_cast %769 : vector<1x6x5xf32> to vector<6x5xf32>
    %771 = vector.shape_cast %768 : vector<6x5xf32> to vector<1x6x5xf32>
    tpu.vector_store %arg13[%c10_822, %c0_823, %c20_824], %771 {strides = array<i32>} : memref<12x6x35xf32, #tpu.memory_space<vmem>>, vector<1x6x5xf32>,
    %772 = vector.extract_strided_slice %471 {offsets = [0, 78], sizes = [6, 5], strides = [1, 1]} : vector<6x98xf32> to vector<6x5xf32>
    %c10_825 = arith.constant 10 : index
    %c0_826 = arith.constant 0 : index
    %c25_827 = arith.constant 25 : index
    %773 = vector.load %arg13[%c10_825, %c0_826, %c25_827] : memref<12x6x35xf32, #tpu.memory_space<vmem>>, vector<1x6x5xf32>
    %774 = vector.shape_cast %773 : vector<1x6x5xf32> to vector<6x5xf32>
    %775 = vector.shape_cast %772 : vector<6x5xf32> to vector<1x6x5xf32>
    tpu.vector_store %arg13[%c10_825, %c0_826, %c25_827], %775 {strides = array<i32>} : memref<12x6x35xf32, #tpu.memory_space<vmem>>, vector<1x6x5xf32>,
    %776 = vector.extract_strided_slice %471 {offsets = [0, 92], sizes = [6, 5], strides = [1, 1]} : vector<6x98xf32> to vector<6x5xf32>
    %c10_828 = arith.constant 10 : index
    %c0_829 = arith.constant 0 : index
    %c30_830 = arith.constant 30 : index
    %777 = vector.load %arg13[%c10_828, %c0_829, %c30_830] : memref<12x6x35xf32, #tpu.memory_space<vmem>>, vector<1x6x5xf32>
    %778 = vector.shape_cast %777 : vector<1x6x5xf32> to vector<6x5xf32>
    %779 = vector.shape_cast %776 : vector<6x5xf32> to vector<1x6x5xf32>
    tpu.vector_store %arg13[%c10_828, %c0_829, %c30_830], %779 {strides = array<i32>} : memref<12x6x35xf32, #tpu.memory_space<vmem>>, vector<1x6x5xf32>,
    %780 = vector.extract_strided_slice %471 {offsets = [0, 9], sizes = [6, 5], strides = [1, 1]} : vector<6x98xf32> to vector<6x5xf32>
    %c11_831 = arith.constant 11 : index
    %c0_832 = arith.constant 0 : index
    %c0_833 = arith.constant 0 : index
    %781 = vector.load %arg13[%c11_831, %c0_832, %c0_833] : memref<12x6x35xf32, #tpu.memory_space<vmem>>, vector<1x6x5xf32>
    %782 = vector.shape_cast %781 : vector<1x6x5xf32> to vector<6x5xf32>
    %783 = vector.shape_cast %780 : vector<6x5xf32> to vector<1x6x5xf32>
    tpu.vector_store %arg13[%c11_831, %c0_832, %c0_833], %783 {strides = array<i32>} : memref<12x6x35xf32, #tpu.memory_space<vmem>>, vector<1x6x5xf32>,
    %784 = vector.extract_strided_slice %471 {offsets = [0, 23], sizes = [6, 5], strides = [1, 1]} : vector<6x98xf32> to vector<6x5xf32>
    %c11_834 = arith.constant 11 : index
    %c0_835 = arith.constant 0 : index
    %c5_836 = arith.constant 5 : index
    %785 = vector.load %arg13[%c11_834, %c0_835, %c5_836] : memref<12x6x35xf32, #tpu.memory_space<vmem>>, vector<1x6x5xf32>
    %786 = vector.shape_cast %785 : vector<1x6x5xf32> to vector<6x5xf32>
    %787 = vector.shape_cast %784 : vector<6x5xf32> to vector<1x6x5xf32>
    tpu.vector_store %arg13[%c11_834, %c0_835, %c5_836], %787 {strides = array<i32>} : memref<12x6x35xf32, #tpu.memory_space<vmem>>, vector<1x6x5xf32>,
    %788 = vector.extract_strided_slice %471 {offsets = [0, 37], sizes = [6, 5], strides = [1, 1]} : vector<6x98xf32> to vector<6x5xf32>
    %c11_837 = arith.constant 11 : index
    %c0_838 = arith.constant 0 : index
    %c10_839 = arith.constant 10 : index
    %789 = vector.load %arg13[%c11_837, %c0_838, %c10_839] : memref<12x6x35xf32, #tpu.memory_space<vmem>>, vector<1x6x5xf32>
    %790 = vector.shape_cast %789 : vector<1x6x5xf32> to vector<6x5xf32>
    %791 = vector.shape_cast %788 : vector<6x5xf32> to vector<1x6x5xf32>
    tpu.vector_store %arg13[%c11_837, %c0_838, %c10_839], %791 {strides = array<i32>} : memref<12x6x35xf32, #tpu.memory_space<vmem>>, vector<1x6x5xf32>,
    %792 = vector.extract_strided_slice %471 {offsets = [0, 51], sizes = [6, 5], strides = [1, 1]} : vector<6x98xf32> to vector<6x5xf32>
    %c11_840 = arith.constant 11 : index
    %c0_841 = arith.constant 0 : index
    %c15_842 = arith.constant 15 : index
    %793 = vector.load %arg13[%c11_840, %c0_841, %c15_842] : memref<12x6x35xf32, #tpu.memory_space<vmem>>, vector<1x6x5xf32>
    %794 = vector.shape_cast %793 : vector<1x6x5xf32> to vector<6x5xf32>
    %795 = vector.shape_cast %792 : vector<6x5xf32> to vector<1x6x5xf32>
    tpu.vector_store %arg13[%c11_840, %c0_841, %c15_842], %795 {strides = array<i32>} : memref<12x6x35xf32, #tpu.memory_space<vmem>>, vector<1x6x5xf32>,
    %796 = vector.extract_strided_slice %471 {offsets = [0, 65], sizes = [6, 5], strides = [1, 1]} : vector<6x98xf32> to vector<6x5xf32>
    %c11_843 = arith.constant 11 : index
    %c0_844 = arith.constant 0 : index
    %c20_845 = arith.constant 20 : index
    %797 = vector.load %arg13[%c11_843, %c0_844, %c20_845] : memref<12x6x35xf32, #tpu.memory_space<vmem>>, vector<1x6x5xf32>
    %798 = vector.shape_cast %797 : vector<1x6x5xf32> to vector<6x5xf32>
    %799 = vector.shape_cast %796 : vector<6x5xf32> to vector<1x6x5xf32>
    tpu.vector_store %arg13[%c11_843, %c0_844, %c20_845], %799 {strides = array<i32>} : memref<12x6x35xf32, #tpu.memory_space<vmem>>, vector<1x6x5xf32>,
    %800 = vector.extract_strided_slice %471 {offsets = [0, 79], sizes = [6, 5], strides = [1, 1]} : vector<6x98xf32> to vector<6x5xf32>
    %c11_846 = arith.constant 11 : index
    %c0_847 = arith.constant 0 : index
    %c25_848 = arith.constant 25 : index
    %801 = vector.load %arg13[%c11_846, %c0_847, %c25_848] : memref<12x6x35xf32, #tpu.memory_space<vmem>>, vector<1x6x5xf32>
    %802 = vector.shape_cast %801 : vector<1x6x5xf32> to vector<6x5xf32>
    %803 = vector.shape_cast %800 : vector<6x5xf32> to vector<1x6x5xf32>
    tpu.vector_store %arg13[%c11_846, %c0_847, %c25_848], %803 {strides = array<i32>} : memref<12x6x35xf32, #tpu.memory_space<vmem>>, vector<1x6x5xf32>,
    %804 = vector.extract_strided_slice %471 {offsets = [0, 93], sizes = [6, 5], strides = [1, 1]} : vector<6x98xf32> to vector<6x5xf32>
    %c11_849 = arith.constant 11 : index
    %c0_850 = arith.constant 0 : index
    %c30_851 = arith.constant 30 : index
    %805 = vector.load %arg13[%c11_849, %c0_850, %c30_851] : memref<12x6x35xf32, #tpu.memory_space<vmem>>, vector<1x6x5xf32>
    %806 = vector.shape_cast %805 : vector<1x6x5xf32> to vector<6x5xf32>
    %807 = vector.shape_cast %804 : vector<6x5xf32> to vector<1x6x5xf32>
    tpu.vector_store %arg13[%c11_849, %c0_850, %c30_851], %807 {strides = array<i32>} : memref<12x6x35xf32, #tpu.memory_space<vmem>>, vector<1x6x5xf32>,
    %c0_852 = arith.constant 0 : index
    %c0_853 = arith.constant 0 : index
    %808 = vector.load %arg4[%c0_852, %c0_853] : memref<16x150xf32, #tpu.memory_space<vmem>>, vector<16x150xf32>
    %c0_854 = arith.constant 0 : index
    %c0_855 = arith.constant 0 : index
    %809 = vector.load %arg5[%c0_854, %c0_855] : memref<16x1xf32, #tpu.memory_space<vmem>>, vector<16x1xf32>
    %c0_856 = arith.constant 0 : index
    %c0_857 = arith.constant 0 : index
    %c0_858 = arith.constant 0 : index
    %810 = vector.load %arg13[%c0_856, %c0_857, %c0_858] : memref<12x6x35xf32, #tpu.memory_space<vmem>>, vector<1x6x25xf32>
    %811 = vector.shape_cast %810 : vector<1x6x25xf32> to vector<6x25xf32>
    %c3_859 = arith.constant 3 : index
    %c0_860 = arith.constant 0 : index
    %c0_861 = arith.constant 0 : index
    %812 = vector.load %arg13[%c3_859, %c0_860, %c0_861] : memref<12x6x35xf32, #tpu.memory_space<vmem>>, vector<1x6x25xf32>
    %813 = vector.shape_cast %812 : vector<1x6x25xf32> to vector<6x25xf32>
    %c1_862 = arith.constant 1 : index
    %c0_863 = arith.constant 0 : index
    %c0_864 = arith.constant 0 : index
    %814 = vector.load %arg13[%c1_862, %c0_863, %c0_864] : memref<12x6x35xf32, #tpu.memory_space<vmem>>, vector<1x6x25xf32>
    %815 = vector.shape_cast %814 : vector<1x6x25xf32> to vector<6x25xf32>
    %c4_865 = arith.constant 4 : index
    %c0_866 = arith.constant 0 : index
    %c0_867 = arith.constant 0 : index
    %816 = vector.load %arg13[%c4_865, %c0_866, %c0_867] : memref<12x6x35xf32, #tpu.memory_space<vmem>>, vector<1x6x25xf32>
    %817 = vector.shape_cast %816 : vector<1x6x25xf32> to vector<6x25xf32>
    %c2_868 = arith.constant 2 : index
    %c0_869 = arith.constant 0 : index
    %c0_870 = arith.constant 0 : index
    %818 = vector.load %arg13[%c2_868, %c0_869, %c0_870] : memref<12x6x35xf32, #tpu.memory_space<vmem>>, vector<1x6x25xf32>
    %819 = vector.shape_cast %818 : vector<1x6x25xf32> to vector<6x25xf32>
    %c6_871 = arith.constant 6 : index
    %c0_872 = arith.constant 0 : index
    %c0_873 = arith.constant 0 : index
    %820 = vector.load %arg13[%c6_871, %c0_872, %c0_873] : memref<12x6x35xf32, #tpu.memory_space<vmem>>, vector<1x6x25xf32>
    %821 = vector.shape_cast %820 : vector<1x6x25xf32> to vector<6x25xf32>
    %c9_874 = arith.constant 9 : index
    %c0_875 = arith.constant 0 : index
    %c0_876 = arith.constant 0 : index
    %822 = vector.load %arg13[%c9_874, %c0_875, %c0_876] : memref<12x6x35xf32, #tpu.memory_space<vmem>>, vector<1x6x25xf32>
    %823 = vector.shape_cast %822 : vector<1x6x25xf32> to vector<6x25xf32>
    %c7_877 = arith.constant 7 : index
    %c0_878 = arith.constant 0 : index
    %c0_879 = arith.constant 0 : index
    %824 = vector.load %arg13[%c7_877, %c0_878, %c0_879] : memref<12x6x35xf32, #tpu.memory_space<vmem>>, vector<1x6x25xf32>
    %825 = vector.shape_cast %824 : vector<1x6x25xf32> to vector<6x25xf32>
    %c10_880 = arith.constant 10 : index
    %c0_881 = arith.constant 0 : index
    %c0_882 = arith.constant 0 : index
    %826 = vector.load %arg13[%c10_880, %c0_881, %c0_882] : memref<12x6x35xf32, #tpu.memory_space<vmem>>, vector<1x6x25xf32>
    %827 = vector.shape_cast %826 : vector<1x6x25xf32> to vector<6x25xf32>
    %c8_883 = arith.constant 8 : index
    %c0_884 = arith.constant 0 : index
    %c0_885 = arith.constant 0 : index
    %828 = vector.load %arg13[%c8_883, %c0_884, %c0_885] : memref<12x6x35xf32, #tpu.memory_space<vmem>>, vector<1x6x25xf32>
    %829 = vector.shape_cast %828 : vector<1x6x25xf32> to vector<6x25xf32>
    %c0_886 = arith.constant 0 : index
    %c0_887 = arith.constant 0 : index
    %c5_888 = arith.constant 5 : index
    %830 = vector.load %arg13[%c0_886, %c0_887, %c5_888] : memref<12x6x35xf32, #tpu.memory_space<vmem>>, vector<1x6x25xf32>
    %831 = vector.shape_cast %830 : vector<1x6x25xf32> to vector<6x25xf32>
    %c3_889 = arith.constant 3 : index
    %c0_890 = arith.constant 0 : index
    %c5_891 = arith.constant 5 : index
    %832 = vector.load %arg13[%c3_889, %c0_890, %c5_891] : memref<12x6x35xf32, #tpu.memory_space<vmem>>, vector<1x6x25xf32>
    %833 = vector.shape_cast %832 : vector<1x6x25xf32> to vector<6x25xf32>
    %c1_892 = arith.constant 1 : index
    %c0_893 = arith.constant 0 : index
    %c5_894 = arith.constant 5 : index
    %834 = vector.load %arg13[%c1_892, %c0_893, %c5_894] : memref<12x6x35xf32, #tpu.memory_space<vmem>>, vector<1x6x25xf32>
    %835 = vector.shape_cast %834 : vector<1x6x25xf32> to vector<6x25xf32>
    %c4_895 = arith.constant 4 : index
    %c0_896 = arith.constant 0 : index
    %c5_897 = arith.constant 5 : index
    %836 = vector.load %arg13[%c4_895, %c0_896, %c5_897] : memref<12x6x35xf32, #tpu.memory_space<vmem>>, vector<1x6x25xf32>
    %837 = vector.shape_cast %836 : vector<1x6x25xf32> to vector<6x25xf32>
    %c2_898 = arith.constant 2 : index
    %c0_899 = arith.constant 0 : index
    %c5_900 = arith.constant 5 : index
    %838 = vector.load %arg13[%c2_898, %c0_899, %c5_900] : memref<12x6x35xf32, #tpu.memory_space<vmem>>, vector<1x6x25xf32>
    %839 = vector.shape_cast %838 : vector<1x6x25xf32> to vector<6x25xf32>
    %c6_901 = arith.constant 6 : index
    %c0_902 = arith.constant 0 : index
    %c5_903 = arith.constant 5 : index
    %840 = vector.load %arg13[%c6_901, %c0_902, %c5_903] : memref<12x6x35xf32, #tpu.memory_space<vmem>>, vector<1x6x25xf32>
    %841 = vector.shape_cast %840 : vector<1x6x25xf32> to vector<6x25xf32>
    %c9_904 = arith.constant 9 : index
    %c0_905 = arith.constant 0 : index
    %c5_906 = arith.constant 5 : index
    %842 = vector.load %arg13[%c9_904, %c0_905, %c5_906] : memref<12x6x35xf32, #tpu.memory_space<vmem>>, vector<1x6x25xf32>
    %843 = vector.shape_cast %842 : vector<1x6x25xf32> to vector<6x25xf32>
    %c7_907 = arith.constant 7 : index
    %c0_908 = arith.constant 0 : index
    %c5_909 = arith.constant 5 : index
    %844 = vector.load %arg13[%c7_907, %c0_908, %c5_909] : memref<12x6x35xf32, #tpu.memory_space<vmem>>, vector<1x6x25xf32>
    %845 = vector.shape_cast %844 : vector<1x6x25xf32> to vector<6x25xf32>
    %c10_910 = arith.constant 10 : index
    %c0_911 = arith.constant 0 : index
    %c5_912 = arith.constant 5 : index
    %846 = vector.load %arg13[%c10_910, %c0_911, %c5_912] : memref<12x6x35xf32, #tpu.memory_space<vmem>>, vector<1x6x25xf32>
    %847 = vector.shape_cast %846 : vector<1x6x25xf32> to vector<6x25xf32>
    %c8_913 = arith.constant 8 : index
    %c0_914 = arith.constant 0 : index
    %c5_915 = arith.constant 5 : index
    %848 = vector.load %arg13[%c8_913, %c0_914, %c5_915] : memref<12x6x35xf32, #tpu.memory_space<vmem>>, vector<1x6x25xf32>
    %849 = vector.shape_cast %848 : vector<1x6x25xf32> to vector<6x25xf32>
    %c0_916 = arith.constant 0 : index
    %c0_917 = arith.constant 0 : index
    %c10_918 = arith.constant 10 : index
    %850 = vector.load %arg13[%c0_916, %c0_917, %c10_918] : memref<12x6x35xf32, #tpu.memory_space<vmem>>, vector<1x6x25xf32>
    %851 = vector.shape_cast %850 : vector<1x6x25xf32> to vector<6x25xf32>
    %c3_919 = arith.constant 3 : index
    %c0_920 = arith.constant 0 : index
    %c10_921 = arith.constant 10 : index
    %852 = vector.load %arg13[%c3_919, %c0_920, %c10_921] : memref<12x6x35xf32, #tpu.memory_space<vmem>>, vector<1x6x25xf32>
    %853 = vector.shape_cast %852 : vector<1x6x25xf32> to vector<6x25xf32>
    %c1_922 = arith.constant 1 : index
    %c0_923 = arith.constant 0 : index
    %c10_924 = arith.constant 10 : index
    %854 = vector.load %arg13[%c1_922, %c0_923, %c10_924] : memref<12x6x35xf32, #tpu.memory_space<vmem>>, vector<1x6x25xf32>
    %855 = vector.shape_cast %854 : vector<1x6x25xf32> to vector<6x25xf32>
    %c4_925 = arith.constant 4 : index
    %c0_926 = arith.constant 0 : index
    %c10_927 = arith.constant 10 : index
    %856 = vector.load %arg13[%c4_925, %c0_926, %c10_927] : memref<12x6x35xf32, #tpu.memory_space<vmem>>, vector<1x6x25xf32>
    %857 = vector.shape_cast %856 : vector<1x6x25xf32> to vector<6x25xf32>
    %c2_928 = arith.constant 2 : index
    %c0_929 = arith.constant 0 : index
    %c10_930 = arith.constant 10 : index
    %858 = vector.load %arg13[%c2_928, %c0_929, %c10_930] : memref<12x6x35xf32, #tpu.memory_space<vmem>>, vector<1x6x25xf32>
    %859 = vector.shape_cast %858 : vector<1x6x25xf32> to vector<6x25xf32>
    %860 = tpu.concatenate %811, %813, %815, %817, %819, %821, %823, %825, %827, %829, %831, %833, %835, %837, %839, %841 in 0 : vector<6x25xf32>, vector<6x25xf32>, vector<6x25xf32>, vector<6x25xf32>, vector<6x25xf32>, vector<6x25xf32>, vector<6x25xf32>, vector<6x25xf32>, vector<6x25xf32>, vector<6x25xf32>, vector<6x25xf32>, vector<6x25xf32>, vector<6x25xf32>, vector<6x25xf32>, vector<6x25xf32>, vector<6x25xf32> -> vector<96x25xf32>
    %861 = tpu.concatenate %843, %845, %847, %849, %851, %853, %855, %857, %859 in 0 : vector<6x25xf32>, vector<6x25xf32>, vector<6x25xf32>, vector<6x25xf32>, vector<6x25xf32>, vector<6x25xf32>, vector<6x25xf32>, vector<6x25xf32>, vector<6x25xf32> -> vector<54x25xf32>
    %862 = tpu.concatenate %860, %861 in 0 : vector<96x25xf32>, vector<54x25xf32> -> vector<150x25xf32>
    %cst_931 = arith.constant dense<0.000000e+00> : vector<16x25xf32>
    %863 = tpu.matmul %808, %862, %cst_931 {dimension_numbers = #tpu.dot_dimension_numbers<[1], [0], [0], [1], [0, 0, 1, 1], [], []>} : vector<16x150xf32>, vector<150x25xf32>, vector<16x25xf32> -> vector<16x25xf32>
    %864 = vector.broadcast %809 : vector<16x1xf32> to vector<16x25xf32>
    %865 = arith.addf %863, %864 : vector<16x25xf32>
    %cst_932 = arith.constant 0.000000e+00 : f32
    %866 = vector.broadcast %cst_932 : f32 to vector<16x25xf32>
    %867 = arith.maximumf %865, %866 : vector<16x25xf32>
    %c3_933 = arith.constant 3 : index
    %c0_934 = arith.constant 0 : index
    %c0_935 = arith.constant 0 : index
    %868 = vector.load %arg13[%c3_933, %c0_934, %c0_935] : memref<12x6x35xf32, #tpu.memory_space<vmem>>, vector<1x6x25xf32>
    %869 = vector.shape_cast %868 : vector<1x6x25xf32> to vector<6x25xf32>
    %c1_936 = arith.constant 1 : index
    %c0_937 = arith.constant 0 : index
    %c0_938 = arith.constant 0 : index
    %870 = vector.load %arg13[%c1_936, %c0_937, %c0_938] : memref<12x6x35xf32, #tpu.memory_space<vmem>>, vector<1x6x25xf32>
    %871 = vector.shape_cast %870 : vector<1x6x25xf32> to vector<6x25xf32>
    %c4_939 = arith.constant 4 : index
    %c0_940 = arith.constant 0 : index
    %c0_941 = arith.constant 0 : index
    %872 = vector.load %arg13[%c4_939, %c0_940, %c0_941] : memref<12x6x35xf32, #tpu.memory_space<vmem>>, vector<1x6x25xf32>
    %873 = vector.shape_cast %872 : vector<1x6x25xf32> to vector<6x25xf32>
    %c2_942 = arith.constant 2 : index
    %c0_943 = arith.constant 0 : index
    %c0_944 = arith.constant 0 : index
    %874 = vector.load %arg13[%c2_942, %c0_943, %c0_944] : memref<12x6x35xf32, #tpu.memory_space<vmem>>, vector<1x6x25xf32>
    %875 = vector.shape_cast %874 : vector<1x6x25xf32> to vector<6x25xf32>
    %c5_945 = arith.constant 5 : index
    %c0_946 = arith.constant 0 : index
    %c0_947 = arith.constant 0 : index
    %876 = vector.load %arg13[%c5_945, %c0_946, %c0_947] : memref<12x6x35xf32, #tpu.memory_space<vmem>>, vector<1x6x25xf32>
    %877 = vector.shape_cast %876 : vector<1x6x25xf32> to vector<6x25xf32>
    %c9_948 = arith.constant 9 : index
    %c0_949 = arith.constant 0 : index
    %c0_950 = arith.constant 0 : index
    %878 = vector.load %arg13[%c9_948, %c0_949, %c0_950] : memref<12x6x35xf32, #tpu.memory_space<vmem>>, vector<1x6x25xf32>
    %879 = vector.shape_cast %878 : vector<1x6x25xf32> to vector<6x25xf32>
    %c7_951 = arith.constant 7 : index
    %c0_952 = arith.constant 0 : index
    %c0_953 = arith.constant 0 : index
    %880 = vector.load %arg13[%c7_951, %c0_952, %c0_953] : memref<12x6x35xf32, #tpu.memory_space<vmem>>, vector<1x6x25xf32>
    %881 = vector.shape_cast %880 : vector<1x6x25xf32> to vector<6x25xf32>
    %c10_954 = arith.constant 10 : index
    %c0_955 = arith.constant 0 : index
    %c0_956 = arith.constant 0 : index
    %882 = vector.load %arg13[%c10_954, %c0_955, %c0_956] : memref<12x6x35xf32, #tpu.memory_space<vmem>>, vector<1x6x25xf32>
    %883 = vector.shape_cast %882 : vector<1x6x25xf32> to vector<6x25xf32>
    %c8_957 = arith.constant 8 : index
    %c0_958 = arith.constant 0 : index
    %c0_959 = arith.constant 0 : index
    %884 = vector.load %arg13[%c8_957, %c0_958, %c0_959] : memref<12x6x35xf32, #tpu.memory_space<vmem>>, vector<1x6x25xf32>
    %885 = vector.shape_cast %884 : vector<1x6x25xf32> to vector<6x25xf32>
    %c11_960 = arith.constant 11 : index
    %c0_961 = arith.constant 0 : index
    %c0_962 = arith.constant 0 : index
    %886 = vector.load %arg13[%c11_960, %c0_961, %c0_962] : memref<12x6x35xf32, #tpu.memory_space<vmem>>, vector<1x6x25xf32>
    %887 = vector.shape_cast %886 : vector<1x6x25xf32> to vector<6x25xf32>
    %c3_963 = arith.constant 3 : index
    %c0_964 = arith.constant 0 : index
    %c5_965 = arith.constant 5 : index
    %888 = vector.load %arg13[%c3_963, %c0_964, %c5_965] : memref<12x6x35xf32, #tpu.memory_space<vmem>>, vector<1x6x25xf32>
    %889 = vector.shape_cast %888 : vector<1x6x25xf32> to vector<6x25xf32>
    %c1_966 = arith.constant 1 : index
    %c0_967 = arith.constant 0 : index
    %c5_968 = arith.constant 5 : index
    %890 = vector.load %arg13[%c1_966, %c0_967, %c5_968] : memref<12x6x35xf32, #tpu.memory_space<vmem>>, vector<1x6x25xf32>
    %891 = vector.shape_cast %890 : vector<1x6x25xf32> to vector<6x25xf32>
    %c4_969 = arith.constant 4 : index
    %c0_970 = arith.constant 0 : index
    %c5_971 = arith.constant 5 : index
    %892 = vector.load %arg13[%c4_969, %c0_970, %c5_971] : memref<12x6x35xf32, #tpu.memory_space<vmem>>, vector<1x6x25xf32>
    %893 = vector.shape_cast %892 : vector<1x6x25xf32> to vector<6x25xf32>
    %c2_972 = arith.constant 2 : index
    %c0_973 = arith.constant 0 : index
    %c5_974 = arith.constant 5 : index
    %894 = vector.load %arg13[%c2_972, %c0_973, %c5_974] : memref<12x6x35xf32, #tpu.memory_space<vmem>>, vector<1x6x25xf32>
    %895 = vector.shape_cast %894 : vector<1x6x25xf32> to vector<6x25xf32>
    %c5_975 = arith.constant 5 : index
    %c0_976 = arith.constant 0 : index
    %c5_977 = arith.constant 5 : index
    %896 = vector.load %arg13[%c5_975, %c0_976, %c5_977] : memref<12x6x35xf32, #tpu.memory_space<vmem>>, vector<1x6x25xf32>
    %897 = vector.shape_cast %896 : vector<1x6x25xf32> to vector<6x25xf32>
    %c9_978 = arith.constant 9 : index
    %c0_979 = arith.constant 0 : index
    %c5_980 = arith.constant 5 : index
    %898 = vector.load %arg13[%c9_978, %c0_979, %c5_980] : memref<12x6x35xf32, #tpu.memory_space<vmem>>, vector<1x6x25xf32>
    %899 = vector.shape_cast %898 : vector<1x6x25xf32> to vector<6x25xf32>
    %c7_981 = arith.constant 7 : index
    %c0_982 = arith.constant 0 : index
    %c5_983 = arith.constant 5 : index
    %900 = vector.load %arg13[%c7_981, %c0_982, %c5_983] : memref<12x6x35xf32, #tpu.memory_space<vmem>>, vector<1x6x25xf32>
    %901 = vector.shape_cast %900 : vector<1x6x25xf32> to vector<6x25xf32>
    %c10_984 = arith.constant 10 : index
    %c0_985 = arith.constant 0 : index
    %c5_986 = arith.constant 5 : index
    %902 = vector.load %arg13[%c10_984, %c0_985, %c5_986] : memref<12x6x35xf32, #tpu.memory_space<vmem>>, vector<1x6x25xf32>
    %903 = vector.shape_cast %902 : vector<1x6x25xf32> to vector<6x25xf32>
    %c8_987 = arith.constant 8 : index
    %c0_988 = arith.constant 0 : index
    %c5_989 = arith.constant 5 : index
    %904 = vector.load %arg13[%c8_987, %c0_988, %c5_989] : memref<12x6x35xf32, #tpu.memory_space<vmem>>, vector<1x6x25xf32>
    %905 = vector.shape_cast %904 : vector<1x6x25xf32> to vector<6x25xf32>
    %c11_990 = arith.constant 11 : index
    %c0_991 = arith.constant 0 : index
    %c5_992 = arith.constant 5 : index
    %906 = vector.load %arg13[%c11_990, %c0_991, %c5_992] : memref<12x6x35xf32, #tpu.memory_space<vmem>>, vector<1x6x25xf32>
    %907 = vector.shape_cast %906 : vector<1x6x25xf32> to vector<6x25xf32>
    %c3_993 = arith.constant 3 : index
    %c0_994 = arith.constant 0 : index
    %c10_995 = arith.constant 10 : index
    %908 = vector.load %arg13[%c3_993, %c0_994, %c10_995] : memref<12x6x35xf32, #tpu.memory_space<vmem>>, vector<1x6x25xf32>
    %909 = vector.shape_cast %908 : vector<1x6x25xf32> to vector<6x25xf32>
    %c1_996 = arith.constant 1 : index
    %c0_997 = arith.constant 0 : index
    %c10_998 = arith.constant 10 : index
    %910 = vector.load %arg13[%c1_996, %c0_997, %c10_998] : memref<12x6x35xf32, #tpu.memory_space<vmem>>, vector<1x6x25xf32>
    %911 = vector.shape_cast %910 : vector<1x6x25xf32> to vector<6x25xf32>
    %c4_999 = arith.constant 4 : index
    %c0_1000 = arith.constant 0 : index
    %c10_1001 = arith.constant 10 : index
    %912 = vector.load %arg13[%c4_999, %c0_1000, %c10_1001] : memref<12x6x35xf32, #tpu.memory_space<vmem>>, vector<1x6x25xf32>
    %913 = vector.shape_cast %912 : vector<1x6x25xf32> to vector<6x25xf32>
    %c2_1002 = arith.constant 2 : index
    %c0_1003 = arith.constant 0 : index
    %c10_1004 = arith.constant 10 : index
    %914 = vector.load %arg13[%c2_1002, %c0_1003, %c10_1004] : memref<12x6x35xf32, #tpu.memory_space<vmem>>, vector<1x6x25xf32>
    %915 = vector.shape_cast %914 : vector<1x6x25xf32> to vector<6x25xf32>
    %c5_1005 = arith.constant 5 : index
    %c0_1006 = arith.constant 0 : index
    %c10_1007 = arith.constant 10 : index
    %916 = vector.load %arg13[%c5_1005, %c0_1006, %c10_1007] : memref<12x6x35xf32, #tpu.memory_space<vmem>>, vector<1x6x25xf32>
    %917 = vector.shape_cast %916 : vector<1x6x25xf32> to vector<6x25xf32>
    %918 = tpu.concatenate %869, %871, %873, %875, %877, %879, %881, %883, %885, %887, %889, %891, %893, %895, %897, %899 in 0 : vector<6x25xf32>, vector<6x25xf32>, vector<6x25xf32>, vector<6x25xf32>, vector<6x25xf32>, vector<6x25xf32>, vector<6x25xf32>, vector<6x25xf32>, vector<6x25xf32>, vector<6x25xf32>, vector<6x25xf32>, vector<6x25xf32>, vector<6x25xf32>, vector<6x25xf32>, vector<6x25xf32>, vector<6x25xf32> -> vector<96x25xf32>
    %919 = tpu.concatenate %901, %903, %905, %907, %909, %911, %913, %915, %917 in 0 : vector<6x25xf32>, vector<6x25xf32>, vector<6x25xf32>, vector<6x25xf32>, vector<6x25xf32>, vector<6x25xf32>, vector<6x25xf32>, vector<6x25xf32>, vector<6x25xf32> -> vector<54x25xf32>
    %920 = tpu.concatenate %918, %919 in 0 : vector<96x25xf32>, vector<54x25xf32> -> vector<150x25xf32>
    %cst_1008 = arith.constant dense<0.000000e+00> : vector<16x25xf32>
    %921 = tpu.matmul %808, %920, %cst_1008 {dimension_numbers = #tpu.dot_dimension_numbers<[1], [0], [0], [1], [0, 0, 1, 1], [], []>} : vector<16x150xf32>, vector<150x25xf32>, vector<16x25xf32> -> vector<16x25xf32>
    %922 = vector.broadcast %809 : vector<16x1xf32> to vector<16x25xf32>
    %923 = arith.addf %921, %922 : vector<16x25xf32>
    %cst_1009 = arith.constant 0.000000e+00 : f32
    %924 = vector.broadcast %cst_1009 : f32 to vector<16x25xf32>
    %925 = arith.maximumf %923, %924 : vector<16x25xf32>
    %c6_1010 = arith.constant 6 : index
    %c0_1011 = arith.constant 0 : index
    %c0_1012 = arith.constant 0 : index
    %926 = vector.load %arg13[%c6_1010, %c0_1011, %c0_1012] : memref<12x6x35xf32, #tpu.memory_space<vmem>>, vector<1x6x25xf32>
    %927 = vector.shape_cast %926 : vector<1x6x25xf32> to vector<6x25xf32>
    %c9_1013 = arith.constant 9 : index
    %c0_1014 = arith.constant 0 : index
    %c0_1015 = arith.constant 0 : index
    %928 = vector.load %arg13[%c9_1013, %c0_1014, %c0_1015] : memref<12x6x35xf32, #tpu.memory_space<vmem>>, vector<1x6x25xf32>
    %929 = vector.shape_cast %928 : vector<1x6x25xf32> to vector<6x25xf32>
    %c7_1016 = arith.constant 7 : index
    %c0_1017 = arith.constant 0 : index
    %c0_1018 = arith.constant 0 : index
    %930 = vector.load %arg13[%c7_1016, %c0_1017, %c0_1018] : memref<12x6x35xf32, #tpu.memory_space<vmem>>, vector<1x6x25xf32>
    %931 = vector.shape_cast %930 : vector<1x6x25xf32> to vector<6x25xf32>
    %c10_1019 = arith.constant 10 : index
    %c0_1020 = arith.constant 0 : index
    %c0_1021 = arith.constant 0 : index
    %932 = vector.load %arg13[%c10_1019, %c0_1020, %c0_1021] : memref<12x6x35xf32, #tpu.memory_space<vmem>>, vector<1x6x25xf32>
    %933 = vector.shape_cast %932 : vector<1x6x25xf32> to vector<6x25xf32>
    %c8_1022 = arith.constant 8 : index
    %c0_1023 = arith.constant 0 : index
    %c0_1024 = arith.constant 0 : index
    %934 = vector.load %arg13[%c8_1022, %c0_1023, %c0_1024] : memref<12x6x35xf32, #tpu.memory_space<vmem>>, vector<1x6x25xf32>
    %935 = vector.shape_cast %934 : vector<1x6x25xf32> to vector<6x25xf32>
    %c0_1025 = arith.constant 0 : index
    %c0_1026 = arith.constant 0 : index
    %c5_1027 = arith.constant 5 : index
    %936 = vector.load %arg13[%c0_1025, %c0_1026, %c5_1027] : memref<12x6x35xf32, #tpu.memory_space<vmem>>, vector<1x6x25xf32>
    %937 = vector.shape_cast %936 : vector<1x6x25xf32> to vector<6x25xf32>
    %c3_1028 = arith.constant 3 : index
    %c0_1029 = arith.constant 0 : index
    %c5_1030 = arith.constant 5 : index
    %938 = vector.load %arg13[%c3_1028, %c0_1029, %c5_1030] : memref<12x6x35xf32, #tpu.memory_space<vmem>>, vector<1x6x25xf32>
    %939 = vector.shape_cast %938 : vector<1x6x25xf32> to vector<6x25xf32>
    %c1_1031 = arith.constant 1 : index
    %c0_1032 = arith.constant 0 : index
    %c5_1033 = arith.constant 5 : index
    %940 = vector.load %arg13[%c1_1031, %c0_1032, %c5_1033] : memref<12x6x35xf32, #tpu.memory_space<vmem>>, vector<1x6x25xf32>
    %941 = vector.shape_cast %940 : vector<1x6x25xf32> to vector<6x25xf32>
    %c4_1034 = arith.constant 4 : index
    %c0_1035 = arith.constant 0 : index
    %c5_1036 = arith.constant 5 : index
    %942 = vector.load %arg13[%c4_1034, %c0_1035, %c5_1036] : memref<12x6x35xf32, #tpu.memory_space<vmem>>, vector<1x6x25xf32>
    %943 = vector.shape_cast %942 : vector<1x6x25xf32> to vector<6x25xf32>
    %c2_1037 = arith.constant 2 : index
    %c0_1038 = arith.constant 0 : index
    %c5_1039 = arith.constant 5 : index
    %944 = vector.load %arg13[%c2_1037, %c0_1038, %c5_1039] : memref<12x6x35xf32, #tpu.memory_space<vmem>>, vector<1x6x25xf32>
    %945 = vector.shape_cast %944 : vector<1x6x25xf32> to vector<6x25xf32>
    %c6_1040 = arith.constant 6 : index
    %c0_1041 = arith.constant 0 : index
    %c5_1042 = arith.constant 5 : index
    %946 = vector.load %arg13[%c6_1040, %c0_1041, %c5_1042] : memref<12x6x35xf32, #tpu.memory_space<vmem>>, vector<1x6x25xf32>
    %947 = vector.shape_cast %946 : vector<1x6x25xf32> to vector<6x25xf32>
    %c9_1043 = arith.constant 9 : index
    %c0_1044 = arith.constant 0 : index
    %c5_1045 = arith.constant 5 : index
    %948 = vector.load %arg13[%c9_1043, %c0_1044, %c5_1045] : memref<12x6x35xf32, #tpu.memory_space<vmem>>, vector<1x6x25xf32>
    %949 = vector.shape_cast %948 : vector<1x6x25xf32> to vector<6x25xf32>
    %c7_1046 = arith.constant 7 : index
    %c0_1047 = arith.constant 0 : index
    %c5_1048 = arith.constant 5 : index
    %950 = vector.load %arg13[%c7_1046, %c0_1047, %c5_1048] : memref<12x6x35xf32, #tpu.memory_space<vmem>>, vector<1x6x25xf32>
    %951 = vector.shape_cast %950 : vector<1x6x25xf32> to vector<6x25xf32>
    %c10_1049 = arith.constant 10 : index
    %c0_1050 = arith.constant 0 : index
    %c5_1051 = arith.constant 5 : index
    %952 = vector.load %arg13[%c10_1049, %c0_1050, %c5_1051] : memref<12x6x35xf32, #tpu.memory_space<vmem>>, vector<1x6x25xf32>
    %953 = vector.shape_cast %952 : vector<1x6x25xf32> to vector<6x25xf32>
    %c8_1052 = arith.constant 8 : index
    %c0_1053 = arith.constant 0 : index
    %c5_1054 = arith.constant 5 : index
    %954 = vector.load %arg13[%c8_1052, %c0_1053, %c5_1054] : memref<12x6x35xf32, #tpu.memory_space<vmem>>, vector<1x6x25xf32>
    %955 = vector.shape_cast %954 : vector<1x6x25xf32> to vector<6x25xf32>
    %c0_1055 = arith.constant 0 : index
    %c0_1056 = arith.constant 0 : index
    %c10_1057 = arith.constant 10 : index
    %956 = vector.load %arg13[%c0_1055, %c0_1056, %c10_1057] : memref<12x6x35xf32, #tpu.memory_space<vmem>>, vector<1x6x25xf32>
    %957 = vector.shape_cast %956 : vector<1x6x25xf32> to vector<6x25xf32>
    %c3_1058 = arith.constant 3 : index
    %c0_1059 = arith.constant 0 : index
    %c10_1060 = arith.constant 10 : index
    %958 = vector.load %arg13[%c3_1058, %c0_1059, %c10_1060] : memref<12x6x35xf32, #tpu.memory_space<vmem>>, vector<1x6x25xf32>
    %959 = vector.shape_cast %958 : vector<1x6x25xf32> to vector<6x25xf32>
    %c1_1061 = arith.constant 1 : index
    %c0_1062 = arith.constant 0 : index
    %c10_1063 = arith.constant 10 : index
    %960 = vector.load %arg13[%c1_1061, %c0_1062, %c10_1063] : memref<12x6x35xf32, #tpu.memory_space<vmem>>, vector<1x6x25xf32>
    %961 = vector.shape_cast %960 : vector<1x6x25xf32> to vector<6x25xf32>
    %c4_1064 = arith.constant 4 : index
    %c0_1065 = arith.constant 0 : index
    %c10_1066 = arith.constant 10 : index
    %962 = vector.load %arg13[%c4_1064, %c0_1065, %c10_1066] : memref<12x6x35xf32, #tpu.memory_space<vmem>>, vector<1x6x25xf32>
    %963 = vector.shape_cast %962 : vector<1x6x25xf32> to vector<6x25xf32>
    %c2_1067 = arith.constant 2 : index
    %c0_1068 = arith.constant 0 : index
    %c10_1069 = arith.constant 10 : index
    %964 = vector.load %arg13[%c2_1067, %c0_1068, %c10_1069] : memref<12x6x35xf32, #tpu.memory_space<vmem>>, vector<1x6x25xf32>
    %965 = vector.shape_cast %964 : vector<1x6x25xf32> to vector<6x25xf32>
    %c6_1070 = arith.constant 6 : index
    %c0_1071 = arith.constant 0 : index
    %c10_1072 = arith.constant 10 : index
    %966 = vector.load %arg13[%c6_1070, %c0_1071, %c10_1072] : memref<12x6x35xf32, #tpu.memory_space<vmem>>, vector<1x6x25xf32>
    %967 = vector.shape_cast %966 : vector<1x6x25xf32> to vector<6x25xf32>
    %c9_1073 = arith.constant 9 : index
    %c0_1074 = arith.constant 0 : index
    %c10_1075 = arith.constant 10 : index
    %968 = vector.load %arg13[%c9_1073, %c0_1074, %c10_1075] : memref<12x6x35xf32, #tpu.memory_space<vmem>>, vector<1x6x25xf32>
    %969 = vector.shape_cast %968 : vector<1x6x25xf32> to vector<6x25xf32>
    %c7_1076 = arith.constant 7 : index
    %c0_1077 = arith.constant 0 : index
    %c10_1078 = arith.constant 10 : index
    %970 = vector.load %arg13[%c7_1076, %c0_1077, %c10_1078] : memref<12x6x35xf32, #tpu.memory_space<vmem>>, vector<1x6x25xf32>
    %971 = vector.shape_cast %970 : vector<1x6x25xf32> to vector<6x25xf32>
    %c10_1079 = arith.constant 10 : index
    %c0_1080 = arith.constant 0 : index
    %c10_1081 = arith.constant 10 : index
    %972 = vector.load %arg13[%c10_1079, %c0_1080, %c10_1081] : memref<12x6x35xf32, #tpu.memory_space<vmem>>, vector<1x6x25xf32>
    %973 = vector.shape_cast %972 : vector<1x6x25xf32> to vector<6x25xf32>
    %c8_1082 = arith.constant 8 : index
    %c0_1083 = arith.constant 0 : index
    %c10_1084 = arith.constant 10 : index
    %974 = vector.load %arg13[%c8_1082, %c0_1083, %c10_1084] : memref<12x6x35xf32, #tpu.memory_space<vmem>>, vector<1x6x25xf32>
    %975 = vector.shape_cast %974 : vector<1x6x25xf32> to vector<6x25xf32>
    %976 = tpu.concatenate %927, %929, %931, %933, %935, %937, %939, %941, %943, %945, %947, %949, %951, %953, %955, %957 in 0 : vector<6x25xf32>, vector<6x25xf32>, vector<6x25xf32>, vector<6x25xf32>, vector<6x25xf32>, vector<6x25xf32>, vector<6x25xf32>, vector<6x25xf32>, vector<6x25xf32>, vector<6x25xf32>, vector<6x25xf32>, vector<6x25xf32>, vector<6x25xf32>, vector<6x25xf32>, vector<6x25xf32>, vector<6x25xf32> -> vector<96x25xf32>
    %977 = tpu.concatenate %959, %961, %963, %965, %967, %969, %971, %973, %975 in 0 : vector<6x25xf32>, vector<6x25xf32>, vector<6x25xf32>, vector<6x25xf32>, vector<6x25xf32>, vector<6x25xf32>, vector<6x25xf32>, vector<6x25xf32>, vector<6x25xf32> -> vector<54x25xf32>
    %978 = tpu.concatenate %976, %977 in 0 : vector<96x25xf32>, vector<54x25xf32> -> vector<150x25xf32>
    %cst_1085 = arith.constant dense<0.000000e+00> : vector<16x25xf32>
    %979 = tpu.matmul %808, %978, %cst_1085 {dimension_numbers = #tpu.dot_dimension_numbers<[1], [0], [0], [1], [0, 0, 1, 1], [], []>} : vector<16x150xf32>, vector<150x25xf32>, vector<16x25xf32> -> vector<16x25xf32>
    %980 = vector.broadcast %809 : vector<16x1xf32> to vector<16x25xf32>
    %981 = arith.addf %979, %980 : vector<16x25xf32>
    %cst_1086 = arith.constant 0.000000e+00 : f32
    %982 = vector.broadcast %cst_1086 : f32 to vector<16x25xf32>
    %983 = arith.maximumf %981, %982 : vector<16x25xf32>
    %c9_1087 = arith.constant 9 : index
    %c0_1088 = arith.constant 0 : index
    %c0_1089 = arith.constant 0 : index
    %984 = vector.load %arg13[%c9_1087, %c0_1088, %c0_1089] : memref<12x6x35xf32, #tpu.memory_space<vmem>>, vector<1x6x25xf32>
    %985 = vector.shape_cast %984 : vector<1x6x25xf32> to vector<6x25xf32>
    %c7_1090 = arith.constant 7 : index
    %c0_1091 = arith.constant 0 : index
    %c0_1092 = arith.constant 0 : index
    %986 = vector.load %arg13[%c7_1090, %c0_1091, %c0_1092] : memref<12x6x35xf32, #tpu.memory_space<vmem>>, vector<1x6x25xf32>
    %987 = vector.shape_cast %986 : vector<1x6x25xf32> to vector<6x25xf32>
    %c10_1093 = arith.constant 10 : index
    %c0_1094 = arith.constant 0 : index
    %c0_1095 = arith.constant 0 : index
    %988 = vector.load %arg13[%c10_1093, %c0_1094, %c0_1095] : memref<12x6x35xf32, #tpu.memory_space<vmem>>, vector<1x6x25xf32>
    %989 = vector.shape_cast %988 : vector<1x6x25xf32> to vector<6x25xf32>
    %c8_1096 = arith.constant 8 : index
    %c0_1097 = arith.constant 0 : index
    %c0_1098 = arith.constant 0 : index
    %990 = vector.load %arg13[%c8_1096, %c0_1097, %c0_1098] : memref<12x6x35xf32, #tpu.memory_space<vmem>>, vector<1x6x25xf32>
    %991 = vector.shape_cast %990 : vector<1x6x25xf32> to vector<6x25xf32>
    %c11_1099 = arith.constant 11 : index
    %c0_1100 = arith.constant 0 : index
    %c0_1101 = arith.constant 0 : index
    %992 = vector.load %arg13[%c11_1099, %c0_1100, %c0_1101] : memref<12x6x35xf32, #tpu.memory_space<vmem>>, vector<1x6x25xf32>
    %993 = vector.shape_cast %992 : vector<1x6x25xf32> to vector<6x25xf32>
    %c3_1102 = arith.constant 3 : index
    %c0_1103 = arith.constant 0 : index
    %c5_1104 = arith.constant 5 : index
    %994 = vector.load %arg13[%c3_1102, %c0_1103, %c5_1104] : memref<12x6x35xf32, #tpu.memory_space<vmem>>, vector<1x6x25xf32>
    %995 = vector.shape_cast %994 : vector<1x6x25xf32> to vector<6x25xf32>
    %c1_1105 = arith.constant 1 : index
    %c0_1106 = arith.constant 0 : index
    %c5_1107 = arith.constant 5 : index
    %996 = vector.load %arg13[%c1_1105, %c0_1106, %c5_1107] : memref<12x6x35xf32, #tpu.memory_space<vmem>>, vector<1x6x25xf32>
    %997 = vector.shape_cast %996 : vector<1x6x25xf32> to vector<6x25xf32>
    %c4_1108 = arith.constant 4 : index
    %c0_1109 = arith.constant 0 : index
    %c5_1110 = arith.constant 5 : index
    %998 = vector.load %arg13[%c4_1108, %c0_1109, %c5_1110] : memref<12x6x35xf32, #tpu.memory_space<vmem>>, vector<1x6x25xf32>
    %999 = vector.shape_cast %998 : vector<1x6x25xf32> to vector<6x25xf32>
    %c2_1111 = arith.constant 2 : index
    %c0_1112 = arith.constant 0 : index
    %c5_1113 = arith.constant 5 : index
    %1000 = vector.load %arg13[%c2_1111, %c0_1112, %c5_1113] : memref<12x6x35xf32, #tpu.memory_space<vmem>>, vector<1x6x25xf32>
    %1001 = vector.shape_cast %1000 : vector<1x6x25xf32> to vector<6x25xf32>
    %c5_1114 = arith.constant 5 : index
    %c0_1115 = arith.constant 0 : index
    %c5_1116 = arith.constant 5 : index
    %1002 = vector.load %arg13[%c5_1114, %c0_1115, %c5_1116] : memref<12x6x35xf32, #tpu.memory_space<vmem>>, vector<1x6x25xf32>
    %1003 = vector.shape_cast %1002 : vector<1x6x25xf32> to vector<6x25xf32>
    %c9_1117 = arith.constant 9 : index
    %c0_1118 = arith.constant 0 : index
    %c5_1119 = arith.constant 5 : index
    %1004 = vector.load %arg13[%c9_1117, %c0_1118, %c5_1119] : memref<12x6x35xf32, #tpu.memory_space<vmem>>, vector<1x6x25xf32>
    %1005 = vector.shape_cast %1004 : vector<1x6x25xf32> to vector<6x25xf32>
    %c7_1120 = arith.constant 7 : index
    %c0_1121 = arith.constant 0 : index
    %c5_1122 = arith.constant 5 : index
    %1006 = vector.load %arg13[%c7_1120, %c0_1121, %c5_1122] : memref<12x6x35xf32, #tpu.memory_space<vmem>>, vector<1x6x25xf32>
    %1007 = vector.shape_cast %1006 : vector<1x6x25xf32> to vector<6x25xf32>
    %c10_1123 = arith.constant 10 : index
    %c0_1124 = arith.constant 0 : index
    %c5_1125 = arith.constant 5 : index
    %1008 = vector.load %arg13[%c10_1123, %c0_1124, %c5_1125] : memref<12x6x35xf32, #tpu.memory_space<vmem>>, vector<1x6x25xf32>
    %1009 = vector.shape_cast %1008 : vector<1x6x25xf32> to vector<6x25xf32>
    %c8_1126 = arith.constant 8 : index
    %c0_1127 = arith.constant 0 : index
    %c5_1128 = arith.constant 5 : index
    %1010 = vector.load %arg13[%c8_1126, %c0_1127, %c5_1128] : memref<12x6x35xf32, #tpu.memory_space<vmem>>, vector<1x6x25xf32>
    %1011 = vector.shape_cast %1010 : vector<1x6x25xf32> to vector<6x25xf32>
    %c11_1129 = arith.constant 11 : index
    %c0_1130 = arith.constant 0 : index
    %c5_1131 = arith.constant 5 : index
    %1012 = vector.load %arg13[%c11_1129, %c0_1130, %c5_1131] : memref<12x6x35xf32, #tpu.memory_space<vmem>>, vector<1x6x25xf32>
    %1013 = vector.shape_cast %1012 : vector<1x6x25xf32> to vector<6x25xf32>
    %c3_1132 = arith.constant 3 : index
    %c0_1133 = arith.constant 0 : index
    %c10_1134 = arith.constant 10 : index
    %1014 = vector.load %arg13[%c3_1132, %c0_1133, %c10_1134] : memref<12x6x35xf32, #tpu.memory_space<vmem>>, vector<1x6x25xf32>
    %1015 = vector.shape_cast %1014 : vector<1x6x25xf32> to vector<6x25xf32>
    %c1_1135 = arith.constant 1 : index
    %c0_1136 = arith.constant 0 : index
    %c10_1137 = arith.constant 10 : index
    %1016 = vector.load %arg13[%c1_1135, %c0_1136, %c10_1137] : memref<12x6x35xf32, #tpu.memory_space<vmem>>, vector<1x6x25xf32>
    %1017 = vector.shape_cast %1016 : vector<1x6x25xf32> to vector<6x25xf32>
    %c4_1138 = arith.constant 4 : index
    %c0_1139 = arith.constant 0 : index
    %c10_1140 = arith.constant 10 : index
    %1018 = vector.load %arg13[%c4_1138, %c0_1139, %c10_1140] : memref<12x6x35xf32, #tpu.memory_space<vmem>>, vector<1x6x25xf32>
    %1019 = vector.shape_cast %1018 : vector<1x6x25xf32> to vector<6x25xf32>
    %c2_1141 = arith.constant 2 : index
    %c0_1142 = arith.constant 0 : index
    %c10_1143 = arith.constant 10 : index
    %1020 = vector.load %arg13[%c2_1141, %c0_1142, %c10_1143] : memref<12x6x35xf32, #tpu.memory_space<vmem>>, vector<1x6x25xf32>
    %1021 = vector.shape_cast %1020 : vector<1x6x25xf32> to vector<6x25xf32>
    %c5_1144 = arith.constant 5 : index
    %c0_1145 = arith.constant 0 : index
    %c10_1146 = arith.constant 10 : index
    %1022 = vector.load %arg13[%c5_1144, %c0_1145, %c10_1146] : memref<12x6x35xf32, #tpu.memory_space<vmem>>, vector<1x6x25xf32>
    %1023 = vector.shape_cast %1022 : vector<1x6x25xf32> to vector<6x25xf32>
    %c9_1147 = arith.constant 9 : index
    %c0_1148 = arith.constant 0 : index
    %c10_1149 = arith.constant 10 : index
    %1024 = vector.load %arg13[%c9_1147, %c0_1148, %c10_1149] : memref<12x6x35xf32, #tpu.memory_space<vmem>>, vector<1x6x25xf32>
    %1025 = vector.shape_cast %1024 : vector<1x6x25xf32> to vector<6x25xf32>
    %c7_1150 = arith.constant 7 : index
    %c0_1151 = arith.constant 0 : index
    %c10_1152 = arith.constant 10 : index
    %1026 = vector.load %arg13[%c7_1150, %c0_1151, %c10_1152] : memref<12x6x35xf32, #tpu.memory_space<vmem>>, vector<1x6x25xf32>
    %1027 = vector.shape_cast %1026 : vector<1x6x25xf32> to vector<6x25xf32>
    %c10_1153 = arith.constant 10 : index
    %c0_1154 = arith.constant 0 : index
    %c10_1155 = arith.constant 10 : index
    %1028 = vector.load %arg13[%c10_1153, %c0_1154, %c10_1155] : memref<12x6x35xf32, #tpu.memory_space<vmem>>, vector<1x6x25xf32>
    %1029 = vector.shape_cast %1028 : vector<1x6x25xf32> to vector<6x25xf32>
    %c8_1156 = arith.constant 8 : index
    %c0_1157 = arith.constant 0 : index
    %c10_1158 = arith.constant 10 : index
    %1030 = vector.load %arg13[%c8_1156, %c0_1157, %c10_1158] : memref<12x6x35xf32, #tpu.memory_space<vmem>>, vector<1x6x25xf32>
    %1031 = vector.shape_cast %1030 : vector<1x6x25xf32> to vector<6x25xf32>
    %c11_1159 = arith.constant 11 : index
    %c0_1160 = arith.constant 0 : index
    %c10_1161 = arith.constant 10 : index
    %1032 = vector.load %arg13[%c11_1159, %c0_1160, %c10_1161] : memref<12x6x35xf32, #tpu.memory_space<vmem>>, vector<1x6x25xf32>
    %1033 = vector.shape_cast %1032 : vector<1x6x25xf32> to vector<6x25xf32>
    %1034 = tpu.concatenate %985, %987, %989, %991, %993, %995, %997, %999, %1001, %1003, %1005, %1007, %1009, %1011, %1013, %1015 in 0 : vector<6x25xf32>, vector<6x25xf32>, vector<6x25xf32>, vector<6x25xf32>, vector<6x25xf32>, vector<6x25xf32>, vector<6x25xf32>, vector<6x25xf32>, vector<6x25xf32>, vector<6x25xf32>, vector<6x25xf32>, vector<6x25xf32>, vector<6x25xf32>, vector<6x25xf32>, vector<6x25xf32>, vector<6x25xf32> -> vector<96x25xf32>
    %1035 = tpu.concatenate %1017, %1019, %1021, %1023, %1025, %1027, %1029, %1031, %1033 in 0 : vector<6x25xf32>, vector<6x25xf32>, vector<6x25xf32>, vector<6x25xf32>, vector<6x25xf32>, vector<6x25xf32>, vector<6x25xf32>, vector<6x25xf32>, vector<6x25xf32> -> vector<54x25xf32>
    %1036 = tpu.concatenate %1034, %1035 in 0 : vector<96x25xf32>, vector<54x25xf32> -> vector<150x25xf32>
    %cst_1162 = arith.constant dense<0.000000e+00> : vector<16x25xf32>
    %1037 = tpu.matmul %808, %1036, %cst_1162 {dimension_numbers = #tpu.dot_dimension_numbers<[1], [0], [0], [1], [0, 0, 1, 1], [], []>} : vector<16x150xf32>, vector<150x25xf32>, vector<16x25xf32> -> vector<16x25xf32>
    %1038 = vector.broadcast %809 : vector<16x1xf32> to vector<16x25xf32>
    %1039 = arith.addf %1037, %1038 : vector<16x25xf32>
    %cst_1163 = arith.constant 0.000000e+00 : f32
    %1040 = vector.broadcast %cst_1163 : f32 to vector<16x25xf32>
    %1041 = arith.maximumf %1039, %1040 : vector<16x25xf32>
    %1042 = arith.maximumf %867, %925 : vector<16x25xf32>
    %1043 = arith.maximumf %983, %1041 : vector<16x25xf32>
    %1044 = arith.maximumf %1042, %1043 : vector<16x25xf32>
    %1045 = vector.extract_strided_slice %1044 {offsets = [0, 0], sizes = [1, 25], strides = [1, 1]} : vector<16x25xf32> to vector<1x25xf32>
    %1046 = vector.extract_strided_slice %1044 {offsets = [1, 0], sizes = [1, 25], strides = [1, 1]} : vector<16x25xf32> to vector<1x25xf32>
    %1047 = vector.extract_strided_slice %1044 {offsets = [2, 0], sizes = [1, 25], strides = [1, 1]} : vector<16x25xf32> to vector<1x25xf32>
    %1048 = vector.extract_strided_slice %1044 {offsets = [3, 0], sizes = [1, 25], strides = [1, 1]} : vector<16x25xf32> to vector<1x25xf32>
    %1049 = vector.extract_strided_slice %1044 {offsets = [4, 0], sizes = [1, 25], strides = [1, 1]} : vector<16x25xf32> to vector<1x25xf32>
    %1050 = vector.extract_strided_slice %1044 {offsets = [5, 0], sizes = [1, 25], strides = [1, 1]} : vector<16x25xf32> to vector<1x25xf32>
    %1051 = vector.extract_strided_slice %1044 {offsets = [6, 0], sizes = [1, 25], strides = [1, 1]} : vector<16x25xf32> to vector<1x25xf32>
    %1052 = vector.extract_strided_slice %1044 {offsets = [7, 0], sizes = [1, 25], strides = [1, 1]} : vector<16x25xf32> to vector<1x25xf32>
    %1053 = vector.extract_strided_slice %1044 {offsets = [8, 0], sizes = [1, 25], strides = [1, 1]} : vector<16x25xf32> to vector<1x25xf32>
    %1054 = vector.extract_strided_slice %1044 {offsets = [9, 0], sizes = [1, 25], strides = [1, 1]} : vector<16x25xf32> to vector<1x25xf32>
    %1055 = vector.extract_strided_slice %1044 {offsets = [10, 0], sizes = [1, 25], strides = [1, 1]} : vector<16x25xf32> to vector<1x25xf32>
    %1056 = vector.extract_strided_slice %1044 {offsets = [11, 0], sizes = [1, 25], strides = [1, 1]} : vector<16x25xf32> to vector<1x25xf32>
    %1057 = vector.extract_strided_slice %1044 {offsets = [12, 0], sizes = [1, 25], strides = [1, 1]} : vector<16x25xf32> to vector<1x25xf32>
    %1058 = vector.extract_strided_slice %1044 {offsets = [13, 0], sizes = [1, 25], strides = [1, 1]} : vector<16x25xf32> to vector<1x25xf32>
    %1059 = vector.extract_strided_slice %1044 {offsets = [14, 0], sizes = [1, 25], strides = [1, 1]} : vector<16x25xf32> to vector<1x25xf32>
    %1060 = vector.extract_strided_slice %1044 {offsets = [15, 0], sizes = [1, 25], strides = [1, 1]} : vector<16x25xf32> to vector<1x25xf32>
    %1061 = tpu.concatenate %1045, %1046, %1047, %1048, %1049, %1050, %1051, %1052, %1053, %1054, %1055, %1056, %1057, %1058, %1059, %1060 in 1 : vector<1x25xf32>, vector<1x25xf32>, vector<1x25xf32>, vector<1x25xf32>, vector<1x25xf32>, vector<1x25xf32>, vector<1x25xf32>, vector<1x25xf32>, vector<1x25xf32>, vector<1x25xf32>, vector<1x25xf32>, vector<1x25xf32>, vector<1x25xf32>, vector<1x25xf32>, vector<1x25xf32>, vector<1x25xf32> -> vector<1x400xf32>
    %c0_1164 = arith.constant 0 : index
    %c0_1165 = arith.constant 0 : index
    %1062 = vector.load %arg6[%c0_1164, %c0_1165] : memref<400x120xf32, #tpu.memory_space<vmem>>, vector<400x120xf32>
    %cst_1166 = arith.constant dense<0.000000e+00> : vector<1x120xf32>
    %1063 = tpu.matmul %1061, %1062, %cst_1166 {dimension_numbers = #tpu.dot_dimension_numbers<[1], [0], [0], [1], [0, 0, 1, 1], [], []>} : vector<1x400xf32>, vector<400x120xf32>, vector<1x120xf32> -> vector<1x120xf32>
    %c0_1167 = arith.constant 0 : index
    %c0_1168 = arith.constant 0 : index
    %1064 = vector.load %arg7[%c0_1167, %c0_1168] : memref<1x120xf32, #tpu.memory_space<vmem>>, vector<1x120xf32>
    %1065 = arith.addf %1063, %1064 : vector<1x120xf32>
    %cst_1169 = arith.constant 0.000000e+00 : f32
    %1066 = vector.broadcast %cst_1169 : f32 to vector<1x120xf32>
    %1067 = arith.maximumf %1065, %1066 : vector<1x120xf32>
    %c0_1170 = arith.constant 0 : index
    %c0_1171 = arith.constant 0 : index
    %1068 = vector.load %arg8[%c0_1170, %c0_1171] : memref<120x84xf32, #tpu.memory_space<vmem>>, vector<120x84xf32>
    %cst_1172 = arith.constant dense<0.000000e+00> : vector<1x84xf32>
    %1069 = tpu.matmul %1067, %1068, %cst_1172 {dimension_numbers = #tpu.dot_dimension_numbers<[1], [0], [0], [1], [0, 0, 1, 1], [], []>} : vector<1x120xf32>, vector<120x84xf32>, vector<1x84xf32> -> vector<1x84xf32>
    %c0_1173 = arith.constant 0 : index
    %c0_1174 = arith.constant 0 : index
    %1070 = vector.load %arg9[%c0_1173, %c0_1174] : memref<1x84xf32, #tpu.memory_space<vmem>>, vector<1x84xf32>
    %1071 = arith.addf %1069, %1070 : vector<1x84xf32>
    %cst_1175 = arith.constant 0.000000e+00 : f32
    %1072 = vector.broadcast %cst_1175 : f32 to vector<1x84xf32>
    %1073 = arith.maximumf %1071, %1072 : vector<1x84xf32>
    %c0_1176 = arith.constant 0 : index
    %c0_1177 = arith.constant 0 : index
    %1074 = vector.load %arg10[%c0_1176, %c0_1177] : memref<84x10xf32, #tpu.memory_space<vmem>>, vector<84x10xf32>
    %cst_1178 = arith.constant dense<0.000000e+00> : vector<1x10xf32>
    %1075 = tpu.matmul %1073, %1074, %cst_1178 {dimension_numbers = #tpu.dot_dimension_numbers<[1], [0], [0], [1], [0, 0, 1, 1], [], []>} : vector<1x84xf32>, vector<84x10xf32>, vector<1x10xf32> -> vector<1x10xf32>
    %c0_1179 = arith.constant 0 : index
    %c0_1180 = arith.constant 0 : index
    %1076 = vector.load %arg11[%c0_1179, %c0_1180] : memref<1x10xf32, #tpu.memory_space<vmem>>, vector<1x10xf32>
    %1077 = arith.addf %1075, %1076 : vector<1x10xf32>
    %c0_1181 = arith.constant 0 : index
    %c0_1182 = arith.constant 0 : index
    %c0_1183 = arith.constant 0 : index
    %1078 = vector.load %arg12[%c0_1181, %c0_1182, %c0_1183] : memref<1x1x10xf32, #tpu.memory_space<vmem>>, vector<1x1x10xf32>
    %1079 = vector.shape_cast %1078 : vector<1x1x10xf32> to vector<1x10xf32>
    %1080 = vector.shape_cast %1077 : vector<1x10xf32> to vector<1x1x10xf32>
    tpu.vector_store %arg12[%c0_1181, %c0_1182, %c0_1183], %1080 {strides = array<i32>} : memref<1x1x10xf32, #tpu.memory_space<vmem>>, vector<1x1x10xf32>,
    return
  }
  func.func @transform_0(%arg0: i32) -> (i32, i32, i32) {
    %c0_i32 = arith.constant 0 : i32
    %c0_i32_0 = arith.constant 0 : i32
    %c0_i32_1 = arith.constant 0 : i32
    return %arg0, %c0_i32, %c0_i32_0 : i32, i32, i32
  }
  func.func @transform_1(%arg0: i32) -> (i32, i32) {
    %c0_i32 = arith.constant 0 : i32
    %c0_i32_0 = arith.constant 0 : i32
    %c0_i32_1 = arith.constant 0 : i32
    return %c0_i32, %c0_i32_0 : i32, i32
  }
  func.func @transform_2(%arg0: i32) -> (i32, i32) {
    %c0_i32 = arith.constant 0 : i32
    %c0_i32_0 = arith.constant 0 : i32
    %c0_i32_1 = arith.constant 0 : i32
    return %c0_i32, %c0_i32_0 : i32, i32
  }
  func.func @transform_3(%arg0: i32) -> (i32, i32) {
    %c0_i32 = arith.constant 0 : i32
    %c0_i32_0 = arith.constant 0 : i32
    %c0_i32_1 = arith.constant 0 : i32
    return %c0_i32, %c0_i32_0 : i32, i32
  }
  func.func @transform_4(%arg0: i32) -> (i32, i32) {
    %c0_i32 = arith.constant 0 : i32
    %c0_i32_0 = arith.constant 0 : i32
    %c0_i32_1 = arith.constant 0 : i32
    return %c0_i32, %c0_i32_0 : i32, i32
  }
  func.func @transform_5(%arg0: i32) -> (i32, i32) {
    %c0_i32 = arith.constant 0 : i32
    %c0_i32_0 = arith.constant 0 : i32
    %c0_i32_1 = arith.constant 0 : i32
    return %c0_i32, %c0_i32_0 : i32, i32
  }
  func.func @transform_6(%arg0: i32) -> (i32, i32) {
    %c0_i32 = arith.constant 0 : i32
    %c0_i32_0 = arith.constant 0 : i32
    %c0_i32_1 = arith.constant 0 : i32
    return %c0_i32, %c0_i32_0 : i32, i32
  }
  func.func @transform_7(%arg0: i32) -> (i32, i32) {
    %c0_i32 = arith.constant 0 : i32
    %c0_i32_0 = arith.constant 0 : i32
    %c0_i32_1 = arith.constant 0 : i32
    return %c0_i32, %c0_i32_0 : i32, i32
  }
  func.func @transform_8(%arg0: i32) -> (i32, i32) {
    %c0_i32 = arith.constant 0 : i32
    %c0_i32_0 = arith.constant 0 : i32
    %c0_i32_1 = arith.constant 0 : i32
    return %c0_i32, %c0_i32_0 : i32, i32
  }
  func.func @transform_9(%arg0: i32) -> (i32, i32) {
    %c0_i32 = arith.constant 0 : i32
    %c0_i32_0 = arith.constant 0 : i32
    %c0_i32_1 = arith.constant 0 : i32
    return %c0_i32, %c0_i32_0 : i32, i32
  }
  func.func @transform_10(%arg0: i32) -> (i32, i32) {
    %c0_i32 = arith.constant 0 : i32
    %c0_i32_0 = arith.constant 0 : i32
    %c0_i32_1 = arith.constant 0 : i32
    return %c0_i32, %c0_i32_0 : i32, i32
  }
  func.func @transform_11(%arg0: i32) -> (i32, i32, i32) {
    %c0_i32 = arith.constant 0 : i32
    %c0_i32_0 = arith.constant 0 : i32
    %c0_i32_1 = arith.constant 0 : i32
    return %arg0, %c0_i32, %c0_i32_0 : i32, i32, i32
  }
}

</mosaic_0001>

<bundles_post_ra>
// kernel: net_forward.1
= control target key start
LH: loop header
LB: loop body
LE: loop exit
PB: predicated region body
PF: predicated region fallthrough
CT: control target
= control target key end

     0   :  { %s4759_s0 = inlined_call_operand.vmem [shape: f32[2,16,112], index: 0, kind: input, shape index: {}]   ;;  %s4760_s1 = inlined_call_operand.vmem [shape: f32[6,25], index: 1, kind: input, shape index: {}]   ;;  %s4761_s2 = inlined_call_operand.vmem [shape: f32[6,1], index: 2, kind: input, shape index: {}]   ;;  %s4762_s3 = inlined_call_operand.vmem [shape: f32[16,150], index: 3, kind: input, shape index: {}]   ;;  %s4763_s4 = inlined_call_operand.vmem [shape: f32[16,1], index: 4, kind: input, shape index: {}]   ;;  %s4764_s5 = inlined_call_operand.vmem [shape: f32[400,120], index: 5, kind: input, shape index: {}]   ;;  %s4765_s6 = inlined_call_operand.vmem [shape: f32[1,120], index: 6, kind: input, shape index: {}]   ;;  %s4766_s7 = inlined_call_operand.vmem [shape: f32[120,84], index: 7, kind: input, shape index: {}]   ;;  %s4767_s8 = inlined_call_operand.vmem [shape: f32[1,84], index: 8, kind: input, shape index: {}]   ;;  %s4768_s9 = inlined_call_operand.vmem [shape: f32[84,10], index: 9, kind: input, shape index: {}]   ;;  %s4769_s10 = inlined_call_operand.vmem [shape: f32[1,10], index: 10, kind: input, shape index: {}]   ;;  %s4770_s11 = inlined_call_operand.hbm [shape: f32[2,1,10], index: 11, kind: output, shape index: {}]  }
   0x1   :  { %4818 = sst [smem:[#allocation6_spill]] %s4759_s0 }
   0x2   :  { %4819 = sst [smem:[#allocation7_spill]] %s4760_s1 }
   0x3   :  { %16 = vsyncpa [#allocation4], 0 }
   0x4   :  { %18 = vsyncpa [#allocation4 + $0x1], 0  ;;  %s3075_s17 = smov 0   ;;  %s3077_s18 = smov 0  }
   0x5   :  { %s3079_s19 = smov 0   ;;  %s3081_s20 = smov 0  }
   0x6 LB: > { %s3096_s21 = sadd.s32 4294967295, %s2965_s20   ;;  %s2447_s22 = sadd.s32 4294967294, %s2965_s20   ;;  %s2965_s20 = sphi %s3081_s20, %s4870_s20   ;;  %s2961_s19 = sphi %s3079_s19, %s4869_s19   ;;  %s2957_s18 = sphi %s3077_s18, %s4868_s18   ;;  %s2953_s17 = sphi %s3075_s17, %s4867_s17  }
   0x7   : > { %s3100_s23 = sadd.s32 1, %s2965_s20   ;;  %s267_s24 = sadd.s32 1, %s2961_s19 }
   0x8   : > { %s264_s25 = ssub.s32 %s2965_s20, %s3100_s23  ;;  %p277_p0 = scmp.ne.s32.totalorder %s2961_s19, %s2957_s18 }
   0x9   : > { %p265_p1 = scmp.eq.s32.totalorder %s264_s25, 0  ;;  %p278_p2 = scmp.eq.s32.totalorder %s3096_s21, 1 }
   0xa   : > { %p283_p3 = scmp.ne.s32.totalorder %s2957_s18, %s2953_s17  ;;  %p284_p4 = scmp.eq.s32.totalorder %s2447_s22, 1 }
   0xb   : > { %s3111_s26 = scalar_select %p265_p1, %s2961_s19, %s267_s24  }
   0xc   : > { %p3113_p5 = por %p278_p2, %p277_p0  ;;  %p3117_p6 = por %p284_p4, %p283_p3 }
   0xd   : > { %p2450_p7 = scmp.ge.s32.totalorder %s2965_s20, 1  ;;  %p340_p8 = scmp.lt.s32.totalorder %s2965_s20, 3 }
   0xf   : > { %p341_p9 = pnand %p2450_p7, %p340_p8 }
  0x10   : > { %p379_p10 = scmp.lt.s32.totalorder (!%p341_p9), %s3096_s21, 1  ;;  %s4822_s0 = sld [smem:[#allocation6_spill]] (!%p341_p9) }
  0x11   : > { %344 = sbr.rel (%p341_p9) target bundleno = 1719 (0x6b7), region = 64  ;;  %s4808_s15 = smov (!%p341_p9), 121  }
  0x12   : > { %s2968_s16 = smov (!%p341_p9), 114   ;;  %s4828_s1 = sld [smem:[#allocation7_spill]] (!%p341_p9) }
  0x13   : > { %s2971_s12 = smov (!%p341_p9), 110   ;;  %s4813_s13 = smov (!%p341_p9), 119  }
  0x14   : > { %s4786_s22 = smov (!%p341_p9), 126   ;;  %s4787_s24 = smov (!%p341_p9), 99  }
  0x15   : > { %s4788_s25 = smov (!%p341_p9), 83  }
  0x16   : > { %s380_s29 = scalar_select %p379_p10, %s3096_s21, 1  ;;  %vm445_vm0 = vcmask 1040384   ;;  %vm447_vm1 = vcmask 1041408   ;;  %vm449_vm2 = vcmask 1042432   ;;  %vm451_vm3 = vcmask 1043456  }
  0x17   : > { %vm453_vm4 = vcmask 1044480   ;;  %vm455_vm5 = vcmask 1045504   ;;  %vm457_vm6 = vcmask 1046528   ;;  %vm509_vm7 = vcmask 203776  }
  0x18   : > { %s2487_s30 = sshll.u32 %s380_s29, 4  ;;  %vm1188_vm8 = vcmask 37888   ;;  %s2978_s29 = smov 101   ;;  %vm1194_vm9 = vcmask 78888   ;;  %vm1199_vm10 = vcmask 119888   ;;  %vm1204_vm11 = vcmask 160888  }
  0x19   : > { %s3128_s14 = scalar_lea.vmem %s4822_s0, %s2487_s30  ;;  %s4784_s30 = smov 117   ;;  %vm1209_vm12 = vcmask 201888   ;;  %vm1214_vm13 = vcmask 242888   ;;  %vm1219_vm14 = vcmask 283888   ;;  %vm1639_vm15 = vcmask 179200  }
  0x1a   : > { %v3131_v0 = vld [vmem:[%s3128_s14 + $0x5] sm:$0x1]  ;;  %v3134_v1 = vld [vmem:[%s3128_s14 + $0x3] sm:$0x1]  ;;  %v3137_v2 = vld [vmem:[%s3128_s14 + $0x4] sm:$0x1] }
  0x1b   : > { %616 = vrot.lane.b32.xlu1 %v3131_v0, %s4808_s15  ;;  %v433_v3 = vrot.slane %v3134_v1, 3  ;;  %v568_v4 = vrot.slane %v3137_v2, 3  ;;  %v3144_v5 = vld [vmem:[%s3128_s14 + $0x1] sm:$0x1]  ;;  %v3147_v6 = vld [vmem:[%s3128_s14 + $0x2] sm:$0x1] }
  0x1c   : > { %v600_v7 = vrot.slane %v3144_v5, 4  ;;  %v604_v8 = vrot.slane %v3147_v6, 3  ;;  %v429_v9 = vrot.slane %v3147_v6, 4  ;;  %v564_v10 = vrot.slane %v3134_v1, 4  ;;  %v3161_v20 = vld [vmem:[%s3128_s14 + $0x6] sm:$0x1] }
  0x1d   : > { %v2590_v11 = vpack.i.bf16 %v568_v4, %v433_v3  ;;  %v437_v14 = vrot.slane %v3137_v2, 2  ;;  %v572_v15 = vrot.slane %v3131_v0, 2  ;;  %v608_v16 = vrot.slane %v3134_v1, 2  ;;  %v3169_v24 = vld [vmem:[%s3128_s14 + $0x7] sm:$0x1] }
  0x1e   : > { %v2575_v12 = vpack.i.bf16 %v604_v8, %v600_v7  ;;  %v2585_v13 = vpack.i.bf16 %v564_v10, %v429_v9  ;;  %v612_v17 = vrot.slane %v3137_v2, 1  ;;  %v712_v21 = vrot.slane %v3131_v0, 1  ;;  %v3184_v33 = vld [vmem:[%s3128_s14] sm:$0x1]  ;;  %v3205_v44 = vld [vmem:[%s3128_s14 + $0xa] sm:$0x1] }
  0x1f   : > { %2591 = vrot.lane.b32.xlu2 %v2590_v11, %s4808_s15  ;;  %v2595_v18 = vpack.i.bf16 %v572_v15, %v437_v14  ;;  %v811_v22 = vrot.slane %v3161_v20, 1  ;;  %v538_v23 = vrot.slane %v3147_v6, 7  ;;  %v540_v25 = vrot.slane %v3134_v1, 6  ;;  %v3225_v55 = vld [vmem:[%s3128_s14 + $0xb] sm:$0x1] }
  0x20   : > { %2576 = vrot.lane.b32.xlu0 %v2575_v12, %s4808_s15  ;;  %v2580_v19 = vpack.i.bf16 %v612_v17, %v608_v16  ;;  %v542_v26 = vrot.slane %v3137_v2, 5  ;;  %v481_v30 = vrot.slane %v3147_v6, 2  ;;  %v485_v31 = vrot.slane %v3134_v1, 1  ;;  %v3236_v60 = vld [vmem:[%s3128_s14 + $0xf] sm:$0x1] }
  0x21   : > { %v580_v27 = vsel %vm445_vm0, %v3144_v5, %v538_v23  ;;  %v2600_v29 = vpack.i.bf16 %v811_v22, %v712_v21  ;;  %v473_v35 = vrot.slane %v3184_v33, 4  ;;  %v477_v36 = vrot.slane %v3144_v5, 3  ;;  %v3244_v63 = vld [vmem:[%s3128_s14 + $0xc] sm:$0x1]  ;;  %v3255_v10 = vld [vmem:[%s3128_s14 + $0xd] sm:$0x1] }
  0x22   : > { %v581_v28 = vsel %vm447_vm1, %v580_v27, %v540_v25  ;;  %v2610_v34 = vpack.i.bf16 %v485_v31, %v481_v30  ;;  %v4776_v37 = vrot.slane %v3134_v1, 5  ;;  %v4775_v40 = vrot.slane %v3137_v2, 4 }
  0x23   : > { %2586 = vrot.lane.b32.xlu1 %v2585_v13, %s4808_s15  ;;  %v3181_v32 = vsel %vm449_vm2, %v581_v28, %v542_v26  ;;  %v2605_v38 = vpack.i.bf16 %v477_v36, %v473_v35  ;;  %v4779_v41 = vrot.slane %v3131_v0, 4  ;;  %v556_v42 = vrot.slane %v3144_v5, 6 }
  0x24   : > { %v2625_v39 = vpack.i.bf16 %v542_v26, %v4776_v37  ;;  %v560_v43 = vrot.slane %v3147_v6, 5  ;;  %v421_v46 = vrot.slane %v3184_v33, 6  ;;  %v4773_v47 = vrot.slane %v3205_v44, 6 }
  0x25   : > { %v2630_v45 = vpack.i.bf16 %v4779_v41, %v4775_v40  ;;  %v683_v50 = vrot.slane %v3131_v0, 3  ;;  %v782_v51 = vrot.slane %v3161_v20, 3  ;;  %v4778_v52 = vrot.slane %v3147_v6, 6 }
  0x26   : > { %v2615_v48 = vpack.i.bf16 %v560_v43, %v556_v42  ;;  %v2650_v49 = vpack.i.bf16 %v4773_v47, %v421_v46  ;;  %v4774_v56 = vrot.slane %v3205_v44, 1  ;;  %v3230_v57 = vrot.slane %v3225_v55, 1 }
  0x27   : > { %2596 = vrot.lane.b32.xlu2 %v2595_v18, %s4808_s15  ;;  %v2635_v53 = vpack.i.bf16 %v782_v51, %v683_v50  ;;  %v2620_v54 = vpack.i.bf16 %v540_v25, %v4778_v52  ;;  %v1029_v58 = vrot.slane %v3161_v20, 7  ;;  %v1101_v59 = vrot.slane %v3169_v24, 7 }
  0x28   : > { %2581 = vrot.lane.b32.xlu0 %v2580_v19, %s4808_s15  ;;  %v2640_v61 = vpack.i.bf16 %v3230_v57, %v4774_v56  ;;  %v425_v3 = vrot.slane %v3144_v5, 5  ;;  %v469_v4 = vrot.slane %v3225_v55, 6  ;;  %v471_v7 = vrot.slane %v3244_v63, 5 }
  0x29   : > { %v2645_v62 = vpack.i.bf16 %v1101_v59, %v1029_v58  ;;  %v4772_v8 = vrot.slane %v3225_v55, 5  ;;  %v755_v12 = vrot.slane %v3137_v2, 7  ;;  %v952_v13 = vrot.slane %v3131_v0, 7 }
  0x2a   : > { %v2655_v9 = vpack.i.bf16 %v425_v3, %v469_v4  ;;  %v1139_v14 = vrot.slane %v3169_v24, 5  ;;  %v4771_v15 = vrot.slane %v3244_v63, 4  ;;  %v757_v16 = vrot.slane %v3131_v0, 6 }
  0x2b   : > { %815 = vrot.lane.b32.xlu1 %v3169_v24, %s4808_s15  ;;  %v2660_v11 = vpack.i.bf16 %v471_v7, %v4772_v8  ;;  %v1137_v17 = vrot.slane %v3161_v20, 6  ;;  %v949_v18 = vrot.slane %v3255_v10, 4  ;;  %v759_v19 = vrot.slane %v3161_v20, 5 }
  0x2c   : > { %v793_v21 = vsel %vm445_vm0, %v3134_v1, %v755_v12  ;;  %v1146_v22 = vsel %vm445_vm0, %v3137_v2, %v952_v13  ;;  %v886_v25 = vrot.slane %v3205_v44, 4  ;;  %v964_v26 = vrot.slane %v3225_v55, 4 }
  0x2d   : > { %v794_v23 = vsel %vm447_vm1, %v793_v21, %v757_v16  ;;  %v1147_v27 = vsel %vm447_vm1, %v1146_v22, %v1137_v17  ;;  %v3282_v28 = vrot.slane %v3225_v55, 3  ;;  %v968_v30 = vrot.slane %v3244_v63, 3 }
  0x2e   : > { %v4781_v35 = vrot.slane %v3255_v10, 2  ;;  %v2665_v43 = vpack.i.bf16 %v949_v18, %v4771_v15  ;;  %v1118_v17 = vrot.slane %v3236_v60, 2  ;;  %v418_v21 = vrot.slane %v3244_v63, 7 }
  0x2f   : > { %2601 = vrot.lane.b32.xlu2 %v2600_v29, %s4808_s15  ;;  %v3285_v29 = vsel %vm449_vm2, %v794_v23, %v759_v19  ;;  %v708_v22 = vrot.slane %v3255_v10, 6 }
  0x30   : > { %716 = vrot.lane.b32.xlu0 %v3161_v20, %s4808_s15  ;;  %v1065_v36 = vsel %vm451_vm3, %v3285_v29, %v886_v25 }
  0x31   : > { %v1066_v42 = vsel %vm453_vm4, %v1065_v36, %v3282_v28 }
  0x33   : > { %2611 = vrot.lane.b32.xlu1 %v2610_v34, %s4808_s15  ;;  %v3289_v34 = vrot.slane %v3244_v63, 2 }
  0x37   : > { %489 = vrot.lane.b32.xlu2 %v3137_v2, %s4808_s15 }
  0x38   : > { %2606 = vrot.lane.b32.xlu0 %v2605_v38, %s4808_s15  ;;  %v3297_v38 = vld [vmem:[%s3128_s14 + $0xe] sm:$0x1] }
  0x39   : > { %v1144_v46 = vrot.slane %v3297_v38, 1  ;;  %v1114_v58 = vrot.slane %v3297_v38, 3 }
  0x3b   : > { %2626 = vrot.lane.b32.xlu1 %v2625_v39, %s4808_s15  ;;  %v4777_v39 = vrot.slane %v3255_v10, 1 }
  0x3f   : > { %2631 = vrot.lane.b32.xlu2 %v2630_v45, %s4808_s15  ;;  %v1067_v45 = vsel %vm455_vm5, %v1066_v42, %v3289_v34 }
  0x40   : > { %2616 = vrot.lane.b32.xlu0 %v2615_v48, %s4808_s15  ;;  %v1148_v48 = vsel %vm449_vm2, %v1147_v27, %v1139_v14  ;;  %v1068_v50 = vsel %vm457_vm6, %v1067_v45, %v4777_v39  ;;  %v2690_v14 = vpack.i.bf16 %v755_v12, %v3134_v1  ;;  %v3349_v12 = vsel %vm445_vm0, %v3225_v55, %v418_v21 }
  0x41   : > { %v718_v23 = vsel %vm447_vm1, %v3349_v12, %v708_v22  ;;  %v1098_v27 = vrot.slane %v3236_v60, 4 }
  0x43   : > { %2651 = vrot.lane.b32.xlu1 %v2650_v49, %s4808_s15  ;;  %v1149_v49 = vsel %vm451_vm3, %v1148_v48, %v964_v26 }
  0x44   : > { %v1150_v51 = vsel %vm453_vm4, %v1149_v49, %v968_v30 }
  0x47   : > { %2636 = vrot.lane.b32.xlu2 %v2635_v53, %s4808_s15  ;;  %v1151_v53 = vsel %vm455_vm5, %v1150_v51, %v4781_v35  ;;  %v594_v51 = vrot.slane %v3225_v55, 7 }
  0x48   : > { %2621 = vrot.lane.b32.xlu0 %v2620_v54, %s4808_s15  ;;  %v1042_v54 = vrot.slane %v3255_v10, 3  ;;  %v1152_v59 = vsel %vm457_vm6, %v1151_v53, %v1144_v46  ;;  %v596_v53 = vrot.slane %v3244_v63, 6 }
  0x4a   : > { %v2670_v3 = vpack.i.bf16 %v1114_v58, %v1042_v54  ;;  %v618_v58 = vsel %vm445_vm0, %v3205_v44, %v594_v51 }
  0x4b   : > { %1156 = vrot.lane.b32.xlu1 %v3236_v60, %s2968_s16 }
  0x4f   : > { %2641 = vrot.lane.b32.xlu2 %v2640_v61, %s4808_s15  ;;  %v4780_v61 = vrot.slane %v3147_v6, 1 }
  0x50   : > { %2646 = vrot.lane.b32.xlu0 %v2645_v62, %s4808_s15  ;;  %v2675_v62 = vpack.i.bf16 %v1152_v59, %v1068_v50 }
  0x53   : > { %2676 = vrot.lane.b32.xlu1 %v2675_v62, %s2968_s16  ;;  %v598_v62 = vrot.slane %v3255_v10, 5 }
  0x57   : > { %2656 = vrot.lane.b32.xlu2 %v2655_v9, %s4808_s15  ;;  %v3331_v9 = vld [vmem:[%s3128_s14 + $0x8] sm:$0x1] }
  0x58   : > { %2661 = vrot.lane.b32.xlu0 %v2660_v11, %s4808_s15  ;;  %v2685_v11 = vpack.i.bf16 %v485_v31, %v4780_v61  ;;  %v441_v16 = vrot.slane %v3331_v9, 1  ;;  %v710_v31 = vrot.slane %v3297_v38, 5 }
  0x5a   : > { %v2680_v19 = vpack.i.bf16 %v441_v16, %v1118_v17  ;;  %v3357_v42 = vsel %vm449_vm2, %v718_v23, %v710_v31  ;;  %v1026_v16 = vrot.slane %v3297_v38, 4 }
  0x5b   : > { %2691 = vrot.lane.b32.xlu1 %v2690_v14, %s4808_s15  ;;  %v1125_v45 = vsel %vm451_vm3, %v3357_v42, %v1098_v27 }
  0x5f   : > { %2666 = vrot.lane.b32.xlu2 %v2665_v43, %s4808_s15 }
  0x60   : > { %1072 = vrot.lane.b32.xlu0 %v3297_v38, %s2968_s16 }
  0x67   : > { %2671 = vrot.lane.b32.xlu2 %v2670_v3, %s4808_s15  ;;  %v619_v3 = vsel %vm447_vm1, %v618_v58, %v596_v53  ;;  %v554_v58 = vrot.slane %v3255_v10, 7 }
  0x68   : > { %2686 = vrot.lane.b32.xlu0 %v2685_v11, %s2968_s16  ;;  %v620_v17 = vsel %vm449_vm2, %v619_v3, %v598_v62 }
  0x69   : > { %v1053_v22 = vsel %vm451_vm3, %v620_v17, %v1026_v16 }
  0x6f   : > { %2681 = vrot.lane.b32.xlu2 %v2680_v19, %s4808_s15 }
  0x79   : > { %v3354_v36 = vpop.permute.xlu2 %2591 }
  0x7a   : > { %v3360_v43 = vunpack.i.l.bf16 %v3354_v36  ;;  %v2594_v40 = vunpack.i.h.bf16 %v3354_v36 }
  0x7c   : > { %v1126_v46 = vsel %vm453_vm4, %v1125_v45, %v3360_v43 }
  0x81   : > { %v3366_v48 = vpop.permute.xlu2 %2596 }
  0x82   : > { %v3369_v49 = vunpack.i.l.bf16 %v3366_v48 }
  0x84   : > { %v1127_v50 = vsel %vm455_vm5, %v1126_v46, %v3369_v49  ;;  %v3400_v46 = vld [vmem:[%s3128_s14 + $0x9] sm:$0x1]  ;;  %s4785_s14 = smov 108  }
  0x85   : > { %v576_v15 = vrot.slane %v3400_v46, 1 }
  0x89   : > { %v3375_v54 = vpop.permute.xlu2 %2601 }
  0x8a   : > { %v2603_v59 = vunpack.i.l.bf16 %v3375_v54 }
  0x8c   : > { %v3385_v11 = vsel %vm457_vm6, %v1127_v50, %v2603_v59 }
  0x8d   : > { %v3387_v14 = vpop.permute.xlu1 %616 }
  0x8e   : > { %628 = vrot.lane.b32.xlu1 %v3387_v14, %s4808_s15 }
  0x91   : > { %v3393_v19 = vpop.permute.xlu2 %489 }
  0x92   : > { %v2577_v21 = vpop.permute.xlu0 %2576 }
  0x93   : > { %v2579_v31 = vunpack.i.h.bf16 %v2577_v21  ;;  %v2578_v23 = vunpack.i.l.bf16 %v2577_v21  ;;  %v466_v21 = vrot.slane %v3205_v44, 7 }
  0x95   : > { %v3396_v27 = vpop.permute.xlu1 %2586  ;;  %v1054_v45 = vsel %vm453_vm4, %v1053_v22, %v2579_v31  ;;  %v621_v50 = vsel %vm451_vm3, %v620_v17, %v2578_v23  ;;  %v807_v17 = vrot.slane %v3297_v38, 6 }
  0x96   : > { %v622_v16 = vsel %vm453_vm4, %v621_v50, %v2579_v31  ;;  %v491_v50 = vsel %vm445_vm0, %v3400_v46, %v466_v21  ;;  %v2589_v21 = vunpack.i.h.bf16 %v3396_v27  ;;  %v4783_v37 = vunpack.i.l.bf16 %v3396_v27 }
  0x99   : > { %v3403_v51 = vpop.permute.xlu2 %2631 }
  0x9a   : > { %v2582_v53 = vpop.permute.xlu0 %2581 }
  0x9b   : > { %v2584_v62 = vunpack.i.h.bf16 %v2582_v53  ;;  %v2583_v3 = vunpack.i.l.bf16 %v2582_v53  ;;  %v3419_v53 = vsel %vm445_vm0, %v3244_v63, %v554_v58  ;;  %v956_v58 = vrot.slane %v3400_v46, 6 }
  0x9d   : > { %v816_v8 = vpop.permute.xlu1 %815  ;;  %v623_v22 = vsel %vm455_vm5, %v622_v16, %v2583_v3  ;;  %v1055_v47 = vsel %vm455_vm5, %v1054_v45, %v2583_v3  ;;  %v809_v16 = vrot.slane %v3236_v60, 5  ;;  %v492_v3 = vsel %vm447_vm1, %v491_v50, %v469_v4 }
  0x9e   : > { %826 = vrot.lane.b32.xlu1 %v816_v8, %s4808_s15  ;;  %v624_v23 = vsel %vm457_vm6, %v623_v22, %v2584_v62  ;;  %v3415_v56 = vsel %vm457_vm6, %v1055_v47, %v2584_v62  ;;  %v878_v8 = vrot.slane %v3331_v9, 6  ;;  %v817_v47 = vsel %vm447_vm1, %v3419_v53, %v807_v17 }
  0x9f   : > { %v2695_v31 = vpack.i.bf16 %v576_v15, %v624_v23  ;;  %v882_v15 = vrot.slane %v3400_v46, 5  ;;  %v818_v22 = vsel %vm449_vm2, %v817_v47, %v809_v16  ;;  %v493_v4 = vsel %vm449_vm2, %v492_v3, %v471_v7 }
  0xa0   : > { %v2700_v17 = vpack.i.bf16 %v878_v8, %v952_v13  ;;  %v819_v16 = vsel %vm451_vm3, %v818_v22, %v2589_v21  ;;  %v2599_v13 = vunpack.i.h.bf16 %v3366_v48  ;;  %v980_v7 = vsel %vm451_vm3, %v493_v4, %v949_v18 }
  0xa1   : > { %2696 = vrot.lane.b32.xlu2 %v2695_v31, %s4808_s15  ;;  %v3425_v45 = vpop.permute.xlu2 %2636  ;;  %v960_v31 = vrot.slane %v3205_v44, 5  ;;  %v2705_v50 = vpack.i.bf16 %v882_v15, %v956_v58  ;;  %v720_v15 = vsel %vm451_vm3, %v3357_v42, %v4783_v37  ;;  %v820_v3 = vsel %vm453_vm4, %v819_v16, %v2594_v40 }
  0xa2   : > { %v3430_v62 = vpop.permute.xlu0 %716  ;;  %v2604_v22 = vunpack.i.h.bf16 %v3375_v54  ;;  %v821_v18 = vsel %vm455_vm5, %v820_v3, %v2599_v13  ;;  %v721_v42 = vsel %vm453_vm4, %v720_v15, %v3360_v43  ;;  %v2715_v16 = vpack.i.bf16 %v3282_v28, %v964_v26 }
  0xa3   : > { %727 = vrot.lane.b32.xlu0 %v3430_v62, %s4808_s15  ;;  %v2710_v39 = vpack.i.bf16 %v886_v25, %v960_v31  ;;  %v656_v31 = vrot.slane %v3134_v1, 7  ;;  %v722_v15 = vsel %vm455_vm5, %v721_v42, %v3369_v49 }
  0xa4   : > { %v822_v3 = vsel %vm457_vm6, %v821_v18, %v2604_v22  ;;  %v687_v22 = vrot.slane %v3161_v20, 2  ;;  %v723_v35 = vsel %vm457_vm6, %v722_v15, %v2603_v59  ;;  %v914_v15 = vrot.slane %v3331_v9, 4 }
  0xa5   : > { %v3441_v23 = vpop.permute.xlu1 %2611  ;;  %v694_v26 = vsel %vm445_vm0, %v3147_v6, %v656_v31 }
  0xa6   : > { %501 = vrot.lane.b32.xlu1 %v3393_v19, %s4808_s15  ;;  %v2613_v8 = vunpack.i.l.bf16 %v3441_v23  ;;  %v4782_v58 = vunpack.i.h.bf16 %v3441_v23 }
  0xa9   : > { %2701 = vrot.lane.b32.xlu2 %v2700_v17, %s4808_s15  ;;  %v3459_v47 = vpop.permute.xlu2 %2641 }
  0xaa   : > { %v2607_v36 = vpop.permute.xlu0 %2606 }
  0xab   : > { %v2609_v48 = vunpack.i.h.bf16 %v2607_v36  ;;  %2706 = vrot.lane.b32.xlu0 %v2705_v50, %s4808_s15  ;;  %v2608_v50 = vunpack.i.l.bf16 %v2607_v36  ;;  %v658_v36 = vrot.slane %v3137_v2, 6 }
  0xad   : > { %v3474_v17 = vpop.permute.xlu1 %2626  ;;  %v981_v25 = vsel %vm453_vm4, %v980_v7, %v2609_v48  ;;  %v494_v41 = vsel %vm451_vm3, %v493_v4, %v2608_v50  ;;  %v2730_v50 = vpack.i.bf16 %v3289_v34, %v968_v30 }
  0xae   : > { %2711 = vrot.lane.b32.xlu1 %v2710_v39, %s4808_s15  ;;  %v982_v52 = vsel %vm455_vm5, %v981_v25, %v2613_v8  ;;  %v786_v39 = vrot.slane %v3169_v24, 2 }
  0xaf   : > { %v3489_v7 = vsel %vm457_vm6, %v982_v52, %v4782_v58  ;;  %v660_v58 = vrot.slane %v3131_v0, 5 }
  0xb0   : > { %v2725_v42 = vpack.i.bf16 %v822_v3, %v786_v39  ;;  %v495_v39 = vsel %vm453_vm4, %v494_v41, %v2609_v48  ;;  %v2720_v3 = vpack.i.bf16 %v723_v35, %v687_v22  ;;  %v896_v48 = vrot.slane %v3184_v33, 1 }
  0xb1   : > { %923 = vrot.lane.b32.xlu2 %v3244_v63, %s2968_s16  ;;  %v3503_v18 = vpop.permute.xlu2 %2656  ;;  %v496_v35 = vsel %vm455_vm5, %v495_v39, %v2613_v8  ;;  %v4823_v22 = vunpack.i.l.bf16 %v3396_v27  ;;  %v1046_v8 = vrot.slane %v3297_v38, 2  ;;  %v667_v39 = vrot.slane %v3225_v55, 2 }
  0xb2   : > { %v2617_v25 = vpop.permute.xlu0 %2616  ;;  %v2659_v37 = vunpack.i.h.bf16 %v3503_v18 }
  0xb3   : > { %v2619_v52 = vunpack.i.h.bf16 %v2617_v25  ;;  %v2618_v61 = vunpack.i.l.bf16 %v2617_v25  ;;  %2716 = vrot.lane.b32.xlu0 %v2715_v16, %s4808_s15  ;;  %v695_v16 = vsel %vm447_vm1, %v694_v26, %v658_v36  ;;  %v976_v25 = vrot.slane %v3144_v5, 1 }
  0xb4   : > { %v3530_v41 = vsel %vm449_vm2, %v695_v16, %v660_v58  ;;  %v665_v58 = vrot.slane %v3205_v44, 3  ;;  %v549_v16 = vrot.slane %v3205_v44, 2 }
  0xb5   : > { %v588_v4 = vsel %vm447_vm1, %v3419_v53, %v2618_v61  ;;  %v3512_v31 = vpop.permute.xlu1 %2651  ;;  %v991_v61 = vrot.slane %v3400_v46, 4 }
  0xb6   : > { %v589_v54 = vsel %vm449_vm2, %v588_v4, %v2619_v52  ;;  %v2653_v59 = vunpack.i.l.bf16 %v3512_v31  ;;  %2726 = vrot.lane.b32.xlu1 %v2725_v42, %s4808_s15  ;;  %v4824_v4 = vunpack.i.h.bf16 %v3441_v23 }
  0xb7   : > { %v590_v53 = vsel %vm451_vm3, %v589_v54, %v2589_v21  ;;  %v2750_v54 = vpack.i.bf16 %v976_v25, %v896_v48  ;;  %v4825_v48 = vrot.slane %v3255_v10, 2 }
  0xb8   : > { %v460_v30 = vsel %vm447_vm1, %v3349_v12, %v2653_v59  ;;  %v591_v36 = vsel %vm453_vm4, %v590_v53, %v2594_v40  ;;  %v547_v12 = vrot.slane %v3400_v46, 3  ;;  %v860_v59 = vrot.slane %v3184_v33, 3 }
  0xb9   : > { %2731 = vrot.lane.b32.xlu2 %v2730_v50, %s4808_s15  ;;  %v3538_v26 = vsel %vm455_vm5, %v591_v36, %v2599_v13  ;;  %v461_v21 = vsel %vm449_vm2, %v460_v30, %v2659_v37  ;;  %v916_v13 = vsel %vm451_vm3, %v3181_v32, %v914_v15  ;;  %v993_v37 = vsel %vm451_vm3, %v3530_v41, %v991_v61  ;;  %v3572_v15 = vpop.permute.xlu2 %2666 }
  0xba   : > { %v3541_v52 = vpop.permute.xlu0 %2621  ;;  %v462_v40 = vsel %vm451_vm3, %v461_v21, %v4823_v22  ;;  %v497_v50 = vsel %vm457_vm6, %v496_v35, %v4824_v4  ;;  %v994_v23 = vsel %vm453_vm4, %v993_v37, %v665_v58  ;;  %v2745_v36 = vpack.i.bf16 %v860_v59, %v4825_v48 }
  0xbb   : > { %2721 = vrot.lane.b32.xlu0 %v2720_v3, %s4808_s15  ;;  %v463_v42 = vsel %vm453_vm4, %v462_v40, %v3360_v43  ;;  %v917_v43 = vsel %vm453_vm4, %v916_v13, %v547_v12  ;;  %v2735_v3 = vpack.i.bf16 %v1046_v8, %v497_v50  ;;  %v995_v53 = vsel %vm455_vm5, %v994_v23, %v667_v39 }
  0xbc   : > { %v3561_v27 = vsel %vm455_vm5, %v463_v42, %v3369_v49  ;;  %v669_v49 = vrot.slane %v3244_v63, 1  ;;  %v918_v61 = vsel %vm455_vm5, %v917_v43, %v549_v16  ;;  %v2654_v40 = vunpack.i.h.bf16 %v3512_v31 }
  0xbd   : > { %v919_v35 = vsel %vm457_vm6, %v918_v61, %v3230_v57  ;;  %v2668_v13 = vunpack.i.l.bf16 %v3572_v15  ;;  %v4826_v43 = vrot.slane %v3147_v6, 1  ;;  %v3613_v61 = vpop.permute.xlu1 %1156 }
  0xbe   : > { %1000 = vrot.lane.b32.xlu1 %v3255_v10, %s2968_s16  ;;  %v996_v25 = vsel %vm457_vm6, %v995_v53, %v669_v49 }
  0xbf   : > { %v2740_v22 = vpack.i.bf16 %v996_v25, %v919_v35  ;;  %v4827_v35 = vrot.slane %v3131_v0, 4 }
  0xc1   : > { %2751 = vrot.lane.b32.xlu2 %v2750_v54, %s2968_s16  ;;  %v3596_v37 = vpop.permute.xlu2 %2671  ;;  %v864_v54 = vrot.slane %v3144_v5, 2  ;;  %v583_v25 = vsel %vm451_vm3, %v3181_v32, %v4827_v35 }
  0xc2   : > { %v3580_v30 = vpop.permute.xlu0 %2646  ;;  %v2673_v4 = vunpack.i.l.bf16 %v3596_v37 }
  0xc3   : > { %2736 = vrot.lane.b32.xlu0 %v2735_v3, %s4808_s15  ;;  %v2648_v21 = vunpack.i.l.bf16 %v3580_v30  ;;  %v2755_v23 = vpack.i.bf16 %v4826_v43, %v864_v54  ;;  %v672_v43 = vrot.slane %v3297_v38, 7 }
  0xc5   : > { %v1057_v8 = vsel %vm445_vm0, %v3387_v14, %v2648_v21  ;;  %v3615_v53 = vpop.permute.xlu1 %2676 }
  0xc6   : > { %2746 = vrot.lane.b32.xlu1 %v2745_v36, %s4808_s15  ;;  %v1058_v59 = vsel %vm447_vm1, %v1057_v8, %v2654_v40 }
  0xc9   : > { %v3617_v48 = vpop.permute.xlu2 %2681 }
  0xca   : > { %v3598_v42 = vpop.permute.xlu0 %2661 }
  0xcb   : > { %v2663_v50 = vunpack.i.l.bf16 %v3598_v42  ;;  %2741 = vrot.lane.b32.xlu0 %v2740_v22, %s2968_s16  ;;  %v584_v22 = vsel %vm453_vm4, %v583_v25, %v547_v12  ;;  %v2649_v25 = vunpack.i.h.bf16 %v3580_v30  ;;  %v2664_v30 = vunpack.i.h.bf16 %v3598_v42  ;;  %s4789_s16 = smov 92  }
  0xcc   : > { %v2669_v42 = vunpack.i.h.bf16 %v3572_v15 }
  0xcd   : > { %v1059_v31 = vsel %vm449_vm2, %v1058_v59, %v2663_v50  ;;  %v3619_v36 = vpop.permute.xlu1 %2691 }
  0xce   : > { %v1060_v14 = vsel %vm451_vm3, %v1059_v31, %v2668_v13  ;;  %v2624_v31 = vunpack.i.h.bf16 %v3541_v52 }
  0xcf   : > { %v3610_v3 = vsel %vm453_vm4, %v1060_v14, %v2673_v4  ;;  %v585_v4 = vsel %vm455_vm5, %v584_v22, %v549_v16  ;;  %v3640_v16 = vld [vmem:[%s4828_s1] sm:$0x3f]  ;;  %v2629_v22 = vunpack.i.h.bf16 %v3474_v17 }
  0xd0   : > { %v586_v0 = vsel %vm457_vm6, %v585_v4, %v3230_v57  ;;  %v2658_v4 = vunpack.i.l.bf16 %v3503_v18 }
  0xd2   : > { %v3628_v50 = vpop.permute.xlu0 %1072 }
  0xd3   : > { %2756 = vrot.lane.b32.xlu0 %v2755_v23, %s4808_s15 }
  0xda   : > { %v3634_v32 = vpop.permute.xlu0 %2686 }
  0xfb   : > { %v2697_v21 = vpop.permute.xlu2 %2696 }
  0xfc   : > { %v2699_v40 = vunpack.i.h.bf16 %v2697_v21  ;;  %v2698_v13 = vunpack.i.l.bf16 %v2697_v21  ;;  %v762_v21 = vrot.slane %v3169_v24, 4  ;;  %v1129_v24 = vsel %vm445_vm0, %v3430_v62, %v2649_v25 }
  0xfd   : > { %v2639_v62 = vunpack.i.h.bf16 %v3425_v45 }
  0xfe   : > { %v593_v54 = vsel %vm457_vm6, %v3538_v26, %v2699_v40  ;;  %v771_v26 = vrot.slane %v3236_v60, 7  ;;  %v397_v60 = vrot.slane %v3144_v5, 7  ;;  %v2628_v5 = vunpack.i.l.bf16 %v3474_v17 }
 0x100   : > { %v629_v8 = vpop.permute.xlu1 %628  ;;  %v800_v23 = vsel %vm445_vm0, %v3297_v38, %v771_v26  ;;  %v701_v38 = vsel %vm445_vm0, %v3255_v10, %v672_v43  ;;  %v446_v18 = vsel %vm445_vm0, %v3184_v33, %v397_v60  ;;  %v1130_v26 = vsel %vm447_vm1, %v1129_v24, %v2658_v4 }
 0x101   : > { %2455 = vmatpush.msk.msra.mxu2 %vm445_vm0, %v629_v8  ;;  %v801_v8 = vsel %vm447_vm1, %v800_v23, %v2624_v31  ;;  %v1131_v31 = vsel %vm449_vm2, %v1130_v26, %v2664_v30  ;;  %v4829_v43 = vrot.slane %v3147_v6, 6  ;;  %v4831_v30 = vrot.slane %v3134_v1, 5 }
 0x102   : > { %v1132_v4 = vsel %vm451_vm3, %v1131_v31, %v2669_v42  ;;  %v409_v1 = vrot.slane %v3331_v9, 3  ;;  %v4832_v26 = vrot.slane %v3137_v2, 4  ;;  %v2694_v31 = vunpack.i.h.bf16 %v3619_v36 }
 0x103   : > { %646 = vmatpush.msra.mxu2 %v2698_v13  ;;  %v3653_v35 = vpop.permute.xlu2 %2701  ;;  %v2623_v13 = vunpack.i.l.bf16 %v3541_v52  ;;  %v663_v52 = vrot.slane %v3161_v20, 4  ;;  %v2633_v20 = vunpack.i.l.bf16 %v3403_v51  ;;  %v448_v23 = vsel %vm447_vm1, %v446_v18, %v4829_v43 }
 0x105   : > { %647 = vmatpush.msra.mxu2 %v593_v54  ;;  %v2634_v54 = vunpack.i.h.bf16 %v3403_v51 }
 0x107   : > { %648 = vmatpush.msra.mxu2 %v586_v0  ;;  %v796_v0 = vsel %vm451_vm3, %v3285_v29, %v762_v21  ;;  %v697_v21 = vsel %vm451_vm3, %v3530_v41, %v663_v52 }
 0x108   : > { %2456 = vmatmul.msk.f32.vlgmr.msra.gmra.mxu2 %vm509_vm7, %v3640_v16  ;;  %v797_v17 = vsel %vm453_vm4, %v796_v0, %v3282_v28  ;;  %v450_v0 = vsel %vm449_vm2, %v448_v23, %v4831_v30  ;;  %v2679_v23 = vunpack.i.h.bf16 %v3615_v53  ;;  %v4833_v30 = vrot.slane %v3205_v44, 1 }
 0x109   : > { %v798_v51 = vsel %vm455_vm5, %v797_v17, %v3289_v34  ;;  %v385_v34 = vld [vmem:[%s4761_s2] sm:$0x3f]  ;;  %v452_v17 = vsel %vm451_vm3, %v450_v0, %v4832_v26 }
 0x10b   : > { %v3683_v29 = vpop.permute.xlu2 %923 }
 0x110   : > { %v827_v12 = vpop.permute.xlu1 %826 }
 0x111   : > { %2459 = vmatpush.msk.msra.mxu3 %vm445_vm0, %v827_v12  ;;  %v802_v12 = vsel %vm449_vm2, %v801_v8, %v2629_v22  ;;  %v2638_v22 = vunpack.i.l.bf16 %v3425_v45  ;;  %v2644_v8 = vunpack.i.h.bf16 %v3459_v47  ;;  %v698_v45 = vsel %vm453_vm4, %v697_v21, %v665_v58 }
 0x112   : > { %v803_v33 = vsel %vm451_vm3, %v802_v12, %v2634_v54  ;;  %v2643_v12 = vunpack.i.l.bf16 %v3459_v47  ;;  %v2683_v58 = vunpack.i.l.bf16 %v3617_v48  ;;  %v412_v21 = vrot.slane %v3400_v46, 2 }
 0x113   : > { %v804_v6 = vsel %vm453_vm4, %v803_v33, %v2639_v62  ;;  %v2689_v62 = vunpack.i.h.bf16 %v3634_v32  ;;  %v3732_v33 = vpop.permute.xlu2 %2731 }
 0x114   : > { %v2734_v0 = vunpack.i.h.bf16 %v3732_v33 }
 0x115   : > { %v728_v59 = vpop.permute.xlu0 %727 }
 0x116   : > { %2457 = vmatpush.msk.msrb.mxu2 %vm445_vm0, %v728_v59  ;;  %v702_v59 = vsel %vm447_vm1, %v701_v38, %v2623_v13  ;;  %v2674_v13 = vunpack.i.h.bf16 %v3596_v37  ;;  %v4830_v37 = vrot.slane %v3255_v10, 1  ;;  %v699_v10 = vsel %vm455_vm5, %v698_v45, %v667_v39 }
 0x117   : > { %v703_v15 = vsel %vm449_vm2, %v702_v59, %v2628_v5  ;;  %v2969_v5 = vmov 0  }
 0x118   : > { %v502_v57 = vpop.permute.xlu1 %501  ;;  %v704_v41 = vsel %vm451_vm3, %v703_v15, %v2633_v20  ;;  %v799_v24 = vsel %vm457_vm6, %v798_v51, %v4830_v37  ;;  %2760 = vset.pattern.permute.xlu1 %v2969_v5  ;;  %2902 = vset.pattern.permute.xlu0 %v2969_v5  ;;  %v1133_v47 = vsel %vm453_vm4, %v1132_v4, %v2674_v13  ;;  %v852_v20 = vrot.slane %v3400_v46, 7 }
 0x119   : > { %2453 = vmatpush.msk.msra.mxu0 %vm445_vm0, %v502_v57  ;;  %506 = vperm.xlu1 %2760, %v385_v34   ;;  %v705_v42 = vsel %vm453_vm4, %v704_v41, %v2638_v22  ;;  %v700_v15 = vsel %vm457_vm6, %v699_v10, %v669_v49  ;;  %v454_v22 = vsel %vm453_vm4, %v452_v17, %v409_v1  ;;  %v2678_v49 = vunpack.i.l.bf16 %v3615_v53 }
 0x11a   : > { %2901 = vset.pattern.permute.xlu2 %v2969_v5  ;;  %v900_v46 = vsel %vm445_vm0, %v3331_v9, %v852_v20  ;;  %v2704_v51 = vunpack.i.h.bf16 %v3653_v35  ;;  %v456_v9 = vsel %vm455_vm5, %v454_v22, %v412_v21 }
 0x11d   : > { %v3648_v14 = vpop.permute.xlu0 %2706 }
 0x120   : > { %v3658_v40 = vpop.permute.xlu1 %2711 }
 0x121   : > { %v2714_v53 = vunpack.i.h.bf16 %v3658_v40 }
 0x125   : > { %v3678_v57 = vpop.permute.xlu0 %2716 }
 0x128   : > { %v2727_v25 = vpop.permute.xlu1 %2726 }
 0x129   : > { %v2728_v60 = vunpack.i.l.bf16 %v2727_v25  ;;  %v2729_v28 = vunpack.i.h.bf16 %v2727_v25  ;;  %v2693_v25 = vunpack.i.l.bf16 %v3619_v36  ;;  %v2684_v36 = vunpack.i.h.bf16 %v3617_v48 }
 0x12a   : > { %v2713_v48 = vunpack.i.l.bf16 %v3658_v40 }
 0x12b   : > { %844 = vmatpush.msra.mxu3 %v2729_v28  ;;  %v805_v38 = vsel %vm455_vm5, %v804_v6, %v2728_v60  ;;  %v2703_v60 = vunpack.i.l.bf16 %v3653_v35  ;;  %v907_v13 = vsel %vm445_vm0, %v2693_v25, %v2694_v31  ;;  %v2709_v6 = vunpack.i.h.bf16 %v3648_v14 }
 0x12c   : > { %v806_v54 = vsel %vm457_vm6, %v805_v38, %v2644_v8  ;;  %v2708_v8 = vunpack.i.l.bf16 %v3648_v14  ;;  %v2718_v35 = vunpack.i.l.bf16 %v3678_v57  ;;  %v2688_v14 = vunpack.i.l.bf16 %v3634_v32 }
 0x12d   : > { %v2722_v52 = vpop.permute.xlu0 %2721  ;;  %845 = vmatpush.msra.mxu3 %v806_v54  ;;  %v984_v45 = vsel %vm445_vm0, %v3393_v19, %v2703_v60  ;;  %v465_v40 = vsel %vm457_vm6, %v3561_v27, %v2684_v36  ;;  %v908_v34 = vsel %vm447_vm1, %v907_v13, %v2704_v51  ;;  %v458_v27 = vsel %vm457_vm6, %v456_v9, %v4833_v30 }
 0x12e   : > { %v2723_v18 = vunpack.i.l.bf16 %v2722_v52  ;;  %v2724_v59 = vunpack.i.h.bf16 %v2722_v52  ;;  %v985_v54 = vsel %vm447_vm1, %v984_v45, %v2708_v8 }
 0x12f   : > { %846 = vmatpush.msra.mxu3 %v799_v24  ;;  %v909_v24 = vsel %vm449_vm2, %v908_v34, %v2709_v6  ;;  %v986_v19 = vsel %vm449_vm2, %v985_v54, %v2713_v48 }
 0x130   : > { %745 = vmatpush.msrb.mxu2 %v2724_v59  ;;  %v1001_v39 = vpop.permute.xlu1 %1000  ;;  %v706_v43 = vsel %vm455_vm5, %v705_v42, %v2723_v18  ;;  %2460 = vmatmul.msk.f32.vlgmr.msra.gmra.mxu3 %vm509_vm7, %v3640_v16  ;;  %v910_v5 = vsel %vm451_vm3, %v909_v24, %v2714_v53  ;;  %v4834_v18 = vrot.slane %v3205_v44, 6  ;;  %v4835_v44 = vrot.slane %v3225_v55, 5 }
 0x131   : > { %2467 = vmatpush.msk.msrb.mxu3 %vm445_vm0, %v3613_v61  ;;  %v707_v2 = vsel %vm457_vm6, %v706_v43, %v2643_v12  ;;  %2463 = vmatpush.msk.msra.mxu1 %vm445_vm0, %v1001_v39  ;;  %v1134_v61 = vsel %vm455_vm5, %v1133_v47, %v2683_v58  ;;  %v987_v12 = vsel %vm451_vm3, %v986_v19, %v2718_v35  ;;  %v4836_v39 = vrot.slane %v3244_v63, 4 }
 0x132   : > { %746 = vmatpush.msrb.mxu2 %v707_v2  ;;  %v1135_v28 = vsel %vm457_vm6, %v1134_v61, %v2689_v62  ;;  %v901_v59 = vsel %vm447_vm1, %v900_v46, %v4834_v18 }
 0x133   : > { %1174 = vmatpush.msrb.mxu3 %v2679_v23 }
 0x134   : > { %747 = vmatpush.msrb.mxu2 %v700_v15 }
 0x135   : > { %1175 = vmatpush.msrb.mxu3 %v1135_v28  ;;  %v2737_v4 = vpop.permute.xlu0 %2736  ;;  %2458 = vmatmul.msk.f32.vlgmr.msrb.gmra.mxu2 %vm509_vm7, %v3640_v16 }
 0x136   : > { %2465 = vmatpush.msk.msra.mxu2 %vm445_vm0, %v3628_v50  ;;  %v2739_v38 = vunpack.i.h.bf16 %v2737_v4  ;;  %v2738_v41 = vunpack.i.l.bf16 %v2737_v4  ;;  %v2719_v50 = vunpack.i.h.bf16 %v3678_v57 }
 0x137   : > { %1176 = vmatpush.msrb.mxu3 %v3385_v11  ;;  %v2733_v11 = vunpack.i.l.bf16 %v3732_v33 }
 0x138   : > { %1090 = vmatpush.msra.mxu2 %v2678_v49  ;;  %528 = vmatpush.msra.mxu0 %v2738_v41  ;;  %v2747_v37 = vpop.permute.xlu1 %2746  ;;  %v1062_v32 = vsel %vm455_vm5, %v3610_v3, %v2739_v38  ;;  %v2752_v3 = vpop.permute.xlu2 %2751  ;;  %v911_v52 = vsel %vm453_vm4, %v910_v5, %v2719_v50 }
 0x139   : > { %v1063_v57 = vsel %vm457_vm6, %v1062_v32, %v2688_v14  ;;  %2468 = vmatmul.msk.f32.vlgmr.msrb.gmra.mxu3 %vm509_vm7, %v3640_v16  ;;  %v2748_v58 = vunpack.i.l.bf16 %v2747_v37  ;;  %v2754_v10 = vunpack.i.h.bf16 %v2752_v3  ;;  %v2753_v1 = vunpack.i.l.bf16 %v2752_v3 }
 0x13a   : > { %529 = vmatpush.msra.mxu0 %v465_v40  ;;  %1091 = vmatpush.msra.mxu2 %v1063_v57  ;;  %v988_v42 = vsel %vm453_vm4, %v987_v12, %v2733_v11  ;;  %v912_v17 = vsel %vm455_vm5, %v911_v52, %v2734_v0 }
 0x13b   : > { %v989_v20 = vsel %vm455_vm5, %v988_v42, %v2748_v58  ;;  %v913_v31 = vsel %vm457_vm6, %v912_v17, %v2753_v1 }
 0x13c   : > { %530 = vmatpush.msra.mxu0 %v458_v27  ;;  %1092 = vmatpush.msra.mxu2 %v3415_v56  ;;  %v902_v56 = vsel %vm449_vm2, %v901_v59, %v4835_v44  ;;  %v990_v33 = vsel %vm457_vm6, %v989_v20, %v2754_v10  ;;  %vm2139_vm2 = vcmask 818176  }
 0x13d   : > { %v2742_v62 = vpop.permute.xlu0 %2741  ;;  %2454 = vmatmul.msk.f32.vlgmr.msra.gmra.mxu0 %vm509_vm7, %v3640_v16  ;;  %2466 = vmatmul.msk.f32.vlgmr.msra.gmra.mxu2 %vm509_vm7, %v3640_v16  ;;  %v903_v43 = vsel %vm451_vm3, %v902_v56, %v4836_v39 }
 0x13e   : > { %2461 = vmatpush.msk.msrb.mxu0 %vm445_vm0, %v3683_v29  ;;  %v2743_v47 = vunpack.i.l.bf16 %v2742_v62  ;;  %v2744_v26 = vunpack.i.h.bf16 %v2742_v62  ;;  %v2749_v29 = vunpack.i.h.bf16 %v2747_v37  ;;  %vm2135_vm0 = vcmask 408576  }
 0x140   : > { %941 = vmatpush.msrb.mxu0 %v2743_v47  ;;  %1018 = vmatpush.msra.mxu1 %v2744_v26  ;;  %v904_v55 = vsel %vm453_vm4, %v903_v43, %v2749_v29  ;;  %vm2141_vm4 = vcmask 1022976  }
 0x142   : > { %942 = vmatpush.msrb.mxu0 %v913_v31  ;;  %1019 = vmatpush.msra.mxu1 %v990_v33 }
 0x144   : > { %1020 = vmatpush.msra.mxu1 %v3489_v7 }
 0x145   : > { %v2757_v23 = vpop.permute.xlu0 %2756  ;;  %2464 = vmatmul.msk.f32.vlgmr.msra.gmra.mxu1 %vm509_vm7, %v3640_v16 }
 0x146   : > { %v2759_v25 = vunpack.i.h.bf16 %v2757_v23  ;;  %v2758_v2 = vunpack.i.l.bf16 %v2757_v23 }
 0x148   : > { %v905_v15 = vsel %vm455_vm5, %v904_v55, %v2758_v2 }
 0x149   : > { %v906_v21 = vsel %vm457_vm6, %v905_v15, %v2759_v25  ;;  %vm2213_vm6 = vcmask 130048  }
 0x14a   : > { %943 = vmatpush.msrb.mxu0 %v906_v21 }
 0x14b   : > { %2462 = vmatmul.msk.f32.vlgmr.msrb.gmra.mxu0 %vm509_vm7, %v3640_v16 }
 0x18b   : > { %v650_v63 = vpop.f32.mrf.mxu2  ;;  %v507_v7 = vpop.permute.xlu1 %506 }
 0x18c   : > { %v651_v38 = vadd.f32 %v650_v63, %v507_v7 }
 0x18e   : > { %v653_v40 = vmax.f32 %v651_v38, 0.0 }
 0x1b3   : > { %v848_v61 = vpop.f32.mrf.mxu3 }
 0x1b4   : > { %v849_v60 = vadd.f32 %v848_v61, %v507_v7 }
 0x1b6   : > { %v851_v8 = vmax.f32 %v849_v60, 0.0 }
 0x1b8   : > { %v749_v22 = vpop.f32.mrf.mxu2 }
 0x1b9   : > { %v750_v36 = vadd.f32 %v749_v22, %v507_v7 }
 0x1ba   : > { %v532_v46 = vpop.f32.mrf.mxu0 }
 0x1bb   : > { %v752_v51 = vmax.f32 %v750_v36, 0.0  ;;  %v533_v35 = vadd.f32 %v532_v46, %v507_v7 }
 0x1bc   : > { %v1178_v28 = vpop.f32.mrf.mxu3 }
 0x1bd   : > { %v1179_v49 = vadd.f32 %v1178_v28, %v507_v7  ;;  %v1185_v9 = vmax.f32 %v752_v51, %v851_v8  ;;  %v535_v50 = vmax.f32 %v533_v35, 0.0 }
 0x1bf   : > { %v1181_v4 = vmax.f32 %v1179_v49, 0.0  ;;  %v1182_v37 = vmax.f32 %v535_v50, %v653_v40 }
 0x1c0   : > { %v1094_v13 = vpop.f32.mrf.mxu2 }
 0x1c1   : > { %v1095_v48 = vadd.f32 %v1094_v13, %v507_v7 }
 0x1c2   : > { %v1022_v6 = vpop.f32.mrf.mxu1 }
 0x1c3   : > { %v1097_v53 = vmax.f32 %v1095_v48, 0.0  ;;  %v1023_v16 = vadd.f32 %v1022_v6, %v507_v7 }
 0x1c5   : > { %v1186_v41 = vmax.f32 %v1097_v53, %v1181_v4  ;;  %v1025_v54 = vmax.f32 %v1023_v16, 0.0 }
 0x1c7   : > { %v3820_v45 = vmax.f32 %v1185_v9, %v1186_v41 }
 0x1c8   : > { %v945_v14 = vpop.f32.mrf.mxu0 }
 0x1c9   : > { %v946_v34 = vadd.f32 %v945_v14, %v507_v7  ;;  %1280 = vst.msk [vmem:[#allocation2 + $0x18] sm:$0x3f] %vm1188_vm8, %v3820_v45 }
 0x1cb   : > { %v948_v11 = vmax.f32 %v946_v34, 0.0 }
 0x1cd   : > { %v1183_v32 = vmax.f32 %v948_v11, %v1025_v54 }
 0x1cf   : > { %v3824_v24 = vmax.f32 %v1182_v37, %v1183_v32 }
 0x1d1   : > { %1255 = vrot.lane.b32.xlu2 %v3824_v24, %s4784_s30  ;;  %1196 = vrot.lane.b32.xlu0 %v3824_v24, %s2971_s12  ;;  %1189 = vst.msk [vmem:[#allocation2] sm:$0x3f] %vm1188_vm8, %v3824_v24  ;;  %s4790_s30 = smov 74  }
 0x1d2   : > { %1191 = vrot.lane.b32.xlu1 %v3824_v24, %s4813_s13 }
 0x1d9   : > { %1259 = vrot.lane.b32.xlu2 %v3824_v24, %s4785_s14  ;;  %1206 = vrot.lane.b32.xlu0 %v3824_v24, %s4789_s16  ;;  %s4791_s14 = smov 109   ;;  %s4796_s16 = smov 118  }
 0x1da   : > { %1250 = vrot.lane.b32.xlu1 %v3824_v24, %s4786_s22  ;;  %s4792_s22 = smov 127  }
 0x1e1   : > { %1263 = vrot.lane.b32.xlu2 %v3824_v24, %s4787_s24  ;;  %1211 = vrot.lane.b32.xlu0 %v3824_v24, %s4788_s25  ;;  %s4793_s24 = smov 81   ;;  %s4794_s25 = smov 72  }
 0x1e2   : > { %1201 = vrot.lane.b32.xlu1 %v3824_v24, %s2978_s29 }
 0x1e9   : > { %1216 = vrot.lane.b32.xlu2 %v3824_v24, %s4790_s30  ;;  %1230 = vrot.lane.b32.xlu0 %v3824_v24, %s4791_s14  ;;  %s4798_s30 = smov 91   ;;  %s4799_s14 = smov 82  }
 0x1ea   : > { %1221 = vrot.lane.b32.xlu1 %v3824_v24, %s4792_s22  ;;  %s4800_s22 = smov 90  }
 0x1f1   : > { %1271 = vrot.lane.b32.xlu2 %v3824_v24, %s4793_s24  ;;  %1275 = vrot.lane.b32.xlu0 %v3824_v24, %s4794_s25  ;;  %s4801_s24 = smov 73   ;;  %s4802_s25 = smov 102  }
 0x1f2   : > { %1226 = vrot.lane.b32.xlu1 %v3824_v24, %s4796_s16  ;;  %s2990_s16 = smov 100  }
 0x1f9   : > { %1238 = vrot.lane.b32.xlu2 %v3824_v24, %s4798_s30  ;;  %1242 = vrot.lane.b32.xlu0 %v3824_v24, %s4799_s14  ;;  %s4803_s30 = smov 120   ;;  %s4804_s14 = smov 65  }
 0x1fa   : > { %1267 = vrot.lane.b32.xlu1 %v3824_v24, %s4800_s22  ;;  %s4805_s22 = smov 111  }
 0x201   : > { %1246 = vrot.lane.b32.xlu2 %v3824_v24, %s4801_s24  ;;  %1402 = vrot.lane.b32.xlu0 %v3824_v24, %s4802_s25  ;;  %s4806_s24 = smov 93   ;;  %s4807_s25 = smov 112  }
 0x202   : > { %1234 = vrot.lane.b32.xlu1 %v3824_v24, %s2990_s16 }
 0x209   : > { %1393 = vrot.lane.b32.xlu2 %v3824_v24, %s4803_s30  ;;  %1429 = vrot.lane.b32.xlu0 %v3824_v24, %s4804_s14  ;;  %s2996_s30 = smov 84   ;;  %s4809_s14 = smov 103  }
 0x20a   : > { %1398 = vrot.lane.b32.xlu1 %v3824_v24, %s4805_s22  ;;  %s4810_s22 = smov 75  }
 0x211   : > { %1406 = vrot.lane.b32.xlu2 %v3824_v24, %s4806_s24  ;;  %1369 = vrot.lane.b32.xlu0 %v3824_v24, %s4807_s25  ;;  %s4812_s24 = smov 85   ;;  %s4814_s25 = smov 94  }
 0x212   : > { %1364 = vrot.lane.b32.xlu1 %v3824_v24, %s4808_s15  ;;  %s3001_s15 = smov 66  }
 0x219   : > { %1410 = vrot.lane.b32.xlu2 %v3824_v24, %s2996_s30  ;;  %1373 = vrot.lane.b32.xlu0 %v3824_v24, %s4809_s14  ;;  %s4816_s14 = smov 67  }
 0x21a   : > { %1414 = vrot.lane.b32.xlu1 %v3824_v24, %s4810_s22  ;;  %s4817_s22 = smov 76  }
 0x221   : > { %1381 = vrot.lane.b32.xlu2 %v3824_v24, %s4812_s24  ;;  %1377 = vrot.lane.b32.xlu0 %v3824_v24, %s4814_s25  ;;  %s4837_s24 = smov 118   ;;  %s4839_s25 = smov 127  }
 0x222   : > { %1418 = vrot.lane.b32.xlu1 %v3824_v24, %s3001_s15 }
 0x229   : > { %1282 = vrot.lane.b32.xlu2 %v3820_v45, %s4813_s13  ;;  %1389 = vrot.lane.b32.xlu0 %v3824_v24, %s4816_s14  ;;  %s4838_s13 = smov 92   ;;  %s4840_s14 = smov 109  }
 0x22a   : > { %1385 = vrot.lane.b32.xlu1 %v3824_v24, %s4817_s22  ;;  %s4841_s22 = smov 126  }
 0x22b   : > { %v1256_v19 = vpop.permute.xlu2 %1255 }
 0x231   : > { %1290 = vrot.lane.b32.xlu2 %v3820_v45, %s2978_s29  ;;  %1286 = vrot.lane.b32.xlu0 %v3820_v45, %s2971_s12  ;;  %s4842_s29 = smov 83   ;;  %s4843_s12 = smov 108  }
 0x232   : > { %1311 = vrot.lane.b32.xlu1 %v3820_v45, %s4837_s24 }
 0x233   : > { %v1260_v57 = vpop.permute.xlu2 %1259 }
 0x239   : > { %1294 = vrot.lane.b32.xlu2 %v3820_v45, %s4838_s13  ;;  %1306 = vrot.lane.b32.xlu0 %v3820_v45, %s4839_s25  ;;  %s4844_s13 = smov 117   ;;  %s4847_s25 = smov 91  }
 0x23a   : > { %1315 = vrot.lane.b32.xlu1 %v3820_v45, %s4840_s14  ;;  %s4845_s14 = smov 74  }
 0x23b   : > { %v1264_v30 = vpop.permute.xlu2 %1263 }
 0x241   : > { %1335 = vrot.lane.b32.xlu2 %v3820_v45, %s4841_s22  ;;  %1298 = vrot.lane.b32.xlu0 %v3820_v45, %s4842_s29  ;;  %s4846_s22 = smov 90   ;;  %s4848_s29 = smov 73  }
 0x242   : > { %1344 = vrot.lane.b32.xlu1 %v3820_v45, %s4843_s12  ;;  %s4849_s12 = smov 81  }
 0x243   : > { %v1217_v27 = vpop.permute.xlu2 %1216  ;;  %v1197_v0 = vpop.permute.xlu0 %1196 }
 0x244   : > { %v1192_v5 = vpop.permute.xlu1 %1191 }
 0x245   : > { %1195 = vst.msk [vmem:[#allocation2] sm:$0x3f] %vm1194_vm9, %v1192_v5 }
 0x246   : > { %1423 = vst.msk [vmem:[#allocation2 + $0x40] sm:$0x3f] %vm1188_vm8, %v1192_v5 }
 0x247   : > { %1424 = vst.msk [vmem:[#allocation2 + $0x40] sm:$0x3f] %vm1194_vm9, %v1197_v0 }
 0x248   : > { %1200 = vst.msk [vmem:[#allocation2] sm:$0x3f] %vm1199_vm10, %v1197_v0 }
 0x249   : > { %1340 = vrot.lane.b32.xlu2 %v3820_v45, %s4844_s13  ;;  %1302 = vrot.lane.b32.xlu0 %v3820_v45, %s4845_s14  ;;  %s4850_s13 = smov 99   ;;  %s4851_s14 = smov 72  }
 0x24a   : > { %1352 = vrot.lane.b32.xlu1 %v3820_v45, %s4846_s22  ;;  %s4852_s22 = smov 93  }
 0x24b   : > { %v1272_v12 = vpop.permute.xlu2 %1271  ;;  %v1207_v3 = vpop.permute.xlu0 %1206 }
 0x24c   : > { %v1251_v58 = vpop.permute.xlu1 %1250 }
 0x24d   : > { %1254 = vst.msk [vmem:[#allocation2 + $0x10] sm:$0x3f] %vm1188_vm8, %v1251_v58 }
 0x24e   : > { %1258 = vst.msk [vmem:[#allocation2 + $0x10] sm:$0x3f] %vm1194_vm9, %v1256_v19 }
 0x24f   : > { %1262 = vst.msk [vmem:[#allocation2 + $0x10] sm:$0x3f] %vm1199_vm10, %v1260_v57 }
 0x250   : > { %1266 = vst.msk [vmem:[#allocation2 + $0x10] sm:$0x3f] %vm1204_vm11, %v1264_v30 }
 0x251   : > { %1323 = vrot.lane.b32.xlu2 %v3820_v45, %s4847_s25  ;;  %1319 = vrot.lane.b32.xlu0 %v3820_v45, %s2990_s16  ;;  %s4853_s25 = smov 82  }
 0x252   : > { %1331 = vrot.lane.b32.xlu1 %v3820_v45, %s4848_s29  ;;  %s4854_s29 = smov 111  }
 0x253   : > { %v1239_v52 = vpop.permute.xlu2 %1238  ;;  %v1212_v18 = vpop.permute.xlu0 %1211 }
 0x254   : > { %v1202_v59 = vpop.permute.xlu1 %1201 }
 0x255   : > { %1205 = vst.msk [vmem:[#allocation2] sm:$0x3f] %vm1204_vm11, %v1202_v59 }
 0x256   : > { %1210 = vst.msk [vmem:[#allocation2] sm:$0x3f] %vm1209_vm12, %v1207_v3 }
 0x257   : > { %1215 = vst.msk [vmem:[#allocation2] sm:$0x3f] %vm1214_vm13, %v1212_v18 }
 0x258   : > { %1220 = vst.msk [vmem:[#allocation2] sm:$0x3f] %vm1219_vm14, %v1217_v27 }
 0x259   : > { %1425 = vst.msk [vmem:[#allocation2 + $0x40] sm:$0x3f] %vm1199_vm10, %v1202_v59  ;;  %1356 = vrot.lane.b32.xlu2 %v3820_v45, %s4849_s12  ;;  %1348 = vrot.lane.b32.xlu0 %v3820_v45, %s4850_s13  ;;  %s4855_s12 = smov 120   ;;  %s4856_s13 = smov 112  }
 0x25a   : > { %1426 = vst.msk [vmem:[#allocation2 + $0x40] sm:$0x3f] %vm1204_vm11, %v1207_v3  ;;  %1360 = vrot.lane.b32.xlu1 %v3820_v45, %s4851_s14 }
 0x25b   : > { %1427 = vst.msk [vmem:[#allocation2 + $0x40] sm:$0x3f] %vm1209_vm12, %v1212_v18  ;;  %v1247_v10 = vpop.permute.xlu2 %1246  ;;  %v1231_v1 = vpop.permute.xlu0 %1230 }
 0x25c   : > { %1428 = vst.msk [vmem:[#allocation2 + $0x40] sm:$0x3f] %vm1214_vm13, %v1217_v27  ;;  %v1222_v62 = vpop.permute.xlu1 %1221 }
 0x25d   : > { %1225 = vst.msk [vmem:[#allocation2 + $0x8] sm:$0x3f] %vm1188_vm8, %v1222_v62 }
 0x25f   : > { %v4066_v5 = vld [vmem:[#allocation2] sm:$0x3f] }
 0x261   : > { %1475 = vrot.lane.b32.xlu2 %v3820_v45, %s4852_s22  ;;  %1327 = vrot.lane.b32.xlu0 %v3820_v45, %s4853_s25  ;;  %s4857_s22 = smov 102   ;;  %s4860_s25 = smov 75  }
 0x262   : > { %1467 = vrot.lane.b32.xlu1 %v3820_v45, %s4854_s29  ;;  %s4861_s29 = smov 94  }
 0x263   : > { %v1394_v42 = vpop.permute.xlu2 %1393  ;;  %v1276_v47 = vpop.permute.xlu0 %1275 }
 0x264   : > { %1397 = vst.msk [vmem:[#allocation2 + $0x38] sm:$0x3f] %vm1188_vm8, %v1394_v42  ;;  %v1227_v26 = vpop.permute.xlu1 %1226 }
 0x265   : > { %1229 = vst.msk [vmem:[#allocation2 + $0x8] sm:$0x3f] %vm1194_vm9, %v1227_v26 }
 0x266   : > { %1233 = vst.msk [vmem:[#allocation2 + $0x8] sm:$0x3f] %vm1199_vm10, %v1231_v1 }
 0x269   : > { %1487 = vrot.lane.b32.xlu2 %v3820_v45, %s3001_s15  ;;  %1462 = vrot.lane.b32.xlu0 %v3820_v45, %s4855_s12  ;;  %s4858_s15 = smov 121   ;;  %s4862_s12 = smov 76  }
 0x26a   : > { %1479 = vrot.lane.b32.xlu1 %v3820_v45, %s2996_s30  ;;  %s4859_s30 = smov 103  }
 0x26b   : > { %v1407_v17 = vpop.permute.xlu2 %1406  ;;  %v1243_v20 = vpop.permute.xlu0 %1242 }
 0x26c   : > { %v1268_v44 = vpop.permute.xlu1 %1267 }
 0x26d   : > { %1270 = vst.msk [vmem:[#allocation2 + $0x10] sm:$0x3f] %vm1209_vm12, %v1268_v44 }
 0x26e   : > { %1274 = vst.msk [vmem:[#allocation2 + $0x10] sm:$0x3f] %vm1214_vm13, %v1272_v12 }
 0x26f   : > { %1278 = vst.msk [vmem:[#allocation2 + $0x10] sm:$0x3f] %vm1219_vm14, %v1276_v47 }
 0x271   : > { %1438 = vrot.lane.b32.xlu2 %v3820_v45, %s4856_s13  ;;  %1471 = vrot.lane.b32.xlu0 %v3820_v45, %s4857_s22  ;;  %s4863_s13 = smov 85   ;;  %s4864_s22 = smov 67  }
 0x272   : > { %1433 = vrot.lane.b32.xlu1 %v3820_v45, %s4858_s15  ;;  %s4865_s15 = smov 65  }
 0x273   : > { %v1411_v56 = vpop.permute.xlu2 %1410  ;;  %v1403_v29 = vpop.permute.xlu0 %1402 }
 0x274   : > { %v1235_v31 = vpop.permute.xlu1 %1234 }
 0x275   : > { %1237 = vst.msk [vmem:[#allocation2 + $0x8] sm:$0x3f] %vm1204_vm11, %v1235_v31 }
 0x276   : > { %1241 = vst.msk [vmem:[#allocation2 + $0x8] sm:$0x3f] %vm1209_vm12, %v1239_v52  ;;  %v4004_v2 = vld [vmem:[#allocation2 + $0x10] sm:$0x3f] }
 0x277   : > { %1245 = vst.msk [vmem:[#allocation2 + $0x8] sm:$0x3f] %vm1214_vm13, %v1243_v20  ;;  %v4022_v13 = vrot.slane %v4004_v2, 4  ;;  %v1702_v44 = vrot.slane %v4004_v2, 6 }
 0x278   : > { %1249 = vst.msk [vmem:[#allocation2 + $0x8] sm:$0x3f] %vm1219_vm14, %v1247_v10 }
 0x279   : > { %1442 = vrot.lane.b32.xlu2 %v3820_v45, %s4859_s30  ;;  %1483 = vrot.lane.b32.xlu0 %v3820_v45, %s4860_s25  ;;  %s3004_s30 = smov 123  }
 0x27a   : > { %1446 = vrot.lane.b32.xlu1 %v3820_v45, %s4861_s29 }
 0x27b   : > { %v1382_v33 = vpop.permute.xlu2 %1381  ;;  %v1430_v39 = vpop.permute.xlu0 %1429 }
 0x27c   : > { %1432 = vst.msk [vmem:[#allocation2 + $0x40] sm:$0x3f] %vm1219_vm14, %v1430_v39  ;;  %v1399_v43 = vpop.permute.xlu1 %1398 }
 0x27d   : > { %1401 = vst.msk [vmem:[#allocation2 + $0x38] sm:$0x3f] %vm1194_vm9, %v1399_v43 }
 0x27e   : > { %1405 = vst.msk [vmem:[#allocation2 + $0x38] sm:$0x3f] %vm1199_vm10, %v1403_v29 }
 0x27f   : > { %1409 = vst.msk [vmem:[#allocation2 + $0x38] sm:$0x3f] %vm1204_vm11, %v1407_v17  ;;  %v4039_v50 = vld [vmem:[#allocation2 + $0x8] sm:$0x3f] }
 0x280   : > { %1413 = vst.msk [vmem:[#allocation2 + $0x38] sm:$0x3f] %vm1209_vm12, %v1411_v56  ;;  %v4042_v40 = vrot.slane %v4039_v50, 2  ;;  %v1522_v19 = vrot.slane %v4039_v50, 4 }
 0x281   : > { %1454 = vrot.lane.b32.xlu2 %v3820_v45, %s4862_s12  ;;  %1450 = vrot.lane.b32.xlu0 %v3820_v45, %s4863_s13  ;;  %s3006_s12 = smov 50   ;;  %s3007_s13 = smov 25  }
 0x282   : > { %1458 = vrot.lane.b32.xlu1 %v3820_v45, %s4864_s22  ;;  %s3008_s22 = smov 97  }
 0x283   : > { %v1283_v23 = vpop.permute.xlu2 %1282  ;;  %v1370_v55 = vpop.permute.xlu0 %1369  ;;  %v4081_v10 = vld [vmem:[#allocation2 + $0x40] sm:$0x3f] }
 0x284   : > { %1285 = vst.msk [vmem:[#allocation2 + $0x18] sm:$0x3f] %vm1194_vm9, %v1283_v23  ;;  %v1365_v25 = vpop.permute.xlu1 %1364  ;;  %v4084_v42 = vrot.slane %v4081_v10, 2 }
 0x285   : > { %1492 = vst.msk [vmem:[#allocation2 + $0x58] sm:$0x3f] %vm1188_vm8, %v1283_v23 }
 0x286   : > { %1368 = vst.msk [vmem:[#allocation2 + $0x30] sm:$0x3f] %vm1188_vm8, %v1365_v25 }
 0x287   : > { %1372 = vst.msk [vmem:[#allocation2 + $0x30] sm:$0x3f] %vm1194_vm9, %v1370_v55 }
 0x289   : > { %1498 = vrot.lane.b32.xlu2 %v3820_v45, %s4865_s15  ;;  %s3009_s15 = smov 47  }
 0x28a   : > { %1595 = vrot.lane.b32.xlu1 %v4004_v2, %s3004_s30 }
 0x28b   : > { %v1291_v15 = vpop.permute.xlu2 %1290  ;;  %v1374_v21 = vpop.permute.xlu0 %1373 }
 0x28c   : > { %1376 = vst.msk [vmem:[#allocation2 + $0x30] sm:$0x3f] %vm1199_vm10, %v1374_v21  ;;  %v1415_v63 = vpop.permute.xlu1 %1414  ;;  %v1724_v21 = vrot.slane %v4004_v2, 2 }
 0x28d   : > { %1417 = vst.msk [vmem:[#allocation2 + $0x38] sm:$0x3f] %vm1214_vm13, %v1415_v63 }
 0x293   : > { %v1295_v61 = vpop.permute.xlu2 %1294  ;;  %v1378_v22 = vpop.permute.xlu0 %1377 }
 0x294   : > { %1380 = vst.msk [vmem:[#allocation2 + $0x30] sm:$0x3f] %vm1204_vm11, %v1378_v22  ;;  %v1419_v7 = vpop.permute.xlu1 %1418 }
 0x295   : > { %1384 = vst.msk [vmem:[#allocation2 + $0x30] sm:$0x3f] %vm1209_vm12, %v1382_v33 }
 0x296   : > { %1421 = vst.msk [vmem:[#allocation2 + $0x38] sm:$0x3f] %vm1219_vm14, %v1419_v7  ;;  %v4119_v7 = vrot.slane %v4081_v10, 4 }
 0x29b   : > { %v1336_v36 = vpop.permute.xlu2 %1335  ;;  %v1390_v60 = vpop.permute.xlu0 %1389 }
 0x29c   : > { %1339 = vst.msk [vmem:[#allocation2 + $0x28] sm:$0x3f] %vm1188_vm8, %v1336_v36  ;;  %v1386_v28 = vpop.permute.xlu1 %1385 }
 0x29d   : > { %1388 = vst.msk [vmem:[#allocation2 + $0x30] sm:$0x3f] %vm1214_vm13, %v1386_v28 }
 0x29e   : > { %1392 = vst.msk [vmem:[#allocation2 + $0x30] sm:$0x3f] %vm1219_vm14, %v1390_v60 }
 0x2a3   : > { %v1341_v46 = vpop.permute.xlu2 %1340  ;;  %v1287_v49 = vpop.permute.xlu0 %1286 }
 0x2a4   : > { %1343 = vst.msk [vmem:[#allocation2 + $0x28] sm:$0x3f] %vm1194_vm9, %v1341_v46  ;;  %v1312_v51 = vpop.permute.xlu1 %1311 }
 0x2a5   : > { %1289 = vst.msk [vmem:[#allocation2 + $0x18] sm:$0x3f] %vm1199_vm10, %v1287_v49  ;;  %v4018_v8 = vld [vmem:[#allocation2 + $0x30] sm:$0x3f] }
 0x2a6   : > { %1293 = vst.msk [vmem:[#allocation2 + $0x18] sm:$0x3f] %vm1204_vm11, %v1291_v15  ;;  %v1560_v6 = vrot.slane %v4018_v8, 6 }
 0x2a7   : > { %1493 = vst.msk [vmem:[#allocation2 + $0x58] sm:$0x3f] %vm1194_vm9, %v1287_v49 }
 0x2a8   : > { %1494 = vst.msk [vmem:[#allocation2 + $0x58] sm:$0x3f] %vm1199_vm10, %v1291_v15  ;;  %v2761_v48 = vpack.i.bf16 %v1560_v6, %v4022_v13 }
 0x2a9   : > { %1297 = vst.msk [vmem:[#allocation2 + $0x18] sm:$0x3f] %vm1209_vm12, %v1295_v61 }
 0x2aa   : > { %1495 = vst.msk [vmem:[#allocation2 + $0x58] sm:$0x3f] %vm1204_vm11, %v1295_v61  ;;  %2762 = vrot.lane.b32.xlu1 %v2761_v48, %s3004_s30 }
 0x2ab   : > { %v1324_v4 = vpop.permute.xlu2 %1323  ;;  %v1307_v9 = vpop.permute.xlu0 %1306 }
 0x2ac   : > { %1310 = vst.msk [vmem:[#allocation2 + $0x20] sm:$0x3f] %vm1188_vm8, %v1307_v9  ;;  %v1316_v53 = vpop.permute.xlu1 %1315 }
 0x2ad   : > { %1314 = vst.msk [vmem:[#allocation2 + $0x20] sm:$0x3f] %vm1194_vm9, %v1312_v51 }
 0x2ae   : > { %1318 = vst.msk [vmem:[#allocation2 + $0x20] sm:$0x3f] %vm1199_vm10, %v1316_v53 }
 0x2b3   : > { %v1357_v35 = vpop.permute.xlu2 %1356  ;;  %v1299_v38 = vpop.permute.xlu0 %1298 }
 0x2b4   : > { %1301 = vst.msk [vmem:[#allocation2 + $0x18] sm:$0x3f] %vm1214_vm13, %v1299_v38  ;;  %v1345_v16 = vpop.permute.xlu1 %1344 }
 0x2b5   : > { %1496 = vst.msk [vmem:[#allocation2 + $0x58] sm:$0x3f] %vm1209_vm12, %v1299_v38 }
 0x2b6   : > { %1347 = vst.msk [vmem:[#allocation2 + $0x28] sm:$0x3f] %vm1199_vm10, %v1345_v16 }
 0x2bb   : > { %v1476_v41 = vpop.permute.xlu2 %1475  ;;  %v1303_v14 = vpop.permute.xlu0 %1302 }
 0x2bc   : > { %1305 = vst.msk [vmem:[#allocation2 + $0x18] sm:$0x3f] %vm1219_vm14, %v1303_v14  ;;  %v1353_v45 = vpop.permute.xlu1 %1352 }
 0x2bd   : > { %1497 = vst.msk [vmem:[#allocation2 + $0x58] sm:$0x3f] %vm1214_vm13, %v1303_v14 }
 0x2c3   : > { %v4044_v34 = vpop.permute.xlu2 %1487  ;;  %v1320_v54 = vpop.permute.xlu0 %1319  ;;  %v4046_v11 = vld [vmem:[#allocation2 + $0x18] sm:$0x3f] }
 0x2c4   : > { %1322 = vst.msk [vmem:[#allocation2 + $0x20] sm:$0x3f] %vm1204_vm11, %v1320_v54  ;;  %v1332_v37 = vpop.permute.xlu1 %1331  ;;  %v2766_v32 = vpack.i.bf16 %v4046_v11, %v4042_v40  ;;  %v4052_v24 = vrot.slane %v4046_v11, 2  ;;  %v4059_v57 = vsel %vm455_vm5, %v4046_v11, %v4042_v40  ;;  %v1713_v28 = vrot.slane %v4046_v11, 4 }
 0x2c5   : > { %1326 = vst.msk [vmem:[#allocation2 + $0x20] sm:$0x3f] %vm1209_vm12, %v1324_v4  ;;  %v1540_v4 = vrot.slane %v4066_v5, 4 }
 0x2c6   : > { %2767 = vrot.lane.b32.xlu0 %v2766_v32, %s3004_s30  ;;  %v4064_v30 = vsel %vm451_vm3, %v4052_v24, %v1522_v19  ;;  %v2771_v3 = vpack.i.bf16 %v4052_v24, %v4066_v5 }
 0x2cb   : > { %v1439_v27 = vpop.permute.xlu2 %1438  ;;  %v1349_v0 = vpop.permute.xlu0 %1348 }
 0x2cc   : > { %1351 = vst.msk [vmem:[#allocation2 + $0x28] sm:$0x3f] %vm1204_vm11, %v1349_v0  ;;  %v1361_v12 = vpop.permute.xlu1 %1360 }
 0x2cd   : > { %1355 = vst.msk [vmem:[#allocation2 + $0x28] sm:$0x3f] %vm1209_vm12, %v1353_v45  ;;  %v1544_v45 = vrot.slane %v4046_v11, 6 }
 0x2ce   : > { %1359 = vst.msk [vmem:[#allocation2 + $0x28] sm:$0x3f] %vm1214_vm13, %v1357_v35  ;;  %2772 = vrot.lane.b32.xlu0 %v2771_v3, %s3004_s30 }
 0x2cf   : > { %1363 = vst.msk [vmem:[#allocation2 + $0x28] sm:$0x3f] %vm1219_vm14, %v1361_v12 }
 0x2d3   : > { %v1443_v58 = vpop.permute.xlu2 %1442  ;;  %v1328_v52 = vpop.permute.xlu0 %1327 }
 0x2d4   : > { %1330 = vst.msk [vmem:[#allocation2 + $0x20] sm:$0x3f] %vm1214_vm13, %v1328_v52  ;;  %v1468_v18 = vpop.permute.xlu1 %1467 }
 0x2d5   : > { %1334 = vst.msk [vmem:[#allocation2 + $0x20] sm:$0x3f] %vm1219_vm14, %v1332_v37 }
 0x2d6   : > { %v4077_v59 = vld [vmem:[#allocation2 + $0x28] sm:$0x3f] }
 0x2d7   : > { %1767 = vrot.lane.b32.xlu1 %v4077_v59, %s3004_s30  ;;  %v1957_v9 = vrot.slane %v4077_v59, 2  ;;  %v1729_v54 = vrot.slane %v4077_v59, 4 }
 0x2db   : > { %v1455_v1 = vpop.permute.xlu2 %1454  ;;  %v1463_v62 = vpop.permute.xlu0 %1462 }
 0x2dc   : > { %1466 = vst.msk [vmem:[#allocation2 + $0x50] sm:$0x3f] %vm1188_vm8, %v1463_v62  ;;  %v1480_v47 = vpop.permute.xlu1 %1479  ;;  %v1511_v26 = vld [vmem:[#allocation2 + $0x20] sm:$0x3f] }
 0x2dd   : > { %1470 = vst.msk [vmem:[#allocation2 + $0x50] sm:$0x3f] %vm1194_vm9, %v1468_v18  ;;  %v2776_v17 = vpack.i.bf16 %v1511_v26, %v4084_v42  ;;  %v4089_v20 = vrot.slane %v1511_v26, 4  ;;  %v1525_v56 = vrot.slane %v1511_v26, 6  ;;  %v1551_v16 = vrot.slane %v1511_v26, 2 }
 0x2df   : > { %2777 = vrot.lane.b32.xlu0 %v2776_v17, %s3004_s30  ;;  %v2781_v29 = vpack.i.bf16 %v1702_v44, %v4089_v20  ;;  %v4097_v31 = vsel %vm447_vm1, %v1522_v19, %v1525_v56  ;;  %v2786_v23 = vpack.i.bf16 %v1525_v56, %v1522_v19  ;;  %v1991_v37 = vsel %vm455_vm5, %v4039_v50, %v1551_v16 }
 0x2e0   : > { %v4180_v26 = vsel %vm447_vm1, %v4089_v20, %v1702_v44 }
 0x2e1   : > { %2782 = vrot.lane.b32.xlu2 %v2781_v29, %s3004_s30 }
 0x2e3   : > { %v1499_v33 = vpop.permute.xlu2 %1498  ;;  %v1472_v39 = vpop.permute.xlu0 %1471 }
 0x2e4   : > { %1501 = vst.msk [vmem:[#allocation2 + $0x58] sm:$0x3f] %vm1219_vm14, %v1499_v33  ;;  %v1434_v43 = vpop.permute.xlu1 %1433 }
 0x2e5   : > { %1474 = vst.msk [vmem:[#allocation2 + $0x50] sm:$0x3f] %vm1199_vm10, %v1472_v39 }
 0x2e6   : > { %1478 = vst.msk [vmem:[#allocation2 + $0x50] sm:$0x3f] %vm1204_vm11, %v1476_v41  ;;  %v4142_v41 = vld [vmem:[#allocation2 + $0x38] sm:$0x3f] }
 0x2e7   : > { %1482 = vst.msk [vmem:[#allocation2 + $0x50] sm:$0x3f] %vm1209_vm12, %v1480_v47  ;;  %v1534_v12 = vrot.slane %v4142_v41, 6  ;;  %v1576_v18 = vrot.slane %v4142_v41, 2  ;;  %v4174_v47 = vsel %vm451_vm3, %v4042_v40, %v4089_v20  ;;  %v1992_v20 = vsel %vm451_vm3, %v1551_v16, %v4022_v13 }
 0x2e8   : > { %1437 = vst.msk [vmem:[#allocation2 + $0x48] sm:$0x3f] %vm1188_vm8, %v1434_v43  ;;  %vm2148_vm8 = vcmask 793600  }
 0x2e9   : > { %1441 = vst.msk [vmem:[#allocation2 + $0x48] sm:$0x3f] %vm1194_vm9, %v1439_v27  ;;  %2787 = vrot.lane.b32.xlu2 %v2786_v23, %s3004_s30  ;;  %vm2150_vm9 = vcmask 998400  }
 0x2ea   : > { %1445 = vst.msk [vmem:[#allocation2 + $0x48] sm:$0x3f] %vm1199_vm10, %v1443_v58  ;;  %v2826_v58 = vpack.i.bf16 %v1544_v45, %v1991_v37  ;;  %vm2152_vm10 = vcmask 154624  }
 0x2eb   : > { %v1484_v55 = vpop.permute.xlu0 %1483  ;;  %v4108_v25 = vld [vmem:[#allocation2 + $0x58] sm:$0x3f] }
 0x2ec   : > { %1486 = vst.msk [vmem:[#allocation2 + $0x50] sm:$0x3f] %vm1214_vm13, %v1484_v55  ;;  %v1447_v15 = vpop.permute.xlu1 %1446  ;;  %v1973_v63 = vrot.slane %v4108_v25, 4  ;;  %v1753_v22 = vrot.slane %v4108_v25, 6 }
 0x2ed   : > { %1490 = vst.msk [vmem:[#allocation2 + $0x50] sm:$0x3f] %vm1219_vm14, %v4044_v34 }
 0x2ee   : > { %1449 = vst.msk [vmem:[#allocation2 + $0x48] sm:$0x3f] %vm1204_vm11, %v1447_v15  ;;  %v2796_v61 = vpack.i.bf16 %v1724_v21, %v1973_v63  ;;  %v1771_v60 = vsel %vm447_vm1, %v4119_v7, %v1753_v22  ;;  %vm2154_vm11 = vcmask 359424  }
 0x2ef   : > { %v2806_v48 = vpack.i.bf16 %v4039_v50, %v1771_v60 }
 0x2f0   : > { %2797 = vrot.lane.b32.xlu1 %v2796_v61, %s3004_s30 }
 0x2f3   : > { %v1451_v36 = vpop.permute.xlu0 %1450 }
 0x2f4   : > { %1453 = vst.msk [vmem:[#allocation2 + $0x48] sm:$0x3f] %vm1209_vm12, %v1451_v36  ;;  %v4125_v46 = vld [vmem:[#allocation2 + $0x50] sm:$0x3f]  ;;  %v1459_v49 = vpop.permute.xlu1 %1458  ;;  %vm2156_vm12 = vcmask 564224  }
 0x2f5   : > { %1457 = vst.msk [vmem:[#allocation2 + $0x48] sm:$0x3f] %vm1214_vm13, %v1455_v1  ;;  %v1749_v51 = vrot.slane %v4125_v46, 2  ;;  %v4130_v6 = vpack.i.bf16 %v1713_v28, %v4125_v46  ;;  %v1989_v1 = vrot.slane %v4077_v59, 6  ;;  %v1579_v61 = vrot.slane %v4125_v46, 4 }
 0x2f6   : > { %1461 = vst.msk [vmem:[#allocation2 + $0x48] sm:$0x3f] %vm1219_vm14, %v1459_v49  ;;  %v1581_v28 = vrot.slane %v4081_v10, 6  ;;  %vm2158_vm13 = vcmask 769024   ;;  %vm2160_vm14 = vcmask 973824  }
 0x2f7   : > { %v1770_v53 = vsel %vm451_vm3, %v1749_v51, %v4119_v7  ;;  %v4139_v38 = vpack.i.bf16 %v1957_v9, %v1749_v51  ;;  %v1769_v14 = vsel %vm455_vm5, %v4142_v41, %v1749_v51  ;;  %v1993_v17 = vsel %vm447_vm1, %v4022_v13, %v1989_v1 }
 0x2f8   : > { %2807 = vrot.lane.b32.xlu1 %v2806_v48, %s3004_s30  ;;  %v2811_v35 = vpack.i.bf16 %v1540_v4, %v1770_v53  ;;  %v2821_v32 = vpack.i.bf16 %v1769_v14, %v1544_v45  ;;  %v4209_v51 = vsel %vm447_vm1, %v1579_v61, %v1581_v28  ;;  %v4214_v4 = vsel %vm451_vm3, %v1576_v18, %v1579_v61 }
 0x2f9   : > { %v1708_v45 = vrot.slane %v4125_v46, 6 }
 0x2fa   : > { %2812 = vrot.lane.b32.xlu2 %v2811_v35, %s3004_s30 }
 0x2fc   : > { %v4197_v33 = vpop.permute.xlu1 %1595 }
 0x2fd   : > { %v1514_v34 = vld [vmem:[#allocation2 + $0x48] sm:$0x3f] }
 0x2fe   : > { %v1733_v19 = vrot.slane %v1514_v34, 6  ;;  %v1704_v27 = vrot.slane %v1514_v34, 2  ;;  %v4150_v0 = vrot.slane %v1514_v34, 4  ;;  %v4169_v62 = vsel %vm455_vm5, %v1514_v34, %v1576_v18 }
 0x2ff   : > { %v2801_v56 = vpack.i.bf16 %v1993_v17, %v4169_v62 }
 0x300   : > { %2822 = vrot.lane.b32.xlu1 %v2821_v32, %s3004_s30  ;;  %v2791_v3 = vpack.i.bf16 %v1733_v19, %v1729_v54  ;;  %v4158_v11 = vsel %vm447_vm1, %v4150_v0, %v1534_v12  ;;  %v4164_v52 = vsel %vm455_vm5, %v4077_v59, %v1704_v27  ;;  %v2831_v59 = vpack.i.bf16 %v4174_v47, %v4180_v26 }
 0x301   : > { %v4191_v40 = vsel %vm455_vm5, %v4018_v8, %v1704_v27  ;;  %v1706_v54 = vrot.slane %v4142_v41, 4  ;;  %v1868_v19 = vrot.slane %v4066_v5, 6  ;;  %v2876_v1 = vpack.i.bf16 %v1534_v12, %v4150_v0 }
 0x302   : > { %2792 = vrot.lane.b32.xlu0 %v2791_v3, %s3004_s30  ;;  %2827 = vrot.lane.b32.xlu2 %v2826_v58, %s4837_s24  ;;  %v2816_v44 = vpack.i.bf16 %v4191_v40, %v1992_v20 }
 0x303   : > { %v4229_v37 = vsel %vm447_vm1, %v1706_v54, %v1708_v45  ;;  %v4232_v32 = vsel %vm451_vm3, %v1704_v27, %v1706_v54 }
 0x304   : > { %v2861_v3 = vpack.i.bf16 %v4229_v37, %v4059_v57  ;;  %v2871_v58 = vpack.i.bf16 %v4232_v32, %v1868_v19 }
 0x30a   : > { %2802 = vrot.lane.b32.xlu0 %v2801_v56, %s4837_s24  ;;  %2832 = vrot.lane.b32.xlu2 %v2831_v59, %s4837_s24 }
 0x312   : > { %2817 = vrot.lane.b32.xlu0 %v2816_v44, %s4837_s24 }
 0x31c   : > { %v4202_v22 = vpop.permute.xlu1 %2762 }
 0x338   : > { %v2768_v29 = vpop.permute.xlu0 %2767 }
 0x339   : > { %v2770_v39 = vunpack.i.h.bf16 %v2768_v29  ;;  %v2769_v43 = vunpack.i.l.bf16 %v2768_v29  ;;  %v1851_v29 = vrot.slane %v4066_v5, 2 }
 0x33b   : > { %v2783_v23 = vpop.permute.xlu2 %2782  ;;  %v1772_v55 = vsel %vm455_vm5, %v2770_v39, %v2769_v43 }
 0x33c   : > { %v2836_v15 = vpack.i.bf16 %v1551_v16, %v1772_v55  ;;  %v2785_v21 = vunpack.i.h.bf16 %v2783_v23  ;;  %v2784_v63 = vunpack.i.l.bf16 %v2783_v23 }
 0x33e   : > { %2837 = vrot.lane.b32.xlu2 %v2836_v15, %s3004_s30  ;;  %v1774_v49 = vsel %vm447_vm1, %v2784_v63, %v2785_v21  ;;  %v1773_v16 = vsel %vm451_vm3, %v2769_v43, %v2784_v63 }
 0x33f   : > { %v2846_v53 = vpack.i.bf16 %v1774_v49, %v4214_v4  ;;  %v2856_v14 = vpack.i.bf16 %v1773_v16, %v4169_v62 }
 0x340   : > { %v2773_v13 = vpop.permute.xlu0 %2772 }
 0x341   : > { %v4204_v36 = vunpack.i.h.bf16 %v2773_v13  ;;  %v2774_v60 = vunpack.i.l.bf16 %v2773_v13 }
 0x343   : > { %v1600_v48 = vsel %vm455_vm5, %v2774_v60, %v4204_v36  ;;  %v2788_v34 = vpop.permute.xlu2 %2787 }
 0x344   : > { %v2841_v9 = vpack.i.bf16 %v4209_v51, %v1600_v48  ;;  %v2790_v17 = vunpack.i.h.bf16 %v2788_v34  ;;  %v2789_v56 = vunpack.i.l.bf16 %v2788_v34 }
 0x346   : > { %2842 = vrot.lane.b32.xlu0 %v2841_v9, %s3004_s30  ;;  %2847 = vrot.lane.b32.xlu2 %v2846_v53, %s3004_s30  ;;  %v4256_v20 = vsel %vm447_vm1, %v2789_v56, %v2790_v17  ;;  %v4269_v39 = vsel %vm451_vm3, %v4204_v36, %v2789_v56 }
 0x347   : > { %v2886_v44 = vpack.i.bf16 %v4256_v20, %v4142_v41  ;;  %v2896_v41 = vpack.i.bf16 %v4214_v4, %v4209_v51 }
 0x349   : > { %v1768_v35 = vpop.permute.xlu1 %1767 }
 0x34a   : > { %1793 = vrot.lane.b32.xlu1 %v1768_v35, %s3004_s30 }
 0x34e   : > { %2857 = vrot.lane.b32.xlu0 %v2856_v14, %s3004_s30  ;;  %2852 = vrot.lane.b32.xlu2 %v4130_v6, %s3004_s30  ;;  %v1717_v6 = vrot.slane %v4039_v50, 6 }
 0x350   : > { %v2866_v27 = vpack.i.bf16 %v4119_v7, %v1717_v6 }
 0x351   : > { %v4290_v21 = vpop.permute.xlu0 %2777 }
 0x352   : > { %1898 = vrot.lane.b32.xlu1 %v4081_v10, %s4837_s24  ;;  %v2780_v45 = vunpack.i.h.bf16 %v4290_v21 }
 0x354   : > { %v4240_v18 = vpop.permute.xlu2 %2812 }
 0x355   : > { %v2814_v49 = vunpack.i.l.bf16 %v4240_v18 }
 0x356   : > { %2862 = vrot.lane.b32.xlu0 %v2861_v3, %s4837_s24  ;;  %2872 = vrot.lane.b32.xlu2 %v2871_v58, %s4837_s24 }
 0x35a   : > { %2867 = vrot.lane.b32.xlu1 %v2866_v27, %s3004_s30 }
 0x35c   : > { %v4253_v59 = vpop.permute.xlu2 %2827 }
 0x35d   : > { %v2830_v7 = vunpack.i.h.bf16 %v4253_v59 }
 0x35e   : > { %2877 = vrot.lane.b32.xlu0 %v2876_v1, %s3004_s30  ;;  %1621 = vrot.lane.b32.xlu2 %v4197_v33, %s3004_s30 }
 0x362   : > { %2882 = vrot.lane.b32.xlu1 %v4139_v38, %s3004_s30  ;;  %v4260_v50 = vpop.permute.xlu1 %2797  ;;  %v1855_v38 = vrot.slane %v4018_v8, 4 }
 0x363   : > { %v2799_v12 = vunpack.i.l.bf16 %v4260_v50  ;;  %v4299_v16 = vunpack.i.h.bf16 %v4260_v50  ;;  %v1564_v50 = vsel %vm455_vm5, %v4066_v5, %v4052_v24 }
 0x364   : > { %v2891_v23 = vpack.i.bf16 %v4269_v39, %v1855_v38  ;;  %v4286_v55 = vpop.permute.xlu2 %2832  ;;  %v2765_v38 = vunpack.i.h.bf16 %v4202_v22 }
 0x365   : > { %v4274_v43 = vsel %vm447_vm1, %v2799_v12, %v2830_v7  ;;  %v4311_v19 = vsel %vm455_vm5, %v2780_v45, %v4299_v16  ;;  %v2834_v5 = vunpack.i.l.bf16 %v4286_v55 }
 0x366   : > { %2887 = vrot.lane.b32.xlu0 %v2886_v44, %s3004_s30  ;;  %1852 = vrot.lane.b32.xlu2 %v1851_v29, %s3004_s30 }
 0x36a   : > { %2892 = vrot.lane.b32.xlu1 %v2891_v23, %s3004_s30  ;;  %v4288_v15 = vpop.permute.xlu1 %2807  ;;  %v2764_v23 = vunpack.i.l.bf16 %v4202_v22  ;;  %s3010_s30 = smov 22  }
 0x36b   : > { %v2809_v13 = vunpack.i.l.bf16 %v4288_v15  ;;  %v2810_v22 = vunpack.i.h.bf16 %v4288_v15 }
 0x36e   : > { %2009 = vrot.lane.b32.xlu0 %v4108_v25, %s4837_s24 }
 0x372   : > { %2897 = vrot.lane.b32.xlu1 %v2896_v41, %s4837_s24  ;;  %v2823_v28 = vpop.permute.xlu1 %2822  ;;  %s3005_s24 = smov 125  }
 0x373   : > { %v2825_v53 = vunpack.i.h.bf16 %v2823_v28 }
 0x374   : > { %v4293_v60 = vpop.permute.xlu0 %2792 }
 0x375   : > { %v2795_v48 = vunpack.i.h.bf16 %v4293_v60  ;;  %v2794_v9 = vunpack.i.l.bf16 %v4293_v60 }
 0x377   : > { %v1748_v14 = vsel %vm447_vm1, %v2794_v9, %v2795_v48  ;;  %v1747_v34 = vsel %vm451_vm3, %v4299_v16, %v2794_v9 }
 0x37c   : > { %v4307_v54 = vpop.permute.xlu0 %2802 }
 0x384   : > { %v4316_v58 = vpop.permute.xlu0 %2817 }
 0x385   : > { %v2820_v24 = vunpack.i.h.bf16 %v4316_v58 }
 0x398   : > { %v2838_v63 = vpop.permute.xlu2 %2837 }
 0x399   : > { %v2839_v61 = vunpack.i.l.bf16 %v2838_v63  ;;  %v2840_v9 = vunpack.i.h.bf16 %v2838_v63 }
 0x39b   : > { %1803 = vmatpush.msrb.mxu2 %v2839_v61  ;;  %v1574_v45 = vsel %vm451_vm3, %v2840_v9, %v2764_v23 }
 0x39d   : > { %1804 = vmatpush.msrb.mxu2 %v2809_v13 }
 0x39f   : > { %1805 = vmatpush.msrb.mxu2 %v2814_v49  ;;  %v4327_v49 = vld [vmem:[%s4762_s3 + $0x8] sm:$0xff] }
 0x3a0   : > { %v2848_v35 = vpop.permute.xlu2 %2847 }
 0x3a1   : > { %1806 = vmatpush.msrb.mxu2 %v2825_v53  ;;  %v2850_v44 = vunpack.i.h.bf16 %v2848_v35  ;;  %v2849_v29 = vunpack.i.l.bf16 %v2848_v35  ;;  %v1575_v35 = vsel %vm447_vm1, %v2764_v23, %v2765_v38  ;;  %v2805_v38 = vunpack.i.h.bf16 %v4307_v54 }
 0x3a2   : > { %v1570_v23 = vsel %vm455_vm5, %v4125_v46, %v4084_v42  ;;  %v2829_v46 = vunpack.i.l.bf16 %v4253_v59 }
 0x3a3   : > { %1807 = vmatpush.msrb.mxu2 %v1748_v14  ;;  %v2824_v14 = vunpack.i.l.bf16 %v2823_v28 }
 0x3a5   : > { %1808 = vmatpush.msrb.mxu2 %v1747_v34  ;;  %v2815_v34 = vunpack.i.h.bf16 %v4240_v18  ;;  %v2804_v18 = vunpack.i.l.bf16 %v4307_v54  ;;  %v1528_v54 = vrot.slane %v4018_v8, 2 }
 0x3a7   : > { %1809 = vmatpush.msrb.mxu2 %v4311_v19  ;;  %v1572_v15 = vsel %vm447_vm1, %v2815_v34, %v2824_v14  ;;  %v1567_v8 = vsel %vm455_vm5, %v4004_v2, %v1528_v54 }
 0x3a8   : > { %v4314_v3 = vpop.permute.xlu2 %2852 }
 0x3a9   : > { %v2854_v59 = vunpack.i.l.bf16 %v4314_v3 }
 0x3b0   : > { %v4318_v6 = vpop.permute.xlu2 %2872 }
 0x3b1   : > { %v2875_v28 = vunpack.i.h.bf16 %v4318_v6 }
 0x3b8   : > { %v2843_v27 = vpop.permute.xlu0 %2842  ;;  %v1622_v1 = vpop.permute.xlu2 %1621 }
 0x3b9   : > { %v2844_v17 = vunpack.i.l.bf16 %v2843_v27  ;;  %2469 = vmatpush.msk.msrb.mxu1 %vm455_vm5, %v1622_v1  ;;  %v2845_v56 = vunpack.i.h.bf16 %v2843_v27  ;;  %v1573_v27 = vsel %vm455_vm5, %v2810_v22, %v2840_v9 }
 0x3bb   : > { %1648 = vmatpush.msra.mxu0 %v2844_v17  ;;  %v4343_v17 = vld [vmem:[%s4762_s3 + $0x18] sm:$0xff] }
 0x3bc   : > { %v1794_v7 = vpop.permute.xlu1 %1793 }
 0x3bd   : > { %1649 = vmatpush.msra.mxu0 %v2845_v56  ;;  %2472 = vmatpush.msk.msra.mxu3 %vm455_vm5, %v1794_v7  ;;  %v1571_v7 = vsel %vm451_vm3, %v4084_v42, %v2815_v34 }
 0x3bf   : > { %1650 = vmatpush.msra.mxu0 %v2849_v29  ;;  %1840 = vmatpush.msra.mxu3 %v2850_v44  ;;  %v4355_v44 = vunpack.i.h.bf16 %v4314_v3 }
 0x3c0   : > { %v2858_v41 = vpop.permute.xlu0 %2857 }
 0x3c1   : > { %v2860_v61 = vunpack.i.h.bf16 %v2858_v41  ;;  %v2859_v13 = vunpack.i.l.bf16 %v2858_v41 }
 0x3c3   : > { %1651 = vmatpush.msra.mxu0 %v2859_v13  ;;  %1841 = vmatpush.msra.mxu3 %v2860_v61  ;;  %v1711_v61 = vrot.slane %v4108_v25, 2  ;;  %v2819_v13 = vunpack.i.l.bf16 %v4316_v58 }
 0x3c4   : > { %v1899_v53 = vpop.permute.xlu1 %1898  ;;  %2473 = vmatmul.msk.f32.vlgmr.msra.gmra.mxu3 %vm1639_vm15, %v4327_v49 }
 0x3c5   : > { %1652 = vmatpush.msra.mxu0 %v1575_v35  ;;  %2475 = vmatpush.msk.msrb.mxu3 %vm455_vm5, %v1899_v53  ;;  %v1744_v42 = vsel %vm451_vm3, %v1711_v61, %v4355_v44  ;;  %v1568_v53 = vsel %vm451_vm3, %v1528_v54, %v4150_v0  ;;  %v1743_v35 = vsel %vm455_vm5, %v4081_v10, %v1711_v61 }
 0x3c7   : > { %1653 = vmatpush.msra.mxu0 %v1574_v45 }
 0x3c8   : > { %v4336_v63 = vpop.permute.xlu0 %2862 }
 0x3c9   : > { %v2865_v1 = vunpack.i.h.bf16 %v4336_v63  ;;  %1654 = vmatpush.msra.mxu0 %v1573_v27 }
 0x3cb   : > { %1655 = vmatpush.msra.mxu0 %v1572_v15  ;;  %1945 = vmatpush.msrb.mxu3 %v2865_v1  ;;  %v2835_v15 = vunpack.i.h.bf16 %v4286_v55  ;;  %v2874_v55 = vunpack.i.l.bf16 %v4318_v6  ;;  %v1506_v6 = vld [vmem:[%s4763_s4] sm:$0xff] }
 0x3cc   : > { %v4348_v56 = vpop.permute.xlu1 %2867  ;;  %2474 = vmatmul.msk.f32.gmra.mxu3 %vm1639_vm15, %v4343_v17  ;;  %1631 = vperm.xlu2 %2901, %v1506_v6  }
 0x3cd   : > { %v2869_v29 = vunpack.i.l.bf16 %v4348_v56  ;;  %1656 = vmatpush.msra.mxu0 %v1571_v7  ;;  %1946 = vmatpush.msrb.mxu3 %v2875_v28 }
 0x3cf   : > { %2019 = vmatpush.msra.mxu3 %v2804_v18  ;;  %1657 = vmatpush.msra.mxu0 %v1570_v23  ;;  %v4364_v41 = vsel %vm447_vm1, %v4355_v44, %v2869_v29 }
 0x3d0   : > { %v2878_v9 = vpop.permute.xlu0 %2877  ;;  %1810 = vmatpush.msrb.mxu2 %v4364_v41 }
 0x3d1   : > { %2020 = vmatpush.msra.mxu3 %v2805_v38  ;;  %1658 = vmatpush.msra.mxu0 %v4158_v11  ;;  %v2779_v11 = vunpack.i.l.bf16 %v4290_v21  ;;  %v2880_v0 = vunpack.i.h.bf16 %v2878_v9  ;;  %v2879_v14 = vunpack.i.l.bf16 %v2878_v9  ;;  %v1507_v21 = vld [vmem:[%s4763_s4 + $0x8] sm:$0xff] }
 0x3d2   : > { %1811 = vmatpush.msrb.mxu2 %v1744_v42  ;;  %1636 = vperm.xlu0 %2902, %v1507_v21  }
 0x3d3   : > { %2021 = vmatpush.msra.mxu3 %v2819_v13  ;;  %1659 = vmatpush.msra.mxu0 %v1568_v53  ;;  %v1985_v2 = vsel %vm451_vm3, %v2779_v11, %v2799_v12  ;;  %v1983_v12 = vsel %vm447_vm1, %v2879_v14, %v2880_v0 }
 0x3d4   : > { %v4378_v22 = vpop.permute.xlu1 %2882  ;;  %1812 = vmatpush.msrb.mxu2 %v1743_v35  ;;  %2476 = vmatmul.msk.f32.vlgmr.msrb.gmra.mxu3 %vm1639_vm15, %v4327_v49 }
 0x3d5   : > { %2022 = vmatpush.msra.mxu3 %v2829_v46  ;;  %1660 = vmatpush.msra.mxu0 %v1567_v8  ;;  %v2885_v3 = vunpack.i.h.bf16 %v4378_v22  ;;  %v2884_v28 = vunpack.i.l.bf16 %v4378_v22 }
 0x3d6   : > { %1813 = vmatpush.msrb.mxu2 %v4229_v37 }
 0x3d7   : > { %2023 = vmatpush.msra.mxu3 %v4274_v43  ;;  %1661 = vmatpush.msra.mxu0 %v4097_v31  ;;  %v1984_v43 = vsel %vm455_vm5, %v2854_v59, %v2779_v11  ;;  %v1981_v1 = vsel %vm455_vm5, %v4197_v33, %v2885_v3  ;;  %v1504_v33 = vld [vmem:[%s4762_s3 + $0x10] sm:$0xff] }
 0x3d8   : > { %v4392_v45 = vpop.permute.xlu0 %2887  ;;  %1814 = vmatpush.msrb.mxu2 %v4232_v32 }
 0x3d9   : > { %2024 = vmatpush.msra.mxu3 %v1985_v2  ;;  %1662 = vmatpush.msra.mxu0 %v4064_v30  ;;  %v2890_v31 = vunpack.i.h.bf16 %v4392_v45  ;;  %v4411_v30 = vld [vmem:[%s4762_s3] sm:$0xff] }
 0x3da   : > { %1815 = vmatpush.msrb.mxu2 %v4164_v52  ;;  %v1982_v52 = vsel %vm451_vm3, %v2885_v3, %v2879_v14 }
 0x3db   : > { %2025 = vmatpush.msra.mxu3 %v1984_v43  ;;  %1663 = vmatpush.msra.mxu0 %v1564_v50 }
 0x3dc   : > { %1685 = vmatpush.msrb.mxu1 %v2890_v31  ;;  %v2893_v34 = vpop.permute.xlu1 %2892  ;;  %1816 = vmatpush.msrb.mxu2 %v4180_v26 }
 0x3dd   : > { %2026 = vmatpush.msra.mxu3 %v1983_v12  ;;  %v2895_v27 = vunpack.i.h.bf16 %v2893_v34  ;;  %1664 = vmatmul.f32.vlgmr.msra.gmra.mxu0 %v4411_v30 }
 0x3de   : > { %2477 = vmatmul.msk.f32.gmra.mxu3 %vm1639_vm15, %v4343_v17  ;;  %1817 = vmatpush.msrb.mxu2 %v4174_v47  ;;  %v2870_v47 = vunpack.i.h.bf16 %v4348_v56 }
 0x3df   : > { %2027 = vmatpush.msra.mxu3 %v1982_v52  ;;  %1686 = vmatpush.msrb.mxu1 %v2895_v27 }
 0x3e0   : > { %v2010_v26 = vpop.permute.xlu0 %2009  ;;  %1818 = vmatpush.msrb.mxu2 %v4059_v57  ;;  %2470 = vmatmul.msk.f32.vlgmr.msrb.gmra.mxu1 %vm1639_vm15, %v4327_v49  ;;  %v2864_v57 = vunpack.i.l.bf16 %v4336_v63  ;;  %v2889_v63 = vunpack.i.l.bf16 %v4392_v45  ;;  %v1879_v56 = vsel %vm447_vm1, %v2870_v47, %v2874_v55  ;;  %v1878_v29 = vsel %vm451_vm3, %v2884_v28, %v2870_v47 }
 0x3e1   : > { %1908 = vmatpush.msra.mxu1 %v2820_v24  ;;  %2028 = vmatpush.msra.mxu3 %v1981_v1 }
 0x3e2   : > { %1819 = vmatmul.f32.vlgmr.msrb.gmra.mxu2 %v4411_v30  ;;  %2478 = vmatpush.msk.msrb.mxu0 %vm455_vm5, %v2010_v26 }
 0x3e3   : > { %1909 = vmatpush.msra.mxu1 %v2834_v5  ;;  %2029 = vmatpush.msra.mxu3 %v4256_v20  ;;  %v1980_v20 = vsel %vm455_vm5, %v4108_v25, %v4204_v36  ;;  %v1877_v25 = vsel %vm455_vm5, %v2889_v63, %v2884_v28 }
 0x3e4   : > { %v2898_v58 = vpop.permute.xlu1 %2897 }
 0x3e5   : > { %1910 = vmatpush.msra.mxu1 %v2835_v15  ;;  %v2899_v18 = vunpack.i.l.bf16 %v2898_v58  ;;  %2030 = vmatpush.msra.mxu3 %v4269_v39  ;;  %v2900_v7 = vunpack.i.h.bf16 %v2898_v58  ;;  %v2894_v39 = vunpack.i.l.bf16 %v2893_v34 }
 0x3e6   : > { %1667 = vmatmul.f32.gmra.mxu0 %v1504_v33 }
 0x3e7   : > { %1911 = vmatpush.msra.mxu1 %v2864_v57  ;;  %2031 = vmatpush.msra.mxu3 %v1980_v20  ;;  %v1876_v36 = vsel %vm447_vm1, %v2894_v39, %v2795_v48  ;;  %vm2137_vm1 = vcmask 613376  }
 0x3e8   : > { %2056 = vmatpush.msrb.mxu0 %v2899_v18  ;;  %2471 = vmatmul.msk.f32.gmra.mxu1 %vm1639_vm15, %v4343_v17 }
 0x3e9   : > { %1912 = vmatpush.msra.mxu1 %v1879_v56  ;;  %2032 = vmatpush.msra.mxu3 %v4209_v51  ;;  %v1875_v51 = vsel %vm451_vm3, %v4299_v16, %v2894_v39 }
 0x3ea   : > { %1822 = vmatmul.f32.gmra.mxu2 %v1504_v33  ;;  %2057 = vmatpush.msrb.mxu0 %v2900_v7 }
 0x3eb   : > { %1913 = vmatpush.msra.mxu1 %v1878_v29  ;;  %2033 = vmatpush.msra.mxu3 %v4214_v4  ;;  %v1853_v4 = vpop.permute.xlu2 %1852 }
 0x3ec   : > { %v1873_v60 = vsel %vm455_vm5, %v4081_v10, %v1853_v4  ;;  %vm2144_vm5 = vcmask 384000  }
 0x3ed   : > { %1914 = vmatpush.msra.mxu1 %v1877_v25  ;;  %2034 = vmatpush.msra.mxu3 %v4169_v62  ;;  %v1874_v62 = vsel %vm451_vm3, %v1853_v4, %v4355_v44 }
 0x3ee   : > { %2479 = vmatmul.msk.f32.vlgmr.msrb.gmra.mxu0 %vm1639_vm15, %v4327_v49  ;;  %2035 = vmatmul.f32.vlgmr.msra.gmra.mxu3 %v4411_v30 }
 0x3ef   : > { %1915 = vmatpush.msra.mxu1 %v1876_v36 }
 0x3f1   : > { %1916 = vmatpush.msra.mxu1 %v1875_v51 }
 0x3f3   : > { %1917 = vmatpush.msra.mxu1 %v4311_v19 }
 0x3f5   : > { %1918 = vmatpush.msra.mxu1 %v4364_v41 }
 0x3f6   : > { %2480 = vmatmul.msk.f32.gmra.mxu0 %vm1639_vm15, %v4343_v17  ;;  %2038 = vmatmul.f32.gmra.mxu3 %v1504_v33 }
 0x3f7   : > { %1919 = vmatpush.msra.mxu1 %v1874_v62  ;;  %v2177_v62 = vld [vmem:[%s4764_s5 + $0x78] sm:$0xff] }
 0x3f8   : > { %2216 = vmatpush.msra.mxu2 %v2177_v62 }
 0x3f9   : > { %1920 = vmatpush.msra.mxu1 %v1873_v60  ;;  %v2176_v60 = vld [vmem:[%s4764_s5 + $0x70] sm:$0xff] }
 0x3fa   : > { %2217 = vmatpush.msra.mxu2 %v2176_v60 }
 0x3fb   : > { %1921 = vmatpush.msra.mxu1 %v4229_v37 }
 0x3fd   : > { %1922 = vmatpush.msra.mxu1 %v4232_v32 }
 0x3ff   : > { %1923 = vmatpush.msra.mxu1 %v4191_v40 }
 0x400   : > { %1924 = vmatmul.f32.vlgmr.msra.gmra.mxu1 %v4411_v30 }
 0x408   : > { %1927 = vmatmul.f32.gmra.mxu1 %v1504_v33 }
 0x426   : > { %v1632_v41 = vpop.permute.xlu2 %1631 }
 0x444   : > { %v1637_v35 = vpop.permute.xlu0 %1636 }
 0x447   : > { %v1843_v48 = vpop.f32.mrf.mxu3 }
 0x44f   : > { %v1846_v16 = vpop.f32.mrf.mxu3 }
 0x457   : > { %v1948_v19 = vpop.f32.mrf.mxu3 }
 0x45a   : > { %v1665_v49 = vpop.f32.mrf.mxu0 }
 0x45b   : > { %v1666_v37 = vadd.f32 %v1665_v49, %v1632_v41  ;;  %v2172_v49 = vld [vmem:[%s4764_s5 + $0x50] sm:$0xff] }
 0x45d   : > { %v1688_v44 = vpop.f32.mrf.mxu1 }
 0x45e   : > { %v1689_v40 = vadd.f32 %v1688_v44, %v1666_v37  ;;  %v2170_v44 = vld [vmem:[%s4764_s5 + $0x40] sm:$0xff] }
 0x45f   : > { %v2190_v37 = vld [vmem:[%s4764_s5 + $0xe0] sm:$0xff] }
 0x460   : > { %v1694_v0 = vmax.f32 %v1689_v40, 0.0  ;;  %v2188_v40 = vld [vmem:[%s4764_s5 + $0xd0] sm:$0xff] }
 0x461   : > { %v1951_v17 = vpop.f32.mrf.mxu3 }
 0x463   : > { %v1668_v38 = vpop.f32.mrf.mxu0 }
 0x464   : > { %v1669_v21 = vadd.f32 %v1668_v38, %v1637_v35  ;;  %v2193_v38 = vld [vmem:[%s4764_s5 + $0xf8] sm:$0xff] }
 0x465   : > { %v1820_v10 = vpop.f32.mrf.mxu2  ;;  %v1691_v61 = vpop.f32.mrf.mxu1  ;;  %2236 = vmatpush.msrb.mxu1 %v2193_v38 }
 0x466   : > { %v1821_v9 = vadd.f32 %v1820_v10, %v1632_v41  ;;  %v1692_v52 = vadd.f32 %v1691_v61, %v1669_v21  ;;  %v2191_v10 = vld [vmem:[%s4764_s5 + $0xe8] sm:$0xff]  ;;  %v2168_v61 = vld [vmem:[%s4764_s5 + $0x30] sm:$0xff]  ;;  %v2182_v21 = vld [vmem:[%s4764_s5 + $0xa0] sm:$0xff] }
 0x468   : > { %v1844_v54 = vadd.f32 %v1843_v48, %v1821_v9  ;;  %v1695_v58 = vmax.f32 %v1692_v52, 0.0  ;;  %v2175_v48 = vld [vmem:[%s4764_s5 + $0x68] sm:$0xff]  ;;  %v2166_v9 = vld [vmem:[%s4764_s5 + $0x20] sm:$0xff]  ;;  %v2204_v52 = vld [vmem:[%s4764_s5 + $0x150] sm:$0xff] }
 0x469   : > { %2218 = vmatpush.msra.mxu2 %v2175_v48 }
 0x46a   : > { %v1849_v59 = vmax.f32 %v1844_v54, 0.0  ;;  %v2165_v54 = vld [vmem:[%s4764_s5 + $0x18] sm:$0xff] }
 0x46b   : > { %v2059_v13 = vpop.f32.mrf.mxu0 }
 0x46c   : > { %v2067_v50 = vmax.f32 %v1694_v0, %v1849_v59  ;;  %v2209_v59 = vld [vmem:[%s4764_s5 + $0x178] sm:$0xff]  ;;  %v2184_v0 = vld [vmem:[%s4764_s5 + $0xb0] sm:$0xff] }
 0x46d   : > { %v1823_v8 = vpop.f32.mrf.mxu2  ;;  %2256 = vmatpush.msra.mxu0 %v2209_v59  ;;  %v2301_v59 = vld [vmem:[%s4766_s7 + $0x20] sm:$0xff] }
 0x46e   : > { %v1824_v3 = vadd.f32 %v1823_v8, %v1637_v35 }
 0x470   : > { %v1847_v30 = vadd.f32 %v1846_v16, %v1824_v3  ;;  %v2174_v16 = vld [vmem:[%s4764_s5 + $0x60] sm:$0xff]  ;;  %v2211_v3 = vld [vmem:[%s4764_s5 + $0x188] sm:$0xff] }
 0x471   : > { %v2036_v23 = vpop.f32.mrf.mxu3  ;;  %2219 = vmatpush.msra.mxu2 %v2174_v16 }
 0x472   : > { %v2037_v32 = vadd.f32 %v2036_v23, %v1632_v41  ;;  %v1850_v57 = vmax.f32 %v1847_v30, 0.0  ;;  %v2192_v23 = vld [vmem:[%s4764_s5 + $0xf0] sm:$0xff] }
 0x473   : > { %v2062_v45 = vpop.f32.mrf.mxu0  ;;  %2237 = vmatpush.msrb.mxu1 %v2192_v23 }
 0x474   : > { %v2060_v42 = vadd.f32 %v2059_v13, %v2037_v32  ;;  %v2068_v28 = vmax.f32 %v1695_v58, %v1850_v57  ;;  %v2167_v13 = vld [vmem:[%s4764_s5 + $0x28] sm:$0xff]  ;;  %v2189_v32 = vld [vmem:[%s4764_s5 + $0xd8] sm:$0xff] }
 0x475   : > { %2238 = vmatpush.msrb.mxu1 %v2191_v10  ;;  %v2199_v58 = vld [vmem:[%s4764_s5 + $0x128] sm:$0xff] }
 0x476   : > { %v2065_v2 = vmax.f32 %v2060_v42, 0.0  ;;  %v2164_v42 = vld [vmem:[%s4764_s5 + $0x10] sm:$0xff] }
 0x477   : > { %2239 = vmatpush.msrb.mxu1 %v2190_v37 }
 0x479   : > { %v2039_v46 = vpop.f32.mrf.mxu3  ;;  %2240 = vmatpush.msrb.mxu1 %v2189_v32  ;;  %v2311_v32 = vld [vmem:[%s4766_s7 + $0x70] sm:$0xff] }
 0x47a   : > { %v2040_v11 = vadd.f32 %v2039_v46, %v1637_v35  ;;  %v2187_v46 = vld [vmem:[%s4764_s5 + $0xc8] sm:$0xff]  ;;  %2318 = vmatpush.msrb.mxu3 %v2311_v32 }
 0x47b   : > { %2241 = vmatpush.msrb.mxu1 %v2188_v40  ;;  %v2309_v40 = vld [vmem:[%s4766_s7 + $0x60] sm:$0xff] }
 0x47c   : > { %v2063_v31 = vadd.f32 %v2062_v45, %v2040_v11  ;;  %v2185_v11 = vld [vmem:[%s4764_s5 + $0xb8] sm:$0xff]  ;;  %v2207_v45 = vld [vmem:[%s4764_s5 + $0x168] sm:$0xff] }
 0x47d   : > { %v1925_v53 = vpop.f32.mrf.mxu1  ;;  %2242 = vmatpush.msrb.mxu1 %v2187_v46  ;;  %v2307_v46 = vld [vmem:[%s4766_s7 + $0x50] sm:$0xff] }
 0x47e   : > { %v1926_v22 = vadd.f32 %v1925_v53, %v1632_v41  ;;  %v2066_v5 = vmax.f32 %v2063_v31, 0.0  ;;  %v2169_v41 = vld [vmem:[%s4764_s5 + $0x38] sm:$0xff]  ;;  %v2163_v53 = vld [vmem:[%s4764_s5 + $0x8] sm:$0xff] }
 0x47f   : > { %v2181_v31 = vld [vmem:[%s4764_s5 + $0x98] sm:$0xff] }
 0x480   : > { %v1949_v14 = vadd.f32 %v1948_v19, %v1926_v22  ;;  %v2173_v19 = vld [vmem:[%s4764_s5 + $0x58] sm:$0xff]  ;;  %v2162_v22 = vld [vmem:[%s4764_s5] sm:$0xff] }
 0x481   : > { %2220 = vmatpush.msra.mxu2 %v2173_v19 }
 0x482   : > { %v1954_v43 = vmax.f32 %v1949_v14, 0.0  ;;  %v2208_v14 = vld [vmem:[%s4764_s5 + $0x170] sm:$0xff] }
 0x483   : > { %2221 = vmatpush.msra.mxu2 %v2172_v49  ;;  %2257 = vmatpush.msra.mxu0 %v2208_v14  ;;  %v2299_v14 = vld [vmem:[%s4766_s7 + $0x10] sm:$0xff] }
 0x484   : > { %v2069_v12 = vmax.f32 %v1954_v43, %v2065_v2  ;;  %v2183_v2 = vld [vmem:[%s4764_s5 + $0xa8] sm:$0xff]  ;;  %v2206_v43 = vld [vmem:[%s4764_s5 + $0x160] sm:$0xff] }
 0x485   : > { %v1928_v34 = vpop.f32.mrf.mxu1  ;;  %2258 = vmatpush.msra.mxu0 %v2207_v45  ;;  %v2297_v45 = vld [vmem:[%s4766_s7] sm:$0xff] }
 0x486   : > { %v4472_v27 = vmax.f32 %v2067_v50, %v2069_v12  ;;  %v1929_v24 = vadd.f32 %v1928_v34, %v1637_v35  ;;  %v2186_v35 = vld [vmem:[%s4764_s5 + $0xc0] sm:$0xff]  ;;  %v2205_v12 = vld [vmem:[%s4764_s5 + $0x158] sm:$0xff]  ;;  %v2180_v34 = vld [vmem:[%s4764_s5 + $0x90] sm:$0xff] }
 0x487   : > { %2243 = vmatpush.msrb.mxu1 %v2186_v35  ;;  %v2210_v50 = vld [vmem:[%s4764_s5 + $0x180] sm:$0xff]  ;;  %2259 = vmatpush.msra.mxu0 %v2206_v43 }
 0x488   : > { %v1952_v26 = vadd.f32 %v1951_v17, %v1929_v24  ;;  %v2090_v1 = vrot.slane %v4472_v27, 5  ;;  %v2078_v15 = vrot.slane %v4472_v27, 2  ;;  %v2074_v47 = vrot.slane %v4472_v27, 1  ;;  %v2171_v17 = vld [vmem:[%s4764_s5 + $0x48] sm:$0xff]  ;;  %v2305_v35 = vld [vmem:[%s4766_s7 + $0x40] sm:$0xff] }
 0x489   : > { %v2086_v20 = vrot.slane %v4472_v27, 4  ;;  %v2082_v63 = vrot.slane %v4472_v27, 3  ;;  %v2098_v6 = vrot.slane %v4472_v27, 7  ;;  %v2094_v7 = vrot.slane %v4472_v27, 6  ;;  %2222 = vmatpush.msra.mxu2 %v2171_v17  ;;  %2244 = vmatpush.msrb.mxu1 %v2185_v11  ;;  %v2179_v24 = vld [vmem:[%s4764_s5 + $0x88] sm:$0xff]  ;;  %v2346_v43 = vld [vmem:[%s4768_s9 + $0x40] sm:$0xff] }
 0x48a   : > { %v1955_v33 = vmax.f32 %v1952_v26, 0.0  ;;  %2091 = vrot.lane.b32.xlu0 %v2090_v1, %s3005_s24  ;;  %2079 = vrot.lane.b32.xlu2 %v2078_v15, %s3006_s12  ;;  %s3011_s24 = smov 69   ;;  %s3014_s12 = smov 44   ;;  %v2178_v26 = vld [vmem:[%s4764_s5 + $0x80] sm:$0xff]  ;;  %v2201_v15 = vld [vmem:[%s4764_s5 + $0x138] sm:$0xff] }
 0x48b   : > { %2075 = vrot.lane.b32.xlu1 %v2074_v47, %s3007_s13  ;;  %2223 = vmatpush.msra.mxu2 %v2170_v44  ;;  %v2202_v1 = vld [vmem:[%s4764_s5 + $0x140] sm:$0xff]  ;;  %v2200_v47 = vld [vmem:[%s4764_s5 + $0x130] sm:$0xff]  ;;  %v2302_v11 = vld [vmem:[%s4766_s7 + $0x28] sm:$0xff] }
 0x48c   : > { %v2070_v55 = vmax.f32 %v1955_v33, %v2066_v5  ;;  %2245 = vmatpush.msrb.mxu1 %v2184_v0  ;;  %2260 = vmatpush.msra.mxu0 %v2205_v12  ;;  %v2203_v5 = vld [vmem:[%s4764_s5 + $0x148] sm:$0xff]  ;;  %v2300_v0 = vld [vmem:[%s4766_s7 + $0x18] sm:$0xff] }
 0x48d   : > { %2224 = vmatpush.msra.mxu2 %v2169_v41  ;;  %v2343_v12 = vld [vmem:[%s4768_s9 + $0x28] sm:$0xff] }
 0x48e   : > { %v2072_v18 = vmax.f32 %v2068_v28, %v2070_v55  ;;  %2246 = vmatpush.msrb.mxu1 %v2183_v2  ;;  %2261 = vmatpush.msra.mxu0 %v2204_v52  ;;  %v2198_v55 = vld [vmem:[%s4764_s5 + $0x120] sm:$0xff]  ;;  %v2298_v2 = vld [vmem:[%s4766_s7 + $0x8] sm:$0xff] }
 0x48f   : > { %2225 = vmatpush.msra.mxu2 %v2168_v61 }
 0x490   : > { %v2106_v56 = vrot.slane %v2072_v18, 1  ;;  %v2122_v39 = vrot.slane %v2072_v18, 5  ;;  %v2114_v29 = vrot.slane %v2072_v18, 3  ;;  %v2110_v25 = vrot.slane %v2072_v18, 2  ;;  %2247 = vmatpush.msrb.mxu1 %v2182_v21  ;;  %2262 = vmatpush.msra.mxu0 %v2203_v5  ;;  %v2348_v21 = vld [vmem:[%s4768_s9 + $0x50] sm:$0xf] }
 0x491   : > { %v2130_v36 = vrot.slane %v2072_v18, 7  ;;  %v2118_v51 = vrot.slane %v2072_v18, 4  ;;  %v2126_v4 = vrot.slane %v2072_v18, 6  ;;  %2226 = vmatpush.msra.mxu2 %v2167_v13 }
 0x492   : > { %2103 = vrot.lane.b32.xlu0 %v2072_v18, %s4851_s14  ;;  %2087 = vrot.lane.b32.xlu2 %v2086_v20, %s2990_s16  ;;  %s3012_s14 = smov 19   ;;  %s3013_s16 = smov 122   ;;  %v2197_v18 = vld [vmem:[%s4764_s5 + $0x118] sm:$0xff] }
 0x493   : > { %2083 = vrot.lane.b32.xlu1 %v2082_v63, %s4860_s25  ;;  %s4866_s25 = smov 119   ;;  %2227 = vmatpush.msra.mxu2 %v2166_v9  ;;  %v2196_v63 = vld [vmem:[%s4764_s5 + $0x110] sm:$0xff] }
 0x494   : > { %2248 = vmatpush.msrb.mxu1 %v2181_v31  ;;  %2263 = vmatpush.msra.mxu0 %v2202_v1  ;;  %v2345_v31 = vld [vmem:[%s4768_s9 + $0x38] sm:$0xff] }
 0x495   : > { %2228 = vmatpush.msra.mxu2 %v2165_v54  ;;  %v2310_v54 = vld [vmem:[%s4766_s7 + $0x68] sm:$0xff] }
 0x496   : > { %2249 = vmatpush.msrb.mxu1 %v2180_v34  ;;  %2264 = vmatpush.msra.mxu0 %v2201_v15  ;;  %v2342_v34 = vld [vmem:[%s4768_s9 + $0x20] sm:$0xff] }
 0x497   : > { %2229 = vmatpush.msra.mxu2 %v2164_v42  ;;  %2319 = vmatpush.msrb.mxu3 %v2310_v54  ;;  %v2308_v42 = vld [vmem:[%s4766_s7 + $0x58] sm:$0xff] }
 0x498   : > { %2250 = vmatpush.msrb.mxu1 %v2179_v24  ;;  %2265 = vmatpush.msra.mxu0 %v2200_v47  ;;  %v2212_v24 = vld [vmem:[%s4765_s6] sm:$0x1] }
 0x499   : > { %2230 = vmatpush.msra.mxu2 %v2163_v53  ;;  %2320 = vmatpush.msrb.mxu3 %v2309_v40  ;;  %v2306_v53 = vld [vmem:[%s4766_s7 + $0x48] sm:$0xff] }
 0x49a   : > { %2107 = vrot.lane.b32.xlu0 %v2106_v56, %s3008_s22  ;;  %2099 = vrot.lane.b32.xlu2 %v2098_v6, %s3009_s15  ;;  %v2195_v56 = vld [vmem:[%s4764_s5 + $0x108] sm:$0xff] }
 0x49b   : > { %2095 = vrot.lane.b32.xlu1 %v2094_v7, %s3010_s30  ;;  %2231 = vmatpush.msra.mxu2 %v2162_v22  ;;  %v2304_v22 = vld [vmem:[%s4766_s7 + $0x38] sm:$0xff] }
 0x49c   : > { %2251 = vmatpush.msrb.mxu1 %v2178_v26  ;;  %2266 = vmatpush.msra.mxu0 %v2199_v58 }
 0x49d   : > { %2290 = vmatpush.msrb.mxu2 %v2211_v3  ;;  %2321 = vmatpush.msrb.mxu3 %v2308_v42  ;;  %v2347_v3 = vld [vmem:[%s4768_s9 + $0x48] sm:$0xff] }
 0x49e   : > { %2267 = vmatpush.msra.mxu0 %v2198_v55  ;;  %2483 = vmatpush.msk.msra.mxu1 %vm451_vm3, %v2348_v21  ;;  %vm2313_vm3 = vcmask 982016   ;;  %v2340_v55 = vld [vmem:[%s4768_s9 + $0x10] sm:$0xff] }
 0x49f   : > { %2291 = vmatpush.msrb.mxu2 %v2210_v50  ;;  %2322 = vmatpush.msrb.mxu3 %v2307_v46  ;;  %v2344_v50 = vld [vmem:[%s4768_s9 + $0x30] sm:$0xff] }
 0x4a0   : > { %2268 = vmatpush.msra.mxu0 %v2197_v18  ;;  %2363 = vmatpush.msra.mxu1 %v2347_v3  ;;  %v2338_v18 = vld [vmem:[%s4768_s9] sm:$0xff] }
 0x4a1   : > { %2323 = vmatpush.msrb.mxu3 %v2306_v53 }
 0x4a2   : > { %2123 = vrot.lane.b32.xlu0 %v2122_v39, %s3011_s24  ;;  %2115 = vrot.lane.b32.xlu2 %v2114_v29, %s3012_s14 }
 0x4a3   : > { %2111 = vrot.lane.b32.xlu1 %v2110_v25, %s3013_s16  ;;  %2269 = vmatpush.msra.mxu0 %v2196_v63  ;;  %s377_s16 = sand.u32 1, %s2957_s18  }
 0x4a4   : > { %2324 = vmatpush.msrb.mxu3 %v2305_v35  ;;  %2364 = vmatpush.msra.mxu1 %v2346_v43  ;;  %s378_s15 = scalar_lea.vmem [#allocation3], %s377_s16  ;;  %s2380_s24 = scalar_lea.sflag [#allocation4], %s377_s16 }
 0x4a5   : > { %2270 = vmatpush.msra.mxu0 %v2195_v56  ;;  %s2390_s30 = sshll.u32 %s378_s15, 4  ;;  %s2391_s30 = int_to_ptr.vmem [resolvable:$true] %s2390_s30 }
 0x4a6   : > { %2325 = vmatpush.msrb.mxu3 %v2304_v22  ;;  %2365 = vmatpush.msra.mxu1 %v2345_v31 }
 0x4a8   : > { %2366 = vmatpush.msra.mxu1 %v2344_v50 }
 0x4aa   : > { %2131 = vrot.lane.b32.xlu2 %v2130_v36, %s4866_s25  ;;  %2367 = vmatpush.msra.mxu1 %v2343_v12 }
 0x4ab   : > { %2119 = vrot.lane.b32.xlu1 %v2118_v51, %s3014_s12  ;;  %s2388_s12 = scalar_lea.hbm %s4770_s11, %s3096_s21 }
 0x4ac   : > { %2368 = vmatpush.msra.mxu1 %v2342_v34  ;;  %s2392_s0 = sshll.u32 %s2388_s12, 4  ;;  %s2393_s0 = int_to_ptr.hbm [resolvable:$true] %s2392_s0 }
 0x4ad   : > { %s2917_s14 = sshra.s32 %s2393_s0, 4  ;;  %s2918_s14 = int_to_ptr.hbm [resolvable:$true] %s2917_s14 }
 0x4ae   : > { %s2919_s1 = scalar_lea.hbm %s2918_s14, 1  ;;  %p2924_p0 = scmp.lt.s32.totalorder %s2918_s14, %s4770_s11 }
 0x4af   : > { %p2920_p11 = scmp.ne.s32.totalorder %s2918_s14, %s2919_s1 }
 0x4b1   : > { %p2921_p12 = pnand %p2920_p11, %p3113_p5 }
 0x4b3   : > { %2127 = vrot.lane.b32.xlu1 %v2126_v4, %s4861_s29  ;;  %p2922_p13 = pneg %p2921_p12  ;;  %s2923_s29 = scalar_lea.hbm %s4770_s11, 2 }
 0x4b4   : > { %p2925_p1 = scmp.lt.s32.totalorder %s2923_s29, %s2919_s1 }
 0x4b6   : > { %p2926_p2 = por %p2925_p1, %p2924_p0 }
 0x4b8   : > { %p2927_p3 = pnand %p2926_p2, %p2922_p13 }
 0x4e4   : > { %v2080_v8 = vpop.permute.xlu2 %2079 }
 0x4ec   : > { %v2088_v30 = vpop.permute.xlu2 %2087 }
 0x4f4   : > { %v2100_v57 = vpop.permute.xlu2 %2099 }
 0x4fc   : > { %v2092_v28 = vpop.permute.xlu0 %2091  ;;  %v2116_v39 = vpop.permute.xlu2 %2115 }
 0x4fd   : > { %v2076_v33 = vpop.permute.xlu1 %2075 }
 0x4fe   : > { %v2134_v20 = vsel %vm509_vm7, %v4472_v27, %v2076_v33  ;;  %v2194_v27 = vld [vmem:[%s4764_s5 + $0x100] sm:$0xff]  ;;  %vm2146_vm7 = vcmask 588800  }
 0x4ff   : > { %v2136_v6 = vsel %vm2135_vm0, %v2134_v20, %v2080_v8  ;;  %2271 = vmatpush.msra.mxu0 %v2194_v27  ;;  %v2303_v8 = vld [vmem:[%s4766_s7 + $0x30] sm:$0xff]  ;;  %v2312_v20 = vld [vmem:[%s4767_s8] sm:$0x1]  ;;  %vm2377_vm0 = vcmask 73728  }
 0x500   : > { %2326 = vmatpush.msrb.mxu3 %v2303_v8 }
 0x502   : > { %2327 = vmatpush.msrb.mxu3 %v2302_v11 }
 0x504   : > { %v2104_v51 = vpop.permute.xlu0 %2103  ;;  %v2132_v48 = vpop.permute.xlu2 %2131  ;;  %2328 = vmatpush.msrb.mxu3 %v2301_v59 }
 0x505   : > { %v2084_v7 = vpop.permute.xlu1 %2083 }
 0x506   : > { %v2138_v29 = vsel %vm2137_vm1, %v2136_v6, %v2084_v7  ;;  %2329 = vmatpush.msrb.mxu3 %v2300_v0  ;;  %v2349_v7 = vld [vmem:[%s4769_s10] sm:$0x1] }
 0x507   : > { %v2140_v25 = vsel %vm2139_vm2, %v2138_v29, %v2088_v30  ;;  %v2341_v30 = vld [vmem:[%s4768_s9 + $0x18] sm:$0xff] }
 0x508   : > { %v2142_v36 = vsel %vm2141_vm4, %v2140_v25, %v2092_v28  ;;  %2330 = vmatpush.msrb.mxu3 %v2299_v14  ;;  %2369 = vmatpush.msra.mxu1 %v2341_v30 }
 0x509   : > { %2232 = vmatmul.f32.vlgmr.msra.gmra.mxu2 %v2142_v36 }
 0x50a   : > { %2331 = vmatpush.msrb.mxu3 %v2298_v2  ;;  %2370 = vmatpush.msra.mxu1 %v2340_v55 }
 0x50c   : > { %v2108_v19 = vpop.permute.xlu0 %2107  ;;  %2332 = vmatpush.msrb.mxu3 %v2297_v45 }
 0x50d   : > { %v2096_v4 = vpop.permute.xlu1 %2095 }
 0x50e   : > { %v2143_v62 = vsel %vm1639_vm15, %v2092_v28, %v2096_v4  ;;  %v2339_v28 = vld [vmem:[%s4768_s9 + $0x8] sm:$0xff]  ;;  %vm2350_vm15 = vcmask 687104  }
 0x50f   : > { %v2145_v60 = vsel %vm2144_vm5, %v2143_v62, %v2100_v57  ;;  %2371 = vmatpush.msra.mxu1 %v2339_v28 }
 0x510   : > { %v2147_v16 = vsel %vm2146_vm7, %v2145_v60, %v2104_v51 }
 0x511   : > { %2481 = vmatmul.msk.f32.vlgmr.msrb.gmra.mxu2 %vm2213_vm6, %v2132_v48  ;;  %v2149_v49 = vsel %vm2148_vm8, %v2147_v16, %v2108_v19  ;;  %2372 = vmatpush.msra.mxu1 %v2338_v18 }
 0x514   : > { %v2124_v10 = vpop.permute.xlu0 %2123 }
 0x515   : > { %v2112_v17 = vpop.permute.xlu1 %2111 }
 0x516   : > { %v2151_v44 = vsel %vm2150_vm9, %v2149_v49, %v2112_v17  ;;  %v2153_v23 = vsel %vm2152_vm10, %v2112_v17, %v2116_v39 }
 0x517   : > { %2252 = vmatmul.f32.vlgmr.msrb.gmra.mxu1 %v2151_v44 }
 0x51d   : > { %v2120_v38 = vpop.permute.xlu1 %2119 }
 0x51e   : > { %v2155_v41 = vsel %vm2154_vm11, %v2153_v23, %v2120_v38 }
 0x51f   : > { %v2157_v61 = vsel %vm2156_vm12, %v2155_v41, %v2124_v10 }
 0x525   : > { %v2128_v13 = vpop.permute.xlu1 %2127 }
 0x526   : > { %v2159_v37 = vsel %vm2158_vm13, %v2157_v61, %v2128_v13 }
 0x527   : > { %v2161_v9 = vsel %vm2160_vm14, %v2159_v37, %v2132_v48 }
 0x528   : > { %2272 = vmatmul.f32.vlgmr.msra.gmra.mxu0 %v2161_v9 }
 0x58c   : > { %v2233_v52 = vpop.f32.mrf.mxu2 }
 0x58d   : > { %v2234_v26 = vadd.f32 %v2233_v52, %v2212_v24 }
 0x594   : > { %v2253_v5 = vpop.f32.mrf.mxu1  ;;  %v2293_v57 = vpop.f32.mrf.mxu2 }
 0x595   : > { %v2254_v1 = vadd.f32 %v2253_v5, %v2234_v26 }
 0x5a5   : > { %v2273_v15 = vpop.f32.mrf.mxu0 }
 0x5a6   : > { %v2274_v47 = vadd.f32 %v2273_v15, %v2254_v1 }
 0x5a8   : > { %v2294_v58 = vadd.f32 %v2293_v57, %v2274_v47 }
 0x5aa   : > { %v2296_v33 = vmax.f32 %v2294_v58, 0.0 }
 0x5ac   : > { %2482 = vmatmul.msk.f32.vlgmr.msrb.gmra.mxu3 %vm2313_vm3, %v2296_v33 }
 0x62f   : > { %v2334_v63 = vpop.f32.mrf.mxu3 }
 0x630   : > { %v2335_v56 = vadd.f32 %v2334_v63, %v2312_v20 }
 0x632   : > { %v2337_v6 = vmax.f32 %v2335_v56, 0.0 }
 0x634   : > { %2484 = vmatmul.msk.f32.vlgmr.msra.gmra.mxu1 %vm2350_vm15, %v2337_v6 }
 0x6b1   : > { %v2374_v39 = vpop.f32.mrf.mxu1 }
 0x6b2   : > { %v2375_v29 = vadd.f32 %v2374_v39, %v2349_v7 }
 0x6b4   : > { %2378 = vst.msk [vmem:[%s378_s15] sm:$0x1] %vm2377_vm0, %v2375_v29 }
 0x6b5   : > { %2930 = shalt.err (!%p2927_p3)
}
 0x6b6   : > { %2488 = dma.vmem_to_hbm [thread:$0]  (%p3113_p5), %s2391_s30, 16, %s2393_s0, %s2380_s24  }
 0x6b7 PF: > { %p2494_p4 = scmp.ge.s32.totalorder %s2965_s20, 2  ;;  %s2404_s16 = sand.u32 1, %s2953_s17  }
 0x6b8   : > { %s2405_s22 = scalar_lea.sflag [#allocation4], %s2404_s16 }
 0x6b9   : > { %p2491_p7 = pnand %p2494_p4, %p3117_p6 }
 0x6bb   : > { %p2492_p8 = pneg %p2491_p7 }
 0x6bd   : > { %2948 = dma.done.wait (%p2492_p8), %s2405_s22, 16  }
 0x6be   : > { %2950 = vsyncadd (%p2492_p8), %s2405_s22, 4294967280  ;;  %p21_p9 = scmp.ge.s32.totalorder %s3100_s23, 4   ;;  %s4867_s17 = smov %s2957_s18 }
 0x6bf   : > { %s4868_s18 = smov %s2961_s19  ;;  %s4869_s19 = smov %s3111_s26 }
 0x6c0   : > { %s4870_s20 = smov %s3100_s23  ;;  %23 = sbr.rel (!%p21_p9) target bundleno = 6 (0x6), region = 110 }
 0x6c5   :  { %2410 = vsyncpa [#allocation4], 1 }
 0x6c6   :  { %2412 = vsyncpa [#allocation4 + $0x1], 1 }

</bundles_post_ra>
